<compile_context>
chip_gen: v5e
topology: v5e:2x2
jax: 0.10.0
libtpu: 0.0.40
codegen_flags: <defaults>
</compile_context>

<pallas_src>
from functools import partial

import jax
import jax.numpy as jnp
from jax import lax
from jax.experimental import pallas as pl
from jax.experimental.pallas import tpu as pltpu


def _gaussian_1d(filter_size, sigma):
    coords = jnp.arange(filter_size, dtype=jnp.float32) - (filter_size - 1) / 2.0
    g = jnp.exp(-(coords ** 2) / (2.0 * float(sigma) ** 2))
    return g / jnp.sum(g)


def _conv_matrix(g, n_in):
    """(n_out, n_in) matrix M s.t. M @ v == valid 1-D correlation of v with g."""
    f = g.shape[0]
    n_out = n_in - f + 1
    i = jnp.arange(n_out)[:, None]
    j = jnp.arange(n_in)[None, :]
    k = j - i
    valid = (k >= 0) & (k < f)
    vals = g[jnp.clip(k, 0, f - 1)]
    return jnp.where(valid, vals, 0.0).astype(jnp.float32)


def _l1cssimtv_kernel(x_ref, y_ref, gh_ref, gwt_ref, out_ref, *,
                      c1, c2, p, G, H, Ho, Wo, Wo_pad):
    # One group of G (H, W) image pairs per grid step; f32 cast happens here.
    x = x_ref[...].astype(jnp.float32)            # (G, H, W)
    y = y_ref[...].astype(jnp.float32)            # (G, H, W)
    gh = gh_ref[...]                              # (Ho, H)
    gwt = gwt_ref[...]                            # (W, Wo_pad), cols >= Wo zero

    # ---- Fused separable Gaussian filtering: 2 MXU matmuls per step ----
    # Stack the five moment maps of every image along the sublane axis.
    parts = []
    for g_i in range(G):
        xg = x[g_i]
        yg = y[g_i]
        parts += [xg, yg, xg * xg, yg * yg, xg * yg]
    s = jnp.concatenate(parts, axis=0)            # (5*G*H, W)

    # W-pass: one matmul for all G*5 maps (zero-padded columns stay zero).
    sw = jnp.dot(s, gwt, preferred_element_type=jnp.float32)   # (5*G*H, Wo_pad)

    # Lane-concatenate the (H, Wo_pad) W-pass maps at 128-aligned offsets so the
    # H-pass is also a single matmul; row slices are sublane-aligned (k*H).
    cat = jnp.concatenate(
        [sw[k * H:(k + 1) * H, :] for k in range(5 * G)], axis=1)
    bl = jnp.dot(gh, cat, preferred_element_type=jnp.float32)  # (Ho, 5*G*Wo_pad)

    lane = lax.broadcasted_iota(jnp.int32, (Ho, Wo_pad), 1)
    valid = lane < Wo                      # padded lanes blur to SSIM == 1
    out_lane = lax.broadcasted_iota(jnp.int32, (1, 128), 1)

    rows = []
    for g_i in range(G):
        base = g_i * 5 * Wo_pad
        mu_x = bl[:, base + 0 * Wo_pad: base + 1 * Wo_pad]
        mu_y = bl[:, base + 1 * Wo_pad: base + 2 * Wo_pad]
        e_xx = bl[:, base + 2 * Wo_pad: base + 3 * Wo_pad]
        e_yy = bl[:, base + 3 * Wo_pad: base + 4 * Wo_pad]
        e_xy = bl[:, base + 4 * Wo_pad: base + 5 * Wo_pad]

        mu_xx = mu_x * mu_x
        mu_yy = mu_y * mu_y
        mu_xy = mu_x * mu_y
        sxx = e_xx - mu_xx
        syy = e_yy - mu_yy
        sxy = e_xy - mu_xy

        num = (2.0 * mu_xy + c1) * (2.0 * sxy + c2)
        den = (mu_xx + mu_yy + c1) * (sxx + syy + c2)
        ssim_sum = jnp.sum(jnp.where(valid, num / den, 0.0))

        xg = x[g_i]
        yg = y[g_i]
        l1_sum = jnp.sum(jnp.abs(xg - yg))

        dh = xg[1:, :] - xg[:-1, :]
        dw = xg[:, 1:] - xg[:, :-1]
        if p == 2:
            tvh_sum = jnp.sum(dh * dh)
            tvw_sum = jnp.sum(dw * dw)
        else:
            # TODO(synk): torch TVLoss most likely applies pow to the signed
            # differences; |d|^p would differ for odd / non-integer p.
            tvh_sum = jnp.sum(jnp.power(dh, p))
            tvw_sum = jnp.sum(jnp.power(dw, p))

        # Lane-dense (1, 128) partial-sum row: lanes 0..3 carry the sums.
        rows.append(jnp.where(out_lane == 0, ssim_sum, 0.0)
                    + jnp.where(out_lane == 1, l1_sum, 0.0)
                    + jnp.where(out_lane == 2, tvh_sum, 0.0)
                    + jnp.where(out_lane == 3, tvw_sum, 0.0))

    out_ref[0, :, :] = jnp.concatenate(rows, axis=0).astype(jnp.float32)


def _pick_group_size(N, H, W, Ho, Wo_pad, in_bytes,
                     max_g=8, budget=20 * 2 ** 20):
    """Largest divisor of N that fits the VMEM budget; keep >= 2 grid steps."""
    per_img = (4 * (5 * H * W + 10 * H * Wo_pad + 13 * Ho * Wo_pad)
               + 4 * H * W * in_bytes)            # rough f32 working set + inputs
    cap = max(1, min(max_g, int(budget // max(per_img, 1))))
    best = 1
    for g in range(1, min(N, cap) + 1):
        if N % g == 0:
            best = g
    # Leave at least 2 steps when possible so the pipeline has work to overlap
    # and v7x's second TensorCore isn't starved on the "parallel" axis.
    if N >= 2 and N // best < 2:
        for g in range(best - 1, 0, -1):
            if N % g == 0 and N // g >= 2:
                return g
    return best


def l1_cssim_tv(x, y, l1_weight, max_val=1.0, filter_size=11, sigma=1.5,
                k1=0.01, k2=0.03, reduction='mean', tvloss_weight=1e-4, p=2):
    assert reduction == 'mean', "only reduction='mean' is implemented"
    assert x.shape == y.shape and x.ndim == 4, "expected matching NCHW inputs"
    B, C, H, W = x.shape
    assert H >= filter_size and W >= filter_size, "image smaller than SSIM window"

    N = B * C
    Ho = H - filter_size + 1
    Wo = W - filter_size + 1
    Wo_pad = ((Wo + 127) // 128) * 128

    g1d = _gaussian_1d(filter_size, sigma)
    gh = _conv_matrix(g1d, H)                         # (Ho, H)
    gwt = _conv_matrix(g1d, W).T                      # (W, Wo), pre-transposed
    gwt = jnp.pad(gwt, ((0, 0), (0, Wo_pad - Wo)))    # lane-pad with zero cols

    # Pure reshape (contiguous): per-channel SSIM is independent, so fold the
    # channel axis into the image axis.
    xr = x.reshape(N, H, W)
    yr = y.reshape(N, H, W)

    c1 = float((k1 * max_val) ** 2)
    c2 = float((k2 * max_val) ** 2)

    in_bytes = x.dtype.itemsize
    G = _pick_group_size(N, H, W, Ho, Wo_pad, in_bytes)
    steps = N // G

    est_bytes = (G * (4 * (5 * H * W + 10 * H * Wo_pad + 13 * Ho * Wo_pad)
                      + 4 * H * W * in_bytes)
                 + 2 * 4 * (Ho * H + W * Wo_pad))
    vmem_limit = int(min(56 * 2 ** 20, max(24 * 2 ** 20, 2 * est_bytes)))

    flops_per_img = (2 * 5 * H * W * Wo_pad          # W-pass matmul share
                     + 2 * 5 * Ho * H * Wo_pad       # H-pass matmul share
                     + 40 * Ho * Wo_pad + 16 * H * W)
    bytes_total = (2 * N * H * W * in_bytes
                   + (Ho * H + W * Wo_pad) * 4
                   + N * 128 * 4)

    kernel = partial(_l1cssimtv_kernel, c1=c1, c2=c2, p=p, G=G, H=H,
                     Ho=Ho, Wo=Wo, Wo_pad=Wo_pad)

    partials = pl.pallas_call(
        kernel,
        out_shape=jax.ShapeDtypeStruct((steps, G, 128), jnp.float32),
        grid_spec=pltpu.PrefetchScalarGridSpec(
            num_scalar_prefetch=0,
            grid=(steps,),
            in_specs=[
                pl.BlockSpec((G, H, W), lambda i: (i, 0, 0)),
                pl.BlockSpec((G, H, W), lambda i: (i, 0, 0)),
                # Constant index maps: filter matrices DMA'd once, VMEM-resident.
                pl.BlockSpec((Ho, H), lambda i: (0, 0)),
                pl.BlockSpec((W, Wo_pad), lambda i: (0, 0)),
            ],
            out_specs=pl.BlockSpec((1, G, 128), lambda i: (i, 0, 0)),
        ),
        compiler_params=pltpu.CompilerParams(
            dimension_semantics=("parallel",),
            vmem_limit_bytes=vmem_limit,
        ),
        cost_estimate=pl.CostEstimate(
            flops=int(N * flops_per_img),
            transcendentals=0,
            bytes_accessed=int(bytes_total),
        ),
    )(xr, yr, gh, gwt)

    partials = partials.reshape(N, 128)
    ssim_sum = jnp.sum(partials[:, 0])
    l1_sum = jnp.sum(partials[:, 1])
    h_tv = jnp.sum(partials[:, 2])
    w_tv = jnp.sum(partials[:, 3])

    ssim_mean = ssim_sum / (N * Ho * Wo)
    l1_mean = l1_sum / (N * H * W)
    # Canonical PyTorch TVLoss: per-sample counts, divided by batch size once.
    count_h = C * (H - 1) * W
    count_w = C * H * (W - 1)
    tv = tvloss_weight * 2.0 * (h_tv / count_h + w_tv / count_w) / B

    return (1.0 - ssim_mean) + l1_weight * l1_mean + tv


def _reference_loss(x, y, l1_weight, max_val=1.0, filter_size=11, sigma=1.5,
                    k1=0.01, k2=0.03, tvloss_weight=1e-4, p=2):
    """Independent pure-JAX reference (depthwise 2-D conv instead of matmuls)."""
    B, C, H, W = x.shape
    g = _gaussian_1d(filter_size, sigma)
    win = jnp.tile(jnp.outer(g, g)[None, None].astype(jnp.float32), (C, 1, 1, 1))

    def filt(t):
        return lax.conv_general_dilated(
            t.astype(jnp.float32), win, window_strides=(1, 1), padding="VALID",
            dimension_numbers=("NCHW", "OIHW", "NCHW"), feature_group_count=C)

    xf = x.astype(jnp.float32)
    yf = y.astype(jnp.float32)
    mu_x, mu_y = filt(xf), filt(yf)
    sxx = filt(xf * xf) - mu_x * mu_x
    syy = filt(yf * yf) - mu_y * mu_y
    sxy = filt(xf * yf) - mu_x * mu_y
    c1 = (k1 * max_val) ** 2
    c2 = (k2 * max_val) ** 2
    ssim_map = ((2 * mu_x * mu_y + c1) * (2 * sxy + c2)) / (
        (mu_x * mu_x + mu_y * mu_y + c1) * (sxx + syy + c2))
    cssim = 1.0 - jnp.mean(ssim_map)

    l1 = jnp.mean(jnp.abs(xf - yf))

    dh = xf[:, :, 1:, :] - xf[:, :, :-1, :]
    dw = xf[:, :, :, 1:] - xf[:, :, :, :-1]
    count_h = C * (H - 1) * W
    count_w = C * H * (W - 1)
    tv = tvloss_weight * 2.0 * (jnp.sum(dh ** p) / count_h
                                + jnp.sum(dw ** p) / count_w) / B
    return cssim + l1_weight * l1 + tv


if __name__ == "__main__":
    key = jax.random.PRNGKey(0)
    kx, kn = jax.random.split(key)
    # fastMRI-like NCHW magnitude images in [0, 1); target = input + small noise.
    B, C, H, W = 2, 4, 32, 32
    x = jax.random.uniform(kx, (B, C, H, W), dtype=jnp.float32)
    y = jnp.clip(x + 0.05 * jax.random.normal(kn, (B, C, H, W), dtype=jnp.float32),
                 0.0, 1.0)

    loss = l1_cssim_tv(x, y, l1_weight=1.0, max_val=1.0,
                       filter_size=11, sigma=1.5, tvloss_weight=1e-4, p=2)
    jax.block_until_ready(loss)

    ref = _reference_loss(x, y, l1_weight=1.0, max_val=1.0,
                          filter_size=11, sigma=1.5, tvloss_weight=1e-4, p=2)
    assert jnp.allclose(loss, ref, rtol=1e-4, atol=1e-5), (loss, ref)

    print("KERNEL_OK")
</pallas_src>

<mosaic_0001>
module attributes {stable_mosaic.version = 11 : i64} {
  func.func @_l1cssimtv_kernel(%arg0: i32, %arg1: memref<4x32x32xf32, #tpu.memory_space<vmem>>, %arg2: memref<4x32x32xf32, #tpu.memory_space<vmem>>, %arg3: memref<22x32xf32, #tpu.memory_space<vmem>>, %arg4: memref<32x128xf32, #tpu.memory_space<vmem>>, %arg5: memref<1x4x128xf32, #tpu.memory_space<vmem>>) attributes {dimension_semantics = [#tpu.dimension_semantics<parallel>], iteration_bounds = array<i64: 2>, scalar_prefetch = 0 : i64, scratch_operands = 0 : i64, tpu.core_type = #tpu.core_type<tc>, window_params = [{transform_indices = @transform_0, window_bounds = array<i64: 4, 32, 32>}, {transform_indices = @transform_1, window_bounds = array<i64: 4, 32, 32>}, {pipeline_mode = #tpu.pipeline_mode<synchronous>, transform_indices = @transform_2, window_bounds = array<i64: 22, 32>}, {pipeline_mode = #tpu.pipeline_mode<synchronous>, transform_indices = @transform_3, window_bounds = array<i64: 32, 128>}, {transform_indices = @transform_4, window_bounds = array<i64: 1, 4, 128>}]} {
    %c0 = arith.constant 0 : index
    %c0_0 = arith.constant 0 : index
    %c0_1 = arith.constant 0 : index
    %0 = vector.load %arg1[%c0, %c0_0, %c0_1] : memref<4x32x32xf32, #tpu.memory_space<vmem>>, vector<4x32x32xf32>
    %c0_2 = arith.constant 0 : index
    %c0_3 = arith.constant 0 : index
    %c0_4 = arith.constant 0 : index
    %1 = vector.load %arg2[%c0_2, %c0_3, %c0_4] : memref<4x32x32xf32, #tpu.memory_space<vmem>>, vector<4x32x32xf32>
    %c0_5 = arith.constant 0 : index
    %c0_6 = arith.constant 0 : index
    %2 = vector.load %arg3[%c0_5, %c0_6] : memref<22x32xf32, #tpu.memory_space<vmem>>, vector<22x32xf32>
    %c0_7 = arith.constant 0 : index
    %c0_8 = arith.constant 0 : index
    %3 = vector.load %arg4[%c0_7, %c0_8] : memref<32x128xf32, #tpu.memory_space<vmem>>, vector<32x128xf32>
    %4 = vector.extract_strided_slice %0 {offsets = [0, 0, 0], sizes = [1, 32, 32], strides = [1, 1, 1]} : vector<4x32x32xf32> to vector<1x32x32xf32>
    %5 = vector.shape_cast %4 : vector<1x32x32xf32> to vector<32x32xf32>
    %6 = vector.extract_strided_slice %1 {offsets = [0, 0, 0], sizes = [1, 32, 32], strides = [1, 1, 1]} : vector<4x32x32xf32> to vector<1x32x32xf32>
    %7 = vector.shape_cast %6 : vector<1x32x32xf32> to vector<32x32xf32>
    %8 = arith.mulf %5, %5 : vector<32x32xf32>
    %9 = arith.mulf %7, %7 : vector<32x32xf32>
    %10 = arith.mulf %5, %7 : vector<32x32xf32>
    %11 = vector.extract_strided_slice %0 {offsets = [1, 0, 0], sizes = [1, 32, 32], strides = [1, 1, 1]} : vector<4x32x32xf32> to vector<1x32x32xf32>
    %12 = vector.shape_cast %11 : vector<1x32x32xf32> to vector<32x32xf32>
    %13 = vector.extract_strided_slice %1 {offsets = [1, 0, 0], sizes = [1, 32, 32], strides = [1, 1, 1]} : vector<4x32x32xf32> to vector<1x32x32xf32>
    %14 = vector.shape_cast %13 : vector<1x32x32xf32> to vector<32x32xf32>
    %15 = arith.mulf %12, %12 : vector<32x32xf32>
    %16 = arith.mulf %14, %14 : vector<32x32xf32>
    %17 = arith.mulf %12, %14 : vector<32x32xf32>
    %18 = vector.extract_strided_slice %0 {offsets = [2, 0, 0], sizes = [1, 32, 32], strides = [1, 1, 1]} : vector<4x32x32xf32> to vector<1x32x32xf32>
    %19 = vector.shape_cast %18 : vector<1x32x32xf32> to vector<32x32xf32>
    %20 = vector.extract_strided_slice %1 {offsets = [2, 0, 0], sizes = [1, 32, 32], strides = [1, 1, 1]} : vector<4x32x32xf32> to vector<1x32x32xf32>
    %21 = vector.shape_cast %20 : vector<1x32x32xf32> to vector<32x32xf32>
    %22 = arith.mulf %19, %19 : vector<32x32xf32>
    %23 = arith.mulf %21, %21 : vector<32x32xf32>
    %24 = arith.mulf %19, %21 : vector<32x32xf32>
    %25 = vector.extract_strided_slice %0 {offsets = [3, 0, 0], sizes = [1, 32, 32], strides = [1, 1, 1]} : vector<4x32x32xf32> to vector<1x32x32xf32>
    %26 = vector.shape_cast %25 : vector<1x32x32xf32> to vector<32x32xf32>
    %27 = vector.extract_strided_slice %1 {offsets = [3, 0, 0], sizes = [1, 32, 32], strides = [1, 1, 1]} : vector<4x32x32xf32> to vector<1x32x32xf32>
    %28 = vector.shape_cast %27 : vector<1x32x32xf32> to vector<32x32xf32>
    %29 = arith.mulf %26, %26 : vector<32x32xf32>
    %30 = arith.mulf %28, %28 : vector<32x32xf32>
    %31 = arith.mulf %26, %28 : vector<32x32xf32>
    %32 = tpu.concatenate %5, %7, %8, %9, %10, %12, %14, %15, %16, %17, %19, %21, %22, %23, %24, %26 in 0 : vector<32x32xf32>, vector<32x32xf32>, vector<32x32xf32>, vector<32x32xf32>, vector<32x32xf32>, vector<32x32xf32>, vector<32x32xf32>, vector<32x32xf32>, vector<32x32xf32>, vector<32x32xf32>, vector<32x32xf32>, vector<32x32xf32>, vector<32x32xf32>, vector<32x32xf32>, vector<32x32xf32>, vector<32x32xf32> -> vector<512x32xf32>
    %33 = tpu.concatenate %28, %29, %30, %31 in 0 : vector<32x32xf32>, vector<32x32xf32>, vector<32x32xf32>, vector<32x32xf32> -> vector<128x32xf32>
    %34 = tpu.concatenate %32, %33 in 0 : vector<512x32xf32>, vector<128x32xf32> -> vector<640x32xf32>
    %cst = arith.constant dense<0.000000e+00> : vector<640x128xf32>
    %35 = tpu.matmul %34, %3, %cst {dimension_numbers = #tpu.dot_dimension_numbers<[1], [0], [0], [1], [0, 0, 1, 1], [], []>} : vector<640x32xf32>, vector<32x128xf32>, vector<640x128xf32> -> vector<640x128xf32>
    %36 = vector.extract_strided_slice %35 {offsets = [0, 0], sizes = [32, 128], strides = [1, 1]} : vector<640x128xf32> to vector<32x128xf32>
    %37 = vector.extract_strided_slice %35 {offsets = [32, 0], sizes = [32, 128], strides = [1, 1]} : vector<640x128xf32> to vector<32x128xf32>
    %38 = vector.extract_strided_slice %35 {offsets = [64, 0], sizes = [32, 128], strides = [1, 1]} : vector<640x128xf32> to vector<32x128xf32>
    %39 = vector.extract_strided_slice %35 {offsets = [96, 0], sizes = [32, 128], strides = [1, 1]} : vector<640x128xf32> to vector<32x128xf32>
    %40 = vector.extract_strided_slice %35 {offsets = [128, 0], sizes = [32, 128], strides = [1, 1]} : vector<640x128xf32> to vector<32x128xf32>
    %41 = vector.extract_strided_slice %35 {offsets = [160, 0], sizes = [32, 128], strides = [1, 1]} : vector<640x128xf32> to vector<32x128xf32>
    %42 = vector.extract_strided_slice %35 {offsets = [192, 0], sizes = [32, 128], strides = [1, 1]} : vector<640x128xf32> to vector<32x128xf32>
    %43 = vector.extract_strided_slice %35 {offsets = [224, 0], sizes = [32, 128], strides = [1, 1]} : vector<640x128xf32> to vector<32x128xf32>
    %44 = vector.extract_strided_slice %35 {offsets = [256, 0], sizes = [32, 128], strides = [1, 1]} : vector<640x128xf32> to vector<32x128xf32>
    %45 = vector.extract_strided_slice %35 {offsets = [288, 0], sizes = [32, 128], strides = [1, 1]} : vector<640x128xf32> to vector<32x128xf32>
    %46 = vector.extract_strided_slice %35 {offsets = [320, 0], sizes = [32, 128], strides = [1, 1]} : vector<640x128xf32> to vector<32x128xf32>
    %47 = vector.extract_strided_slice %35 {offsets = [352, 0], sizes = [32, 128], strides = [1, 1]} : vector<640x128xf32> to vector<32x128xf32>
    %48 = vector.extract_strided_slice %35 {offsets = [384, 0], sizes = [32, 128], strides = [1, 1]} : vector<640x128xf32> to vector<32x128xf32>
    %49 = vector.extract_strided_slice %35 {offsets = [416, 0], sizes = [32, 128], strides = [1, 1]} : vector<640x128xf32> to vector<32x128xf32>
    %50 = vector.extract_strided_slice %35 {offsets = [448, 0], sizes = [32, 128], strides = [1, 1]} : vector<640x128xf32> to vector<32x128xf32>
    %51 = vector.extract_strided_slice %35 {offsets = [480, 0], sizes = [32, 128], strides = [1, 1]} : vector<640x128xf32> to vector<32x128xf32>
    %52 = vector.extract_strided_slice %35 {offsets = [512, 0], sizes = [32, 128], strides = [1, 1]} : vector<640x128xf32> to vector<32x128xf32>
    %53 = vector.extract_strided_slice %35 {offsets = [544, 0], sizes = [32, 128], strides = [1, 1]} : vector<640x128xf32> to vector<32x128xf32>
    %54 = vector.extract_strided_slice %35 {offsets = [576, 0], sizes = [32, 128], strides = [1, 1]} : vector<640x128xf32> to vector<32x128xf32>
    %55 = vector.extract_strided_slice %35 {offsets = [608, 0], sizes = [32, 128], strides = [1, 1]} : vector<640x128xf32> to vector<32x128xf32>
    %56 = tpu.concatenate %36, %37, %38, %39, %40, %41, %42, %43, %44, %45, %46, %47, %48, %49, %50, %51 in 1 : vector<32x128xf32>, vector<32x128xf32>, vector<32x128xf32>, vector<32x128xf32>, vector<32x128xf32>, vector<32x128xf32>, vector<32x128xf32>, vector<32x128xf32>, vector<32x128xf32>, vector<32x128xf32>, vector<32x128xf32>, vector<32x128xf32>, vector<32x128xf32>, vector<32x128xf32>, vector<32x128xf32>, vector<32x128xf32> -> vector<32x2048xf32>
    %57 = tpu.concatenate %52, %53, %54, %55 in 1 : vector<32x128xf32>, vector<32x128xf32>, vector<32x128xf32>, vector<32x128xf32> -> vector<32x512xf32>
    %58 = tpu.concatenate %56, %57 in 1 : vector<32x2048xf32>, vector<32x512xf32> -> vector<32x2560xf32>
    %cst_9 = arith.constant dense<0.000000e+00> : vector<22x2560xf32>
    %59 = tpu.matmul %2, %58, %cst_9 {dimension_numbers = #tpu.dot_dimension_numbers<[1], [0], [0], [1], [0, 0, 1, 1], [], []>} : vector<22x32xf32>, vector<32x2560xf32>, vector<22x2560xf32> -> vector<22x2560xf32>
    %60 = tpu.iota {dimensions = array<i32: 1>} : vector<22x128xi32>
    %c22_i32 = arith.constant 22 : i32
    %61 = vector.broadcast %c22_i32 : i32 to vector<22x128xi32>
    %62 = arith.cmpi slt, %60, %61 : vector<22x128xi32>
    %63 = tpu.iota {dimensions = array<i32: 1>} : vector<1x128xi32>
    %64 = vector.extract_strided_slice %59 {offsets = [0, 0], sizes = [22, 128], strides = [1, 1]} : vector<22x2560xf32> to vector<22x128xf32>
    %65 = vector.extract_strided_slice %59 {offsets = [0, 128], sizes = [22, 128], strides = [1, 1]} : vector<22x2560xf32> to vector<22x128xf32>
    %66 = vector.extract_strided_slice %59 {offsets = [0, 256], sizes = [22, 128], strides = [1, 1]} : vector<22x2560xf32> to vector<22x128xf32>
    %67 = vector.extract_strided_slice %59 {offsets = [0, 384], sizes = [22, 128], strides = [1, 1]} : vector<22x2560xf32> to vector<22x128xf32>
    %68 = vector.extract_strided_slice %59 {offsets = [0, 512], sizes = [22, 128], strides = [1, 1]} : vector<22x2560xf32> to vector<22x128xf32>
    %69 = arith.mulf %64, %64 : vector<22x128xf32>
    %70 = arith.mulf %65, %65 : vector<22x128xf32>
    %71 = arith.mulf %64, %65 : vector<22x128xf32>
    %72 = arith.subf %66, %69 : vector<22x128xf32>
    %73 = arith.subf %67, %70 : vector<22x128xf32>
    %74 = arith.subf %68, %71 : vector<22x128xf32>
    %cst_10 = arith.constant 2.000000e+00 : f32
    %75 = vector.broadcast %cst_10 : f32 to vector<22x128xf32>
    %76 = arith.mulf %75, %71 : vector<22x128xf32>
    %cst_11 = arith.constant 9.99999974E-5 : f32
    %77 = vector.broadcast %cst_11 : f32 to vector<22x128xf32>
    %78 = arith.addf %76, %77 : vector<22x128xf32>
    %cst_12 = arith.constant 2.000000e+00 : f32
    %79 = vector.broadcast %cst_12 : f32 to vector<22x128xf32>
    %80 = arith.mulf %79, %74 : vector<22x128xf32>
    %cst_13 = arith.constant 8.99999984E-4 : f32
    %81 = vector.broadcast %cst_13 : f32 to vector<22x128xf32>
    %82 = arith.addf %80, %81 : vector<22x128xf32>
    %83 = arith.mulf %78, %82 : vector<22x128xf32>
    %84 = arith.addf %69, %70 : vector<22x128xf32>
    %cst_14 = arith.constant 9.99999974E-5 : f32
    %85 = vector.broadcast %cst_14 : f32 to vector<22x128xf32>
    %86 = arith.addf %84, %85 : vector<22x128xf32>
    %87 = arith.addf %72, %73 : vector<22x128xf32>
    %cst_15 = arith.constant 8.99999984E-4 : f32
    %88 = vector.broadcast %cst_15 : f32 to vector<22x128xf32>
    %89 = arith.addf %87, %88 : vector<22x128xf32>
    %90 = arith.mulf %86, %89 : vector<22x128xf32>
    %91 = arith.divf %83, %90 : vector<22x128xf32>
    %cst_16 = arith.constant 0.000000e+00 : f32
    %92 = vector.broadcast %cst_16 : f32 to vector<22x128xf32>
    %93 = arith.select %62, %91, %92 : vector<22x128xi1>, vector<22x128xf32>
    %94 = vector.shape_cast %93 : vector<22x128xf32> to vector<1x22x128xf32>
    %cst_17 = arith.constant dense<0.000000e+00> : vector<1xf32>
    %95 = vector.multi_reduction <add>, %94, %cst_17 [1, 2] : vector<1x22x128xf32> to vector<1xf32>
    %96 = vector.shape_cast %95 : vector<1xf32> to vector<1x1x1xf32>
    %97 = vector.extract %96[0, 0, 0] : f32 from vector<1x1x1xf32>
    %98 = vector.extract_strided_slice %0 {offsets = [0, 0, 0], sizes = [1, 32, 32], strides = [1, 1, 1]} : vector<4x32x32xf32> to vector<1x32x32xf32>
    %99 = vector.shape_cast %98 : vector<1x32x32xf32> to vector<32x32xf32>
    %100 = vector.extract_strided_slice %1 {offsets = [0, 0, 0], sizes = [1, 32, 32], strides = [1, 1, 1]} : vector<4x32x32xf32> to vector<1x32x32xf32>
    %101 = vector.shape_cast %100 : vector<1x32x32xf32> to vector<32x32xf32>
    %102 = arith.subf %99, %101 : vector<32x32xf32>
    %103 = math.absf %102 : vector<32x32xf32>
    %104 = vector.shape_cast %103 : vector<32x32xf32> to vector<1x32x32xf32>
    %cst_18 = arith.constant dense<0.000000e+00> : vector<1xf32>
    %105 = vector.multi_reduction <add>, %104, %cst_18 [1, 2] : vector<1x32x32xf32> to vector<1xf32>
    %106 = vector.shape_cast %105 : vector<1xf32> to vector<1x1x1xf32>
    %107 = vector.extract %106[0, 0, 0] : f32 from vector<1x1x1xf32>
    %108 = vector.extract_strided_slice %99 {offsets = [1, 0], sizes = [31, 32], strides = [1, 1]} : vector<32x32xf32> to vector<31x32xf32>
    %109 = vector.extract_strided_slice %99 {offsets = [0, 0], sizes = [31, 32], strides = [1, 1]} : vector<32x32xf32> to vector<31x32xf32>
    %110 = arith.subf %108, %109 : vector<31x32xf32>
    %111 = vector.extract_strided_slice %99 {offsets = [0, 1], sizes = [32, 31], strides = [1, 1]} : vector<32x32xf32> to vector<32x31xf32>
    %112 = vector.extract_strided_slice %99 {offsets = [0, 0], sizes = [32, 31], strides = [1, 1]} : vector<32x32xf32> to vector<32x31xf32>
    %113 = arith.subf %111, %112 : vector<32x31xf32>
    %114 = arith.mulf %110, %110 : vector<31x32xf32>
    %115 = vector.shape_cast %114 : vector<31x32xf32> to vector<1x31x32xf32>
    %cst_19 = arith.constant dense<0.000000e+00> : vector<1xf32>
    %116 = vector.multi_reduction <add>, %115, %cst_19 [1, 2] : vector<1x31x32xf32> to vector<1xf32>
    %117 = vector.shape_cast %116 : vector<1xf32> to vector<1x1x1xf32>
    %118 = vector.extract %117[0, 0, 0] : f32 from vector<1x1x1xf32>
    %119 = arith.mulf %113, %113 : vector<32x31xf32>
    %120 = vector.shape_cast %119 : vector<32x31xf32> to vector<1x32x31xf32>
    %cst_20 = arith.constant dense<0.000000e+00> : vector<1xf32>
    %121 = vector.multi_reduction <add>, %120, %cst_20 [1, 2] : vector<1x32x31xf32> to vector<1xf32>
    %122 = vector.shape_cast %121 : vector<1xf32> to vector<1x1x1xf32>
    %123 = vector.extract %122[0, 0, 0] : f32 from vector<1x1x1xf32>
    %c0_i32 = arith.constant 0 : i32
    %124 = vector.broadcast %c0_i32 : i32 to vector<1x128xi32>
    %125 = arith.cmpi eq, %63, %124 : vector<1x128xi32>
    %cst_21 = arith.constant 0.000000e+00 : f32
    %126 = vector.broadcast %97 : f32 to vector<1x128xf32>
    %127 = vector.broadcast %cst_21 : f32 to vector<1x128xf32>
    %128 = arith.select %125, %126, %127 : vector<1x128xi1>, vector<1x128xf32>
    %c1_i32 = arith.constant 1 : i32
    %129 = vector.broadcast %c1_i32 : i32 to vector<1x128xi32>
    %130 = arith.cmpi eq, %63, %129 : vector<1x128xi32>
    %cst_22 = arith.constant 0.000000e+00 : f32
    %131 = vector.broadcast %107 : f32 to vector<1x128xf32>
    %132 = vector.broadcast %cst_22 : f32 to vector<1x128xf32>
    %133 = arith.select %130, %131, %132 : vector<1x128xi1>, vector<1x128xf32>
    %134 = arith.addf %128, %133 : vector<1x128xf32>
    %c2_i32 = arith.constant 2 : i32
    %135 = vector.broadcast %c2_i32 : i32 to vector<1x128xi32>
    %136 = arith.cmpi eq, %63, %135 : vector<1x128xi32>
    %cst_23 = arith.constant 0.000000e+00 : f32
    %137 = vector.broadcast %118 : f32 to vector<1x128xf32>
    %138 = vector.broadcast %cst_23 : f32 to vector<1x128xf32>
    %139 = arith.select %136, %137, %138 : vector<1x128xi1>, vector<1x128xf32>
    %140 = arith.addf %134, %139 : vector<1x128xf32>
    %c3_i32 = arith.constant 3 : i32
    %141 = vector.broadcast %c3_i32 : i32 to vector<1x128xi32>
    %142 = arith.cmpi eq, %63, %141 : vector<1x128xi32>
    %cst_24 = arith.constant 0.000000e+00 : f32
    %143 = vector.broadcast %123 : f32 to vector<1x128xf32>
    %144 = vector.broadcast %cst_24 : f32 to vector<1x128xf32>
    %145 = arith.select %142, %143, %144 : vector<1x128xi1>, vector<1x128xf32>
    %146 = arith.addf %140, %145 : vector<1x128xf32>
    %147 = vector.extract_strided_slice %59 {offsets = [0, 640], sizes = [22, 128], strides = [1, 1]} : vector<22x2560xf32> to vector<22x128xf32>
    %148 = vector.extract_strided_slice %59 {offsets = [0, 768], sizes = [22, 128], strides = [1, 1]} : vector<22x2560xf32> to vector<22x128xf32>
    %149 = vector.extract_strided_slice %59 {offsets = [0, 896], sizes = [22, 128], strides = [1, 1]} : vector<22x2560xf32> to vector<22x128xf32>
    %150 = vector.extract_strided_slice %59 {offsets = [0, 1024], sizes = [22, 128], strides = [1, 1]} : vector<22x2560xf32> to vector<22x128xf32>
    %151 = vector.extract_strided_slice %59 {offsets = [0, 1152], sizes = [22, 128], strides = [1, 1]} : vector<22x2560xf32> to vector<22x128xf32>
    %152 = arith.mulf %147, %147 : vector<22x128xf32>
    %153 = arith.mulf %148, %148 : vector<22x128xf32>
    %154 = arith.mulf %147, %148 : vector<22x128xf32>
    %155 = arith.subf %149, %152 : vector<22x128xf32>
    %156 = arith.subf %150, %153 : vector<22x128xf32>
    %157 = arith.subf %151, %154 : vector<22x128xf32>
    %cst_25 = arith.constant 2.000000e+00 : f32
    %158 = vector.broadcast %cst_25 : f32 to vector<22x128xf32>
    %159 = arith.mulf %158, %154 : vector<22x128xf32>
    %cst_26 = arith.constant 9.99999974E-5 : f32
    %160 = vector.broadcast %cst_26 : f32 to vector<22x128xf32>
    %161 = arith.addf %159, %160 : vector<22x128xf32>
    %cst_27 = arith.constant 2.000000e+00 : f32
    %162 = vector.broadcast %cst_27 : f32 to vector<22x128xf32>
    %163 = arith.mulf %162, %157 : vector<22x128xf32>
    %cst_28 = arith.constant 8.99999984E-4 : f32
    %164 = vector.broadcast %cst_28 : f32 to vector<22x128xf32>
    %165 = arith.addf %163, %164 : vector<22x128xf32>
    %166 = arith.mulf %161, %165 : vector<22x128xf32>
    %167 = arith.addf %152, %153 : vector<22x128xf32>
    %cst_29 = arith.constant 9.99999974E-5 : f32
    %168 = vector.broadcast %cst_29 : f32 to vector<22x128xf32>
    %169 = arith.addf %167, %168 : vector<22x128xf32>
    %170 = arith.addf %155, %156 : vector<22x128xf32>
    %cst_30 = arith.constant 8.99999984E-4 : f32
    %171 = vector.broadcast %cst_30 : f32 to vector<22x128xf32>
    %172 = arith.addf %170, %171 : vector<22x128xf32>
    %173 = arith.mulf %169, %172 : vector<22x128xf32>
    %174 = arith.divf %166, %173 : vector<22x128xf32>
    %cst_31 = arith.constant 0.000000e+00 : f32
    %175 = vector.broadcast %cst_31 : f32 to vector<22x128xf32>
    %176 = arith.select %62, %174, %175 : vector<22x128xi1>, vector<22x128xf32>
    %177 = vector.shape_cast %176 : vector<22x128xf32> to vector<1x22x128xf32>
    %cst_32 = arith.constant dense<0.000000e+00> : vector<1xf32>
    %178 = vector.multi_reduction <add>, %177, %cst_32 [1, 2] : vector<1x22x128xf32> to vector<1xf32>
    %179 = vector.shape_cast %178 : vector<1xf32> to vector<1x1x1xf32>
    %180 = vector.extract %179[0, 0, 0] : f32 from vector<1x1x1xf32>
    %181 = vector.extract_strided_slice %0 {offsets = [1, 0, 0], sizes = [1, 32, 32], strides = [1, 1, 1]} : vector<4x32x32xf32> to vector<1x32x32xf32>
    %182 = vector.shape_cast %181 : vector<1x32x32xf32> to vector<32x32xf32>
    %183 = vector.extract_strided_slice %1 {offsets = [1, 0, 0], sizes = [1, 32, 32], strides = [1, 1, 1]} : vector<4x32x32xf32> to vector<1x32x32xf32>
    %184 = vector.shape_cast %183 : vector<1x32x32xf32> to vector<32x32xf32>
    %185 = arith.subf %182, %184 : vector<32x32xf32>
    %186 = math.absf %185 : vector<32x32xf32>
    %187 = vector.shape_cast %186 : vector<32x32xf32> to vector<1x32x32xf32>
    %cst_33 = arith.constant dense<0.000000e+00> : vector<1xf32>
    %188 = vector.multi_reduction <add>, %187, %cst_33 [1, 2] : vector<1x32x32xf32> to vector<1xf32>
    %189 = vector.shape_cast %188 : vector<1xf32> to vector<1x1x1xf32>
    %190 = vector.extract %189[0, 0, 0] : f32 from vector<1x1x1xf32>
    %191 = vector.extract_strided_slice %182 {offsets = [1, 0], sizes = [31, 32], strides = [1, 1]} : vector<32x32xf32> to vector<31x32xf32>
    %192 = vector.extract_strided_slice %182 {offsets = [0, 0], sizes = [31, 32], strides = [1, 1]} : vector<32x32xf32> to vector<31x32xf32>
    %193 = arith.subf %191, %192 : vector<31x32xf32>
    %194 = vector.extract_strided_slice %182 {offsets = [0, 1], sizes = [32, 31], strides = [1, 1]} : vector<32x32xf32> to vector<32x31xf32>
    %195 = vector.extract_strided_slice %182 {offsets = [0, 0], sizes = [32, 31], strides = [1, 1]} : vector<32x32xf32> to vector<32x31xf32>
    %196 = arith.subf %194, %195 : vector<32x31xf32>
    %197 = arith.mulf %193, %193 : vector<31x32xf32>
    %198 = vector.shape_cast %197 : vector<31x32xf32> to vector<1x31x32xf32>
    %cst_34 = arith.constant dense<0.000000e+00> : vector<1xf32>
    %199 = vector.multi_reduction <add>, %198, %cst_34 [1, 2] : vector<1x31x32xf32> to vector<1xf32>
    %200 = vector.shape_cast %199 : vector<1xf32> to vector<1x1x1xf32>
    %201 = vector.extract %200[0, 0, 0] : f32 from vector<1x1x1xf32>
    %202 = arith.mulf %196, %196 : vector<32x31xf32>
    %203 = vector.shape_cast %202 : vector<32x31xf32> to vector<1x32x31xf32>
    %cst_35 = arith.constant dense<0.000000e+00> : vector<1xf32>
    %204 = vector.multi_reduction <add>, %203, %cst_35 [1, 2] : vector<1x32x31xf32> to vector<1xf32>
    %205 = vector.shape_cast %204 : vector<1xf32> to vector<1x1x1xf32>
    %206 = vector.extract %205[0, 0, 0] : f32 from vector<1x1x1xf32>
    %c0_i32_36 = arith.constant 0 : i32
    %207 = vector.broadcast %c0_i32_36 : i32 to vector<1x128xi32>
    %208 = arith.cmpi eq, %63, %207 : vector<1x128xi32>
    %cst_37 = arith.constant 0.000000e+00 : f32
    %209 = vector.broadcast %180 : f32 to vector<1x128xf32>
    %210 = vector.broadcast %cst_37 : f32 to vector<1x128xf32>
    %211 = arith.select %208, %209, %210 : vector<1x128xi1>, vector<1x128xf32>
    %c1_i32_38 = arith.constant 1 : i32
    %212 = vector.broadcast %c1_i32_38 : i32 to vector<1x128xi32>
    %213 = arith.cmpi eq, %63, %212 : vector<1x128xi32>
    %cst_39 = arith.constant 0.000000e+00 : f32
    %214 = vector.broadcast %190 : f32 to vector<1x128xf32>
    %215 = vector.broadcast %cst_39 : f32 to vector<1x128xf32>
    %216 = arith.select %213, %214, %215 : vector<1x128xi1>, vector<1x128xf32>
    %217 = arith.addf %211, %216 : vector<1x128xf32>
    %c2_i32_40 = arith.constant 2 : i32
    %218 = vector.broadcast %c2_i32_40 : i32 to vector<1x128xi32>
    %219 = arith.cmpi eq, %63, %218 : vector<1x128xi32>
    %cst_41 = arith.constant 0.000000e+00 : f32
    %220 = vector.broadcast %201 : f32 to vector<1x128xf32>
    %221 = vector.broadcast %cst_41 : f32 to vector<1x128xf32>
    %222 = arith.select %219, %220, %221 : vector<1x128xi1>, vector<1x128xf32>
    %223 = arith.addf %217, %222 : vector<1x128xf32>
    %c3_i32_42 = arith.constant 3 : i32
    %224 = vector.broadcast %c3_i32_42 : i32 to vector<1x128xi32>
    %225 = arith.cmpi eq, %63, %224 : vector<1x128xi32>
    %cst_43 = arith.constant 0.000000e+00 : f32
    %226 = vector.broadcast %206 : f32 to vector<1x128xf32>
    %227 = vector.broadcast %cst_43 : f32 to vector<1x128xf32>
    %228 = arith.select %225, %226, %227 : vector<1x128xi1>, vector<1x128xf32>
    %229 = arith.addf %223, %228 : vector<1x128xf32>
    %230 = vector.extract_strided_slice %59 {offsets = [0, 1280], sizes = [22, 128], strides = [1, 1]} : vector<22x2560xf32> to vector<22x128xf32>
    %231 = vector.extract_strided_slice %59 {offsets = [0, 1408], sizes = [22, 128], strides = [1, 1]} : vector<22x2560xf32> to vector<22x128xf32>
    %232 = vector.extract_strided_slice %59 {offsets = [0, 1536], sizes = [22, 128], strides = [1, 1]} : vector<22x2560xf32> to vector<22x128xf32>
    %233 = vector.extract_strided_slice %59 {offsets = [0, 1664], sizes = [22, 128], strides = [1, 1]} : vector<22x2560xf32> to vector<22x128xf32>
    %234 = vector.extract_strided_slice %59 {offsets = [0, 1792], sizes = [22, 128], strides = [1, 1]} : vector<22x2560xf32> to vector<22x128xf32>
    %235 = arith.mulf %230, %230 : vector<22x128xf32>
    %236 = arith.mulf %231, %231 : vector<22x128xf32>
    %237 = arith.mulf %230, %231 : vector<22x128xf32>
    %238 = arith.subf %232, %235 : vector<22x128xf32>
    %239 = arith.subf %233, %236 : vector<22x128xf32>
    %240 = arith.subf %234, %237 : vector<22x128xf32>
    %cst_44 = arith.constant 2.000000e+00 : f32
    %241 = vector.broadcast %cst_44 : f32 to vector<22x128xf32>
    %242 = arith.mulf %241, %237 : vector<22x128xf32>
    %cst_45 = arith.constant 9.99999974E-5 : f32
    %243 = vector.broadcast %cst_45 : f32 to vector<22x128xf32>
    %244 = arith.addf %242, %243 : vector<22x128xf32>
    %cst_46 = arith.constant 2.000000e+00 : f32
    %245 = vector.broadcast %cst_46 : f32 to vector<22x128xf32>
    %246 = arith.mulf %245, %240 : vector<22x128xf32>
    %cst_47 = arith.constant 8.99999984E-4 : f32
    %247 = vector.broadcast %cst_47 : f32 to vector<22x128xf32>
    %248 = arith.addf %246, %247 : vector<22x128xf32>
    %249 = arith.mulf %244, %248 : vector<22x128xf32>
    %250 = arith.addf %235, %236 : vector<22x128xf32>
    %cst_48 = arith.constant 9.99999974E-5 : f32
    %251 = vector.broadcast %cst_48 : f32 to vector<22x128xf32>
    %252 = arith.addf %250, %251 : vector<22x128xf32>
    %253 = arith.addf %238, %239 : vector<22x128xf32>
    %cst_49 = arith.constant 8.99999984E-4 : f32
    %254 = vector.broadcast %cst_49 : f32 to vector<22x128xf32>
    %255 = arith.addf %253, %254 : vector<22x128xf32>
    %256 = arith.mulf %252, %255 : vector<22x128xf32>
    %257 = arith.divf %249, %256 : vector<22x128xf32>
    %cst_50 = arith.constant 0.000000e+00 : f32
    %258 = vector.broadcast %cst_50 : f32 to vector<22x128xf32>
    %259 = arith.select %62, %257, %258 : vector<22x128xi1>, vector<22x128xf32>
    %260 = vector.shape_cast %259 : vector<22x128xf32> to vector<1x22x128xf32>
    %cst_51 = arith.constant dense<0.000000e+00> : vector<1xf32>
    %261 = vector.multi_reduction <add>, %260, %cst_51 [1, 2] : vector<1x22x128xf32> to vector<1xf32>
    %262 = vector.shape_cast %261 : vector<1xf32> to vector<1x1x1xf32>
    %263 = vector.extract %262[0, 0, 0] : f32 from vector<1x1x1xf32>
    %264 = vector.extract_strided_slice %0 {offsets = [2, 0, 0], sizes = [1, 32, 32], strides = [1, 1, 1]} : vector<4x32x32xf32> to vector<1x32x32xf32>
    %265 = vector.shape_cast %264 : vector<1x32x32xf32> to vector<32x32xf32>
    %266 = vector.extract_strided_slice %1 {offsets = [2, 0, 0], sizes = [1, 32, 32], strides = [1, 1, 1]} : vector<4x32x32xf32> to vector<1x32x32xf32>
    %267 = vector.shape_cast %266 : vector<1x32x32xf32> to vector<32x32xf32>
    %268 = arith.subf %265, %267 : vector<32x32xf32>
    %269 = math.absf %268 : vector<32x32xf32>
    %270 = vector.shape_cast %269 : vector<32x32xf32> to vector<1x32x32xf32>
    %cst_52 = arith.constant dense<0.000000e+00> : vector<1xf32>
    %271 = vector.multi_reduction <add>, %270, %cst_52 [1, 2] : vector<1x32x32xf32> to vector<1xf32>
    %272 = vector.shape_cast %271 : vector<1xf32> to vector<1x1x1xf32>
    %273 = vector.extract %272[0, 0, 0] : f32 from vector<1x1x1xf32>
    %274 = vector.extract_strided_slice %265 {offsets = [1, 0], sizes = [31, 32], strides = [1, 1]} : vector<32x32xf32> to vector<31x32xf32>
    %275 = vector.extract_strided_slice %265 {offsets = [0, 0], sizes = [31, 32], strides = [1, 1]} : vector<32x32xf32> to vector<31x32xf32>
    %276 = arith.subf %274, %275 : vector<31x32xf32>
    %277 = vector.extract_strided_slice %265 {offsets = [0, 1], sizes = [32, 31], strides = [1, 1]} : vector<32x32xf32> to vector<32x31xf32>
    %278 = vector.extract_strided_slice %265 {offsets = [0, 0], sizes = [32, 31], strides = [1, 1]} : vector<32x32xf32> to vector<32x31xf32>
    %279 = arith.subf %277, %278 : vector<32x31xf32>
    %280 = arith.mulf %276, %276 : vector<31x32xf32>
    %281 = vector.shape_cast %280 : vector<31x32xf32> to vector<1x31x32xf32>
    %cst_53 = arith.constant dense<0.000000e+00> : vector<1xf32>
    %282 = vector.multi_reduction <add>, %281, %cst_53 [1, 2] : vector<1x31x32xf32> to vector<1xf32>
    %283 = vector.shape_cast %282 : vector<1xf32> to vector<1x1x1xf32>
    %284 = vector.extract %283[0, 0, 0] : f32 from vector<1x1x1xf32>
    %285 = arith.mulf %279, %279 : vector<32x31xf32>
    %286 = vector.shape_cast %285 : vector<32x31xf32> to vector<1x32x31xf32>
    %cst_54 = arith.constant dense<0.000000e+00> : vector<1xf32>
    %287 = vector.multi_reduction <add>, %286, %cst_54 [1, 2] : vector<1x32x31xf32> to vector<1xf32>
    %288 = vector.shape_cast %287 : vector<1xf32> to vector<1x1x1xf32>
    %289 = vector.extract %288[0, 0, 0] : f32 from vector<1x1x1xf32>
    %c0_i32_55 = arith.constant 0 : i32
    %290 = vector.broadcast %c0_i32_55 : i32 to vector<1x128xi32>
    %291 = arith.cmpi eq, %63, %290 : vector<1x128xi32>
    %cst_56 = arith.constant 0.000000e+00 : f32
    %292 = vector.broadcast %263 : f32 to vector<1x128xf32>
    %293 = vector.broadcast %cst_56 : f32 to vector<1x128xf32>
    %294 = arith.select %291, %292, %293 : vector<1x128xi1>, vector<1x128xf32>
    %c1_i32_57 = arith.constant 1 : i32
    %295 = vector.broadcast %c1_i32_57 : i32 to vector<1x128xi32>
    %296 = arith.cmpi eq, %63, %295 : vector<1x128xi32>
    %cst_58 = arith.constant 0.000000e+00 : f32
    %297 = vector.broadcast %273 : f32 to vector<1x128xf32>
    %298 = vector.broadcast %cst_58 : f32 to vector<1x128xf32>
    %299 = arith.select %296, %297, %298 : vector<1x128xi1>, vector<1x128xf32>
    %300 = arith.addf %294, %299 : vector<1x128xf32>
    %c2_i32_59 = arith.constant 2 : i32
    %301 = vector.broadcast %c2_i32_59 : i32 to vector<1x128xi32>
    %302 = arith.cmpi eq, %63, %301 : vector<1x128xi32>
    %cst_60 = arith.constant 0.000000e+00 : f32
    %303 = vector.broadcast %284 : f32 to vector<1x128xf32>
    %304 = vector.broadcast %cst_60 : f32 to vector<1x128xf32>
    %305 = arith.select %302, %303, %304 : vector<1x128xi1>, vector<1x128xf32>
    %306 = arith.addf %300, %305 : vector<1x128xf32>
    %c3_i32_61 = arith.constant 3 : i32
    %307 = vector.broadcast %c3_i32_61 : i32 to vector<1x128xi32>
    %308 = arith.cmpi eq, %63, %307 : vector<1x128xi32>
    %cst_62 = arith.constant 0.000000e+00 : f32
    %309 = vector.broadcast %289 : f32 to vector<1x128xf32>
    %310 = vector.broadcast %cst_62 : f32 to vector<1x128xf32>
    %311 = arith.select %308, %309, %310 : vector<1x128xi1>, vector<1x128xf32>
    %312 = arith.addf %306, %311 : vector<1x128xf32>
    %313 = vector.extract_strided_slice %59 {offsets = [0, 1920], sizes = [22, 128], strides = [1, 1]} : vector<22x2560xf32> to vector<22x128xf32>
    %314 = vector.extract_strided_slice %59 {offsets = [0, 2048], sizes = [22, 128], strides = [1, 1]} : vector<22x2560xf32> to vector<22x128xf32>
    %315 = vector.extract_strided_slice %59 {offsets = [0, 2176], sizes = [22, 128], strides = [1, 1]} : vector<22x2560xf32> to vector<22x128xf32>
    %316 = vector.extract_strided_slice %59 {offsets = [0, 2304], sizes = [22, 128], strides = [1, 1]} : vector<22x2560xf32> to vector<22x128xf32>
    %317 = vector.extract_strided_slice %59 {offsets = [0, 2432], sizes = [22, 128], strides = [1, 1]} : vector<22x2560xf32> to vector<22x128xf32>
    %318 = arith.mulf %313, %313 : vector<22x128xf32>
    %319 = arith.mulf %314, %314 : vector<22x128xf32>
    %320 = arith.mulf %313, %314 : vector<22x128xf32>
    %321 = arith.subf %315, %318 : vector<22x128xf32>
    %322 = arith.subf %316, %319 : vector<22x128xf32>
    %323 = arith.subf %317, %320 : vector<22x128xf32>
    %cst_63 = arith.constant 2.000000e+00 : f32
    %324 = vector.broadcast %cst_63 : f32 to vector<22x128xf32>
    %325 = arith.mulf %324, %320 : vector<22x128xf32>
    %cst_64 = arith.constant 9.99999974E-5 : f32
    %326 = vector.broadcast %cst_64 : f32 to vector<22x128xf32>
    %327 = arith.addf %325, %326 : vector<22x128xf32>
    %cst_65 = arith.constant 2.000000e+00 : f32
    %328 = vector.broadcast %cst_65 : f32 to vector<22x128xf32>
    %329 = arith.mulf %328, %323 : vector<22x128xf32>
    %cst_66 = arith.constant 8.99999984E-4 : f32
    %330 = vector.broadcast %cst_66 : f32 to vector<22x128xf32>
    %331 = arith.addf %329, %330 : vector<22x128xf32>
    %332 = arith.mulf %327, %331 : vector<22x128xf32>
    %333 = arith.addf %318, %319 : vector<22x128xf32>
    %cst_67 = arith.constant 9.99999974E-5 : f32
    %334 = vector.broadcast %cst_67 : f32 to vector<22x128xf32>
    %335 = arith.addf %333, %334 : vector<22x128xf32>
    %336 = arith.addf %321, %322 : vector<22x128xf32>
    %cst_68 = arith.constant 8.99999984E-4 : f32
    %337 = vector.broadcast %cst_68 : f32 to vector<22x128xf32>
    %338 = arith.addf %336, %337 : vector<22x128xf32>
    %339 = arith.mulf %335, %338 : vector<22x128xf32>
    %340 = arith.divf %332, %339 : vector<22x128xf32>
    %cst_69 = arith.constant 0.000000e+00 : f32
    %341 = vector.broadcast %cst_69 : f32 to vector<22x128xf32>
    %342 = arith.select %62, %340, %341 : vector<22x128xi1>, vector<22x128xf32>
    %343 = vector.shape_cast %342 : vector<22x128xf32> to vector<1x22x128xf32>
    %cst_70 = arith.constant dense<0.000000e+00> : vector<1xf32>
    %344 = vector.multi_reduction <add>, %343, %cst_70 [1, 2] : vector<1x22x128xf32> to vector<1xf32>
    %345 = vector.shape_cast %344 : vector<1xf32> to vector<1x1x1xf32>
    %346 = vector.extract %345[0, 0, 0] : f32 from vector<1x1x1xf32>
    %347 = vector.extract_strided_slice %0 {offsets = [3, 0, 0], sizes = [1, 32, 32], strides = [1, 1, 1]} : vector<4x32x32xf32> to vector<1x32x32xf32>
    %348 = vector.shape_cast %347 : vector<1x32x32xf32> to vector<32x32xf32>
    %349 = vector.extract_strided_slice %1 {offsets = [3, 0, 0], sizes = [1, 32, 32], strides = [1, 1, 1]} : vector<4x32x32xf32> to vector<1x32x32xf32>
    %350 = vector.shape_cast %349 : vector<1x32x32xf32> to vector<32x32xf32>
    %351 = arith.subf %348, %350 : vector<32x32xf32>
    %352 = math.absf %351 : vector<32x32xf32>
    %353 = vector.shape_cast %352 : vector<32x32xf32> to vector<1x32x32xf32>
    %cst_71 = arith.constant dense<0.000000e+00> : vector<1xf32>
    %354 = vector.multi_reduction <add>, %353, %cst_71 [1, 2] : vector<1x32x32xf32> to vector<1xf32>
    %355 = vector.shape_cast %354 : vector<1xf32> to vector<1x1x1xf32>
    %356 = vector.extract %355[0, 0, 0] : f32 from vector<1x1x1xf32>
    %357 = vector.extract_strided_slice %348 {offsets = [1, 0], sizes = [31, 32], strides = [1, 1]} : vector<32x32xf32> to vector<31x32xf32>
    %358 = vector.extract_strided_slice %348 {offsets = [0, 0], sizes = [31, 32], strides = [1, 1]} : vector<32x32xf32> to vector<31x32xf32>
    %359 = arith.subf %357, %358 : vector<31x32xf32>
    %360 = vector.extract_strided_slice %348 {offsets = [0, 1], sizes = [32, 31], strides = [1, 1]} : vector<32x32xf32> to vector<32x31xf32>
    %361 = vector.extract_strided_slice %348 {offsets = [0, 0], sizes = [32, 31], strides = [1, 1]} : vector<32x32xf32> to vector<32x31xf32>
    %362 = arith.subf %360, %361 : vector<32x31xf32>
    %363 = arith.mulf %359, %359 : vector<31x32xf32>
    %364 = vector.shape_cast %363 : vector<31x32xf32> to vector<1x31x32xf32>
    %cst_72 = arith.constant dense<0.000000e+00> : vector<1xf32>
    %365 = vector.multi_reduction <add>, %364, %cst_72 [1, 2] : vector<1x31x32xf32> to vector<1xf32>
    %366 = vector.shape_cast %365 : vector<1xf32> to vector<1x1x1xf32>
    %367 = vector.extract %366[0, 0, 0] : f32 from vector<1x1x1xf32>
    %368 = arith.mulf %362, %362 : vector<32x31xf32>
    %369 = vector.shape_cast %368 : vector<32x31xf32> to vector<1x32x31xf32>
    %cst_73 = arith.constant dense<0.000000e+00> : vector<1xf32>
    %370 = vector.multi_reduction <add>, %369, %cst_73 [1, 2] : vector<1x32x31xf32> to vector<1xf32>
    %371 = vector.shape_cast %370 : vector<1xf32> to vector<1x1x1xf32>
    %372 = vector.extract %371[0, 0, 0] : f32 from vector<1x1x1xf32>
    %c0_i32_74 = arith.constant 0 : i32
    %373 = vector.broadcast %c0_i32_74 : i32 to vector<1x128xi32>
    %374 = arith.cmpi eq, %63, %373 : vector<1x128xi32>
    %cst_75 = arith.constant 0.000000e+00 : f32
    %375 = vector.broadcast %346 : f32 to vector<1x128xf32>
    %376 = vector.broadcast %cst_75 : f32 to vector<1x128xf32>
    %377 = arith.select %374, %375, %376 : vector<1x128xi1>, vector<1x128xf32>
    %c1_i32_76 = arith.constant 1 : i32
    %378 = vector.broadcast %c1_i32_76 : i32 to vector<1x128xi32>
    %379 = arith.cmpi eq, %63, %378 : vector<1x128xi32>
    %cst_77 = arith.constant 0.000000e+00 : f32
    %380 = vector.broadcast %356 : f32 to vector<1x128xf32>
    %381 = vector.broadcast %cst_77 : f32 to vector<1x128xf32>
    %382 = arith.select %379, %380, %381 : vector<1x128xi1>, vector<1x128xf32>
    %383 = arith.addf %377, %382 : vector<1x128xf32>
    %c2_i32_78 = arith.constant 2 : i32
    %384 = vector.broadcast %c2_i32_78 : i32 to vector<1x128xi32>
    %385 = arith.cmpi eq, %63, %384 : vector<1x128xi32>
    %cst_79 = arith.constant 0.000000e+00 : f32
    %386 = vector.broadcast %367 : f32 to vector<1x128xf32>
    %387 = vector.broadcast %cst_79 : f32 to vector<1x128xf32>
    %388 = arith.select %385, %386, %387 : vector<1x128xi1>, vector<1x128xf32>
    %389 = arith.addf %383, %388 : vector<1x128xf32>
    %c3_i32_80 = arith.constant 3 : i32
    %390 = vector.broadcast %c3_i32_80 : i32 to vector<1x128xi32>
    %391 = arith.cmpi eq, %63, %390 : vector<1x128xi32>
    %cst_81 = arith.constant 0.000000e+00 : f32
    %392 = vector.broadcast %372 : f32 to vector<1x128xf32>
    %393 = vector.broadcast %cst_81 : f32 to vector<1x128xf32>
    %394 = arith.select %391, %392, %393 : vector<1x128xi1>, vector<1x128xf32>
    %395 = arith.addf %389, %394 : vector<1x128xf32>
    %396 = tpu.concatenate %146, %229, %312, %395 in 0 : vector<1x128xf32>, vector<1x128xf32>, vector<1x128xf32>, vector<1x128xf32> -> vector<4x128xf32>
    %c0_82 = arith.constant 0 : index
    %c0_83 = arith.constant 0 : index
    %c0_84 = arith.constant 0 : index
    %397 = vector.load %arg5[%c0_82, %c0_83, %c0_84] : memref<1x4x128xf32, #tpu.memory_space<vmem>>, vector<1x4x128xf32>
    %398 = vector.shape_cast %397 : vector<1x4x128xf32> to vector<4x128xf32>
    %399 = vector.shape_cast %396 : vector<4x128xf32> to vector<1x4x128xf32>
    tpu.vector_store %arg5[%c0_82, %c0_83, %c0_84], %399 {strides = array<i32>} : memref<1x4x128xf32, #tpu.memory_space<vmem>>, vector<1x4x128xf32>,
    return
  }
  func.func @transform_0(%arg0: i32) -> (i32, i32, i32) {
    %c0_i32 = arith.constant 0 : i32
    %c0_i32_0 = arith.constant 0 : i32
    %c0_i32_1 = arith.constant 0 : i32
    return %arg0, %c0_i32, %c0_i32_0 : i32, i32, i32
  }
  func.func @transform_1(%arg0: i32) -> (i32, i32, i32) {
    %c0_i32 = arith.constant 0 : i32
    %c0_i32_0 = arith.constant 0 : i32
    %c0_i32_1 = arith.constant 0 : i32
    return %arg0, %c0_i32, %c0_i32_0 : i32, i32, i32
  }
  func.func @transform_2(%arg0: i32) -> (i32, i32) {
    %c0_i32 = arith.constant 0 : i32
    %c0_i32_0 = arith.constant 0 : i32
    %c0_i32_1 = arith.constant 0 : i32
    return %c0_i32, %c0_i32_0 : i32, i32
  }
  func.func @transform_3(%arg0: i32) -> (i32, i32) {
    %c0_i32 = arith.constant 0 : i32
    %c0_i32_0 = arith.constant 0 : i32
    %c0_i32_1 = arith.constant 0 : i32
    return %c0_i32, %c0_i32_0 : i32, i32
  }
  func.func @transform_4(%arg0: i32) -> (i32, i32, i32) {
    %c0_i32 = arith.constant 0 : i32
    %c0_i32_0 = arith.constant 0 : i32
    %c0_i32_1 = arith.constant 0 : i32
    return %arg0, %c0_i32, %c0_i32_0 : i32, i32, i32
  }
}

</mosaic_0001>

<bundles_post_ra>
// kernel: tpu_custom_call.1
= control target key start
LH: loop header
LB: loop body
LE: loop exit
PB: predicated region body
PF: predicated region fallthrough
CT: control target
= control target key end

     0   :  { %s4522_s0 = inlined_call_operand.hbm [shape: f32[8,32,32], index: 0, kind: input, shape index: {}]   ;;  %s4523_s1 = inlined_call_operand.hbm [shape: f32[8,32,32], index: 1, kind: input, shape index: {}]   ;;  %s4524_s2 = inlined_call_operand.hbm [shape: f32[22,32], index: 2, kind: input, shape index: {}]   ;;  %s4525_s3 = inlined_call_operand.hbm [shape: f32[32,128], index: 3, kind: input, shape index: {}]   ;;  %s4526_s4 = inlined_call_operand.hbm [shape: f32[2,4,128], index: 4, kind: output, shape index: {}]  }
   0x1   :  { %4534 = sst [smem:[#allocation30_spill]] %s4522_s0 }
   0x2   :  { %4535 = sst [smem:[#allocation31_spill]] %s4524_s2 }
   0x3   :  { %4536 = sst [smem:[#allocation32_spill]] %s4525_s3 }
   0x4   :  { %9 = vsyncpa [#allocation3], 0 }
   0x5   :  { %11 = vsyncpa [#allocation3 + $0x1], 0 }
   0x6   :  { %12 = vsyncpa [#allocation6], 0 }
   0x7   :  { %14 = vsyncpa [#allocation6 + $0x1], 0 }
   0x8   :  { %15 = vsyncpa [#allocation9], 0 }
   0x9   :  { %16 = vsyncpa [#allocation4], 0 }
   0xa   :  { %18 = vsyncpa [#allocation4 + $0x1], 0  ;;  %s3099_s15 = smov 0   ;;  %s3101_s16 = smov 0  }
   0xb   :  { %s3103_s17 = smov 0   ;;  %s3105_s18 = smov 0  }
   0xc LB: > { %s3120_s19 = sadd.s32 4294967295, %s3066_s18   ;;  %s2537_s20 = sadd.s32 4294967294, %s3066_s18   ;;  %s3066_s18 = sphi %s3105_s18, %s4599_s18   ;;  %s3062_s17 = sphi %s3103_s17, %s4598_s17   ;;  %s3058_s16 = sphi %s3101_s16, %s4597_s16   ;;  %s3054_s15 = sphi %s3099_s15, %s4596_s15  }
   0xd   : > { %p44_p0 = scmp.ne.s32.totalorder %s3058_s16, %s3054_s15  ;;  %p45_p1 = scmp.eq.s32.totalorder %s3120_s19, 0 }
   0xe   : > { %p136_p2 = scmp.eq.s32.totalorder %s3120_s19, 1  ;;  %p142_p3 = scmp.eq.s32.totalorder %s2537_s20, 1 }
   0xf   : > { %p3129_p4 = por %p45_p1, %p44_p0  ;;  %p2538_p5 = scmp.ge.s32.totalorder %s3066_s18, 1 }
  0x10   : > { %p3134_p6 = por %p142_p3, %p44_p0  ;;  %p149_p7 = scmp.lt.s32.totalorder %s3066_s18, 3 }
  0x11   : > { %s4539_s2 = sld [smem:[#allocation31_spill]]  ;;  %s3068_s27 = smov [#allocation7]  }
  0x12   : > { %p3142_p8 = pnand %p2538_p5, %p149_p7  ;;  %s162_s28 = sshll.u32 %s3068_s27, 4  ;;  %s163_s28 = int_to_ptr.vmem [resolvable:$true] %s162_s28 }
  0x13   : > { %s4541_s3 = sld [smem:[#allocation32_spill]]  ;;  %s4527_s6 = smov 128  }
  0x14   : > { %p2762_p9 = pneg %p3142_p8  ;;  %s4529_s7 = smov 8  }
  0x15   : > { %s3071_s8 = smov [#allocation8]   ;;  %s3161_s10 = sadd.s32 1, %s3066_s18  }
  0x16   : > { %p2763_p10 = pnand %p2762_p9, %p45_p1  ;;  %s176_s9 = sshll.u32 %s3071_s8, 4  ;;  %s177_s9 = int_to_ptr.vmem [resolvable:$true] %s176_s9 }
  0x17   : > { %s160_s25 = sshll.u32 %s4539_s2, 4  ;;  %s31_s11 = sadd.s32 1, %s3062_s17  ;;  %s161_s25 = int_to_ptr.hbm [resolvable:$true] %s160_s25 }
  0x18   : > { %2765 = dma.hbm_to_vmem [thread:$0]  (!%p2763_p10), %s161_s25, 384, %s163_s28, [#allocation6], %s4527_s6, %s4527_s6, %s4529_s7  }
  0x19   : > { %s174_s5 = sshll.u32 %s4541_s3, 4  ;;  %s28_s12 = ssub.s32 %s3066_s18, %s3161_s10  ;;  %s175_s5 = int_to_ptr.hbm [resolvable:$true] %s174_s5 }
  0x1a   : > { %2768 = dma.hbm_to_vmem [thread:$0]  (!%p2763_p10), %s175_s5, 512, %s177_s9, [#allocation9], %s4527_s6, %s4527_s6, %s4529_s7  }
  0x1b   : > { %p38_p12 = scmp.ne.s32.totalorder %s3062_s17, %s3058_s16  ;;  %p29_p13 = scmp.eq.s32.totalorder %s28_s12, 0 }
  0x1c   : > { %p39_p0 = scmp.eq.s32.totalorder %s3066_s18, 0  ;;  %p2782_p5 = scmp.lt.s32.totalorder %s3066_s18, 2 }
  0x1d   : > { %p3171_p3 = por %p136_p2, %p38_p12  ;;  %s190_s20 = sand.u32 1, %s3062_s17  }
  0x1e   : > { %s3177_s14 = scalar_select %p29_p13, %s3062_s17, %s31_s11  }
  0x1f   : > { %p40_p7 = por %p39_p0, %p38_p12  ;;  %s3180_s23 = sshll.u32 %s190_s20, 7 }
  0x20   : > { %s2701_s24 = sshll.u32 %s3066_s18, 7  ;;  %s4543_s0 = sld [smem:[#allocation30_spill]] }
  0x21   : > { %s194_s29 = scalar_lea.vmem [#allocation2], %s3180_s23  ;;  %p3187_p2 = pnand %p2782_p5, %p40_p7 }
  0x22   : > { %s203_s30 = sshll.u32 %s194_s29, 4  ;;  %s223_s12 = scalar_lea.hbm %s4523_s1, %s2701_s24  ;;  %s204_s30 = int_to_ptr.vmem [resolvable:$true] %s203_s30 }
  0x23   : > { %s224_s6 = sshll.u32 %s223_s12, 4  ;;  %s191_s7 = scalar_lea.sflag [#allocation3], %s190_s20  ;;  %s225_s6 = int_to_ptr.hbm [resolvable:$true] %s224_s6 }
  0x24   : > { %p2932_p10 = pneg %p3187_p2 }
  0x26   : > { %s200_s28 = scalar_lea.hbm %s4543_s0, %s2701_s24  ;;  %s2935_s29 = scalar_lea.hbm %s4543_s0, 256 }
  0x27   : > { %s201_s5 = sshll.u32 %s200_s28, 4  ;;  %s202_s5 = int_to_ptr.hbm [resolvable:$true] %s201_s5 }
  0x28   : > { %s2928_s2 = sshra.s32 %s202_s5, 4  ;;  %s2929_s2 = int_to_ptr.hbm [resolvable:$true] %s2928_s2 }
  0x29   : > { %s2930_s25 = scalar_lea.hbm %s2929_s2, 128  ;;  %p2936_p0 = scmp.lt.s32.totalorder %s2929_s2, %s4543_s0 }
  0x2a   : > { %p2931_p9 = scmp.ne.s32.totalorder %s2929_s2, %s2930_s25  ;;  %p2937_p5 = scmp.lt.s32.totalorder %s2935_s29, %s2930_s25 }
  0x2c   : > { %p2933_p12 = pnand %p2932_p10, %p2931_p9  ;;  %p2938_p7 = por %p2937_p5, %p2936_p0 }
  0x2e   : > { %p2934_p13 = pneg %p2933_p12 }
  0x30   : > { %p2939_p11 = pnand %p2938_p7, %p2934_p13 }
  0x32   : > { %2942 = shalt.err (!%p2939_p11)
}
  0x33   : > { %s4545_s20 = smov 8   ;;  %s4546_s24 = smov 128  }
  0x34   : > { %2772 = dma.hbm_to_vmem [thread:$0]  (!%p3187_p2), %s202_s5, 2048, %s204_s30, %s191_s7, %s4546_s24, %s4546_s24, %s4545_s20  }
  0x35   : > { %s217_s12 = scalar_lea.vmem [#allocation5], %s3180_s23  ;;  %s213_s28 = sand.u32 1, %s3066_s18  }
  0x36   : > { %s226_s27 = sshll.u32 %s217_s12, 4  ;;  %s214_s9 = scalar_lea.sflag [#allocation6], %s213_s28  ;;  %s227_s27 = int_to_ptr.vmem [resolvable:$true] %s226_s27 }
  0x37   : > { %s2958_s2 = sshra.s32 %s225_s6, 4  ;;  %s2965_s0 = scalar_lea.hbm %s4523_s1, 256  ;;  %s2959_s2 = int_to_ptr.hbm [resolvable:$true] %s2958_s2 }
  0x38   : > { %s2960_s25 = scalar_lea.hbm %s2959_s2, 128  ;;  %p2966_p13 = scmp.lt.s32.totalorder %s2959_s2, %s4523_s1 }
  0x39   : > { %p2961_p9 = scmp.ne.s32.totalorder %s2959_s2, %s2960_s25  ;;  %p2967_p0 = scmp.lt.s32.totalorder %s2965_s0, %s2960_s25 }
  0x3b   : > { %p2963_p11 = pnand %p2961_p9, %p2932_p10  ;;  %p2968_p5 = por %p2967_p0, %p2966_p13 }
  0x3d   : > { %p2964_p12 = pneg %p2963_p11 }
  0x3f   : > { %p2969_p7 = pnand %p2968_p5, %p2964_p12 }
  0x41   : > { %2972 = shalt.err (!%p2969_p7)
}
  0x42   : > { %2775 = dma.hbm_to_vmem [thread:$0]  (!%p3187_p2), %s225_s6, 2048, %s227_s27, %s214_s9, %s4546_s24, %s4546_s24, %s4545_s20  }
  0x43   : > { %238 = sbr.rel (%p3142_p8) target bundleno = 939 (0x3ab), region = 36 }
  0x48   : > { %s3229_s23 = sand.u32 1, %s3058_s16  }
  0x49   : > { %s2551_s3 = sshll.u32 %s3229_s23, 7  ;;  %s241_s0 = scalar_lea.sflag [#allocation3], %s3229_s23 }
  0x4a   : > { %s3233_s30 = scalar_lea.vmem [#allocation2], %s2551_s3 }
  0x4b   : > { %3033 = dma.done.wait (%p3129_p4), %s241_s0, 2048  }
  0x4c   : > { %3035 = vsyncadd (%p3129_p4), %s241_s0, 4294965248  ;;  %s250_s6 = sand.u32 1, %s3120_s19   ;;  %s3240_s5 = scalar_lea.vmem [#allocation5], %s2551_s3 }
  0x4d   : > { %s251_s26 = scalar_lea.sflag [#allocation6], %s250_s6 }
  0x4e   : > { %3037 = dma.done.wait (%p3129_p4), %s251_s26, 2048  }
  0x4f   : > { %3039 = vsyncadd (%p3129_p4), %s251_s26, 4294965248 }
  0x50   : > { %3041 = dma.done.wait (%p45_p1), [#allocation6], 384  }
  0x51   : > { %3043 = vsyncadd (%p45_p1), [#allocation6], 4294966912 }
  0x52   : > { %3045 = dma.done.wait (%p45_p1), [#allocation9], 512  }
  0x53   : > { %3047 = vsyncadd (%p45_p1), [#allocation9], 4294966784  ;;  %v335_v0 = vld [vmem:[#allocation8 + $0x18] sm:$0xff]  ;;  %v334_v1 = vld [vmem:[#allocation8 + $0x10] sm:$0xff]  ;;  %vm384_vm0 = vcmask 261120   ;;  %s3072_s21 = smov 1  }
  0x54   : > { %637 = vmatpush.msra.mxu0 %v335_v0  ;;  %2706 = vmatpush.msra.mxu3 %v335_v0  ;;  %v333_v2 = vld [vmem:[#allocation8 + $0x8] sm:$0xff]  ;;  %v332_v3 = vld [vmem:[#allocation8] sm:$0xff]  ;;  %v3260_v5 = vld [vmem:[%s3233_s30 + $0x10] sm:$0xff]  ;;  %vm1547_vm1 = vcmask 1040384   ;;  %vm1587_vm2 = vcmask 1046528   ;;  %vm1604_vm3 = vcmask 260096  }
  0x55   : > { %2704 = vmatpush.msra.mxu1 %v335_v0  ;;  %2705 = vmatpush.msra.mxu2 %v335_v0  ;;  %v3255_v4 = vld [vmem:[%s3233_s30] sm:$0xff]  ;;  %v3267_v6 = vld [vmem:[%s3233_s30 + $0x8] sm:$0xff]  ;;  %v3272_v7 = vld [vmem:[%s3233_s30 + $0x18] sm:$0xff]  ;;  %v338_v14 = vmul.f32 %v3260_v5, %v3260_v5  ;;  %v1551_v47 = vrot.slane %v3260_v5, 7  ;;  %s3073_s8 = smov 127   ;;  %vm1636_vm4 = vcmask 252928  }
  0x56   : > { %638 = vmatpush.msra.mxu0 %v334_v1  ;;  %2709 = vmatpush.msra.mxu3 %v334_v1  ;;  %v313_v8 = vld [vmem:[%s3240_s5] sm:$0xff]  ;;  %v3285_v9 = vld [vmem:[%s3240_s5 + $0x8] sm:$0xff]  ;;  %v3290_v10 = vld [vmem:[%s3240_s5 + $0x10] sm:$0xff]  ;;  %v336_v12 = vmul.f32 %v3255_v4, %v3255_v4  ;;  %v337_v13 = vmul.f32 %v3267_v6, %v3267_v6  ;;  %v339_v15 = vmul.f32 %v3272_v7, %v3272_v7  ;;  %v1548_v45 = vrot.slane %v3255_v4, 7  ;;  %s2555_s26 = sshll.u32 %s3229_s23, 2 }
  0x57   : > { %2707 = vmatpush.msra.mxu1 %v334_v1  ;;  %2708 = vmatpush.msra.mxu2 %v334_v1  ;;  %v3295_v11 = vld [vmem:[%s3240_s5 + $0x18] sm:$0xff]  ;;  %v3312_v16 = vld [vmem:[%s3233_s30 + $0x40] sm:$0xff]  ;;  %v340_v17 = vmul.f32 %v313_v8, %v313_v8  ;;  %v341_v19 = vmul.f32 %v3285_v9, %v3285_v9  ;;  %v342_v24 = vmul.f32 %v3290_v10, %v3290_v10  ;;  %v3353_v28 = vld [vmem:[%s3240_s5 + $0x68] sm:$0xff]  ;;  %v1549_v46 = vrot.slane %v3267_v6, 7 }
  0x58   : > { %639 = vmatpush.msra.mxu0 %v333_v2  ;;  %2712 = vmatpush.msra.mxu3 %v333_v2  ;;  %v3318_v18 = vld [vmem:[%s3233_s30 + $0x78] sm:$0xff]  ;;  %v3331_v22 = vld [vmem:[%s3233_s30 + $0x60] sm:$0xff]  ;;  %v3361_v29 = vld [vmem:[%s3233_s30 + $0x48] sm:$0xff]  ;;  %v343_v31 = vmul.f32 %v3295_v11, %v3295_v11  ;;  %v1523_v32 = vsub.f32 %v3255_v4, %v313_v8  ;;  %v1524_v33 = vsub.f32 %v3267_v6, %v3285_v9  ;;  %v1553_v61 = vrot.slane %v3272_v7, 7 }
  0x59   : > { %2710 = vmatpush.msra.mxu1 %v333_v2  ;;  %2711 = vmatpush.msra.mxu2 %v333_v2  ;;  %v3325_v20 = vld [vmem:[%s3240_s5 + $0x38] sm:$0xff]  ;;  %v3334_v23 = vld [vmem:[%s3240_s5 + $0x60] sm:$0xff]  ;;  %v361_v30 = vmul.f32 %v3361_v29, %v3361_v29  ;;  %v3372_v34 = vld [vmem:[%s3233_s30 + $0x28] sm:$0xff]  ;;  %v344_v42 = vmul.f32 %v313_v8, %v3255_v4  ;;  %v1525_v44 = vsub.f32 %v3260_v5, %v3290_v10 }
  0x5a   : > { %640 = vmatpush.msra.mxu0 %v332_v3  ;;  %2715 = vmatpush.msra.mxu3 %v332_v3  ;;  %v355_v21 = vmul.f32 %v3325_v20, %v3325_v20  ;;  %v3344_v25 = vld [vmem:[%s3233_s30 + $0x20] sm:$0xff]  ;;  %v3375_v35 = vld [vmem:[%s3240_s5 + $0x28] sm:$0xff]  ;;  %v3384_v37 = vld [vmem:[%s3240_s5 + $0x70] sm:$0xff]  ;;  %v1527_v39 = vand.u32 2147483647, %v1523_v32  ;;  %v1526_v50 = vsub.f32 %v3272_v7, %v3295_v11  ;;  %v1550_v57 = vsel %vm1547_vm1, %v1548_v45, %v1549_v46 }
  0x5b   : > { %2556 = vmatmul.msk.f32.vlgmr.msra.gmra.mxu0 %vm384_vm0, %v3255_v4  ;;  %2713 = vmatpush.msra.mxu1 %v332_v3  ;;  %v3347_v26 = vld [vmem:[%s3240_s5 + $0x20] sm:$0xff]  ;;  %v357_v36 = vmul.f32 %v3375_v35, %v3372_v34  ;;  %v3387_v38 = vld [vmem:[%s3233_s30 + $0x50] sm:$0xff]  ;;  %v1528_v40 = vand.u32 2147483647, %v1524_v33  ;;  %v1529_v51 = vand.u32 2147483647, %v1525_v44  ;;  %v1552_v58 = vsel %vm1547_vm1, %v1549_v46, %v1551_v47 }
  0x5c   : > { %2714 = vmatpush.msra.mxu2 %v332_v3  ;;  %1563 = vrot.lane.b32.xlu1 %v3255_v4, %s3072_s21  ;;  %v356_v27 = vmul.f32 %v3347_v26, %v3344_v25  ;;  %v362_v41 = vmul.f32 %v3387_v38, %v3387_v38  ;;  %v3403_v48 = vld [vmem:[%s3233_s30 + $0x30] sm:$0xff]  ;;  %v1531_v52 = vsel %vm384_vm0, %v1527_v39, 0.0  ;;  %v3416_v55 = vld [vmem:[%s3240_s5 + $0x78] sm:$0xff]  ;;  %v1530_v59 = vand.u32 2147483647, %v1526_v50 }
  0x5d   : > { %1567 = vrot.lane.b32.xlu2 %v3260_v5, %s3072_s21  ;;  %2060 = vrot.lane.b32.xlu0 %v3312_v16, %s3072_s21  ;;  %v3406_v49 = vld [vmem:[%s3240_s5 + $0x30] sm:$0xff]  ;;  %v1532_v53 = vsel %vm384_vm0, %v1528_v40, 0.0  ;;  %v1534_v60 = vsel %vm384_vm0, %v1529_v51, 0.0  ;;  %v1559_v62 = vsub.f32 %v3255_v4, %v1548_v45  ;;  %v345_v63 = vmul.f32 %v3285_v9, %v3267_v6  ;;  %v3429_v0 = vld [vmem:[%s3233_s30 + $0x58] sm:$0xff] }
  0x5e   : > { %2619 = vmatmul.msk.f32.vlgmr.msra.gmra.mxu3 %vm384_vm0, %v3318_v18  ;;  %2591 = vmatmul.msk.f32.vlgmr.msra.gmra.mxu1 %vm384_vm0, %v355_v21  ;;  %v358_v54 = vmul.f32 %v3406_v49, %v3403_v48  ;;  %v1533_v56 = vadd.f32 %v1532_v53, %v1531_v52  ;;  %v1560_v2 = vsub.f32 %v3267_v6, %v1550_v57  ;;  %v3442_v32 = vld [vmem:[%s3233_s30 + $0x38] sm:$0xff]  ;;  %v321_v45 = vld [vmem:[%s3240_s5 + $0x40] sm:$0xff] }
  0x5f   : > { %2605 = vmatmul.msk.f32.vlgmr.msra.gmra.mxu2 %vm384_vm0, %v361_v30  ;;  %v1561_v3 = vsub.f32 %v3260_v5, %v1552_v58  ;;  %v359_v33 = vmul.f32 %v3325_v20, %v3442_v32  ;;  %v346_v51 = vmul.f32 %v3290_v10, %v3260_v5 }
  0x60   : > { %v1535_v1 = vadd.f32 %v1534_v60, %v1533_v56  ;;  %v3464_v56 = vld [vmem:[%s3233_s30 + $0x68] sm:$0xff] }
  0x63   : > { %2557 = vmatmul.msk.f32.gmra.mxu0 %vm384_vm0, %v3267_v6 }
  0x64   : > { %1565 = vrot.lane.b32.xlu1 %v3267_v6, %s3072_s21 }
  0x65   : > { %1569 = vrot.lane.b32.xlu2 %v3272_v7, %s3072_s21 }
  0x66   : > { %2620 = vmatmul.msk.f32.gmra.mxu3 %vm384_vm0, %v3334_v23  ;;  %2592 = vmatmul.msk.f32.gmra.mxu1 %vm384_vm0, %v356_v27 }
  0x67   : > { %2606 = vmatmul.msk.f32.gmra.mxu2 %vm384_vm0, %v362_v41 }
  0x6b   : > { %2558 = vmatmul.msk.f32.gmra.mxu0 %vm384_vm0, %v3260_v5 }
  0x6c   : > { %1815 = vrot.lane.b32.xlu1 %v3344_v25, %s3072_s21 }
  0x6d   : > { %2305 = vrot.lane.b32.xlu2 %v3331_v22, %s3072_s21 }
  0x6e   : > { %2621 = vmatmul.msk.f32.gmra.mxu3 %vm384_vm0, %v3353_v28  ;;  %2593 = vmatmul.msk.f32.gmra.mxu1 %vm384_vm0, %v357_v36  ;;  %v372_v36 = vmul.f32 %v3331_v22, %v3331_v22 }
  0x73   : > { %2559 = vmatmul.msk.f32.gmra.mxu0 %vm384_vm0, %v3272_v7 }
  0x74   : > { %1817 = vrot.lane.b32.xlu1 %v3372_v34, %s3072_s21 }
  0x76   : > { %2622 = vmatmul.msk.f32.gmra.mxu3 %vm384_vm0, %v3384_v37  ;;  %2594 = vmatmul.msk.f32.gmra.mxu1 %vm384_vm0, %v358_v54 }
  0x7b   : > { %2560 = vmatmul.msk.f32.gmra.mxu0 %vm384_vm0, %v313_v8  ;;  %v363_v8 = vmul.f32 %v3429_v0, %v3429_v0 }
  0x7c   : > { %2062 = vrot.lane.b32.xlu1 %v3361_v29, %s3072_s21 }
  0x7d   : > { %2607 = vmatmul.msk.f32.gmra.mxu2 %vm384_vm0, %v363_v8  ;;  %v375_v8 = vmul.f32 %v3318_v18, %v3318_v18 }
  0x7e   : > { %2623 = vmatmul.msk.f32.gmra.mxu3 %vm384_vm0, %v3416_v55  ;;  %2595 = vmatmul.msk.f32.gmra.mxu1 %vm384_vm0, %v359_v33 }
  0x83   : > { %2561 = vmatmul.msk.f32.gmra.mxu0 %vm384_vm0, %v3285_v9  ;;  %v1554_v9 = vsel %vm1547_vm1, %v1551_v47, %v1553_v61  ;;  %v364_v47 = vmul.f32 %v321_v45, %v321_v45  ;;  %v347_v61 = vmul.f32 %v3295_v11, %v3272_v7 }
  0x84   : > { %2064 = vrot.lane.b32.xlu1 %v3387_v38, %s3072_s21 }
  0x85   : > { %2608 = vmatmul.msk.f32.gmra.mxu2 %vm384_vm0, %v364_v47  ;;  %v3575_v47 = vld [vmem:[#allocation7 + $0x8] sm:$0xff] }
  0x86   : > { %2624 = vmatmul.msk.f32.gmra.mxu3 %vm384_vm0, %v372_v36  ;;  %2596 = vmatmul.msk.f32.gmra.mxu1 %vm384_vm0, %v3312_v16 }
  0x8b   : > { %2562 = vmatmul.msk.f32.gmra.mxu0 %vm384_vm0, %v3290_v10  ;;  %v322_v10 = vld [vmem:[%s3240_s5 + $0x48] sm:$0xff] }
  0x8c   : > { %2066 = vrot.lane.b32.xlu1 %v3429_v0, %s3072_s21  ;;  %v365_v60 = vmul.f32 %v322_v10, %v322_v10 }
  0x8e   : > { %2609 = vmatmul.msk.f32.gmra.mxu2 %vm384_vm0, %v365_v60  ;;  %2597 = vmatmul.msk.f32.gmra.mxu1 %vm384_vm0, %v3361_v29 }
  0x93   : > { %2563 = vmatmul.msk.f32.gmra.mxu0 %vm384_vm0, %v3295_v11 }
  0x96   : > { %2598 = vmatmul.msk.f32.gmra.mxu1 %vm384_vm0, %v3387_v38 }
  0x9b   : > { %2564 = vmatmul.msk.f32.gmra.mxu0 %vm384_vm0, %v336_v12  ;;  %v1536_v12 = vsel %vm384_vm0, %v1530_v59, 0.0  ;;  %v373_v59 = vmul.f32 %v3464_v56, %v3464_v56 }
  0x9d   : > { %2625 = vmatmul.msk.f32.gmra.mxu3 %vm384_vm0, %v373_v59  ;;  %v350_v59 = vmul.f32 %v3403_v48, %v3403_v48 }
  0x9e   : > { %2599 = vmatmul.msk.f32.gmra.mxu1 %vm384_vm0, %v3429_v0 }
  0xa3   : > { %2565 = vmatmul.msk.f32.gmra.mxu0 %vm384_vm0, %v337_v13  ;;  %v1579_v13 = vmul.f32 %v1559_v62, %v1559_v62 }
  0xa6   : > { %2600 = vmatmul.msk.f32.gmra.mxu1 %vm384_vm0, %v321_v45 }
  0xab   : > { %2566 = vmatmul.msk.f32.gmra.mxu0 %vm384_vm0, %v338_v14  ;;  %v1537_v14 = vadd.f32 %v1536_v12, %v1535_v1  ;;  %v324_v12 = vld [vmem:[%s3240_s5 + $0x58] sm:$0xff] }
  0xac   : > { %v371_v33 = vmul.f32 %v324_v12, %v3429_v0 }
  0xad   : > { %1538 = vadd.xlane.f32.xlu0 %v1537_v14  ;;  %v368_v14 = vmul.f32 %v321_v45, %v3312_v16 }
  0xae   : > { %2601 = vmatmul.msk.f32.gmra.mxu1 %vm384_vm0, %v322_v10 }
  0xb3   : > { %2567 = vmatmul.msk.f32.gmra.mxu0 %vm384_vm0, %v339_v15  ;;  %v1562_v15 = vsub.f32 %v3272_v7, %v1554_v9  ;;  %v367_v9 = vmul.f32 %v324_v12, %v324_v12 }
  0xb5   : > { %v1582_v27 = vmul.f32 %v1562_v15, %v1562_v15 }
  0xb7   : > { %v1593_v41 = vrot.slane %v1582_v27, 1 }
  0xb9   : > { %v1605_v53 = vsel %vm1604_vm3, %v1593_v41, 0.0 }
  0xbb   : > { %2568 = vmatmul.msk.f32.gmra.mxu0 %vm384_vm0, %v340_v17  ;;  %v1580_v17 = vmul.f32 %v1560_v2, %v1560_v2  ;;  %v323_v2 = vld [vmem:[%s3240_s5 + $0x50] sm:$0xff] }
  0xbc   : > { %v366_v11 = vmul.f32 %v323_v2, %v323_v2  ;;  %v370_v27 = vmul.f32 %v323_v2, %v3387_v38  ;;  %2602 = vmatmul.msk.f32.gmra.mxu1 %vm384_vm0, %v323_v2  ;;  %v351_v2 = vmul.f32 %v3442_v32, %v3442_v32 }
  0xbd   : > { %v1589_v30 = vrot.slane %v1580_v17, 1  ;;  %v377_v17 = vmul.f32 %v3353_v28, %v3353_v28 }
  0xbe   : > { %2610 = vmatmul.msk.f32.gmra.mxu2 %vm384_vm0, %v366_v11 }
  0xc3   : > { %2569 = vmatmul.msk.f32.gmra.mxu0 %vm384_vm0, %v341_v19  ;;  %v1581_v19 = vmul.f32 %v1561_v3, %v1561_v3 }
  0xc4   : > { %2603 = vmatmul.msk.f32.gmra.mxu1 %vm384_vm0, %v324_v12  ;;  %v1568_v12 = vpop.permute.xlu2 %1567 }
  0xc6   : > { %2611 = vmatmul.msk.f32.gmra.mxu2 %vm384_vm0, %v367_v9  ;;  %v1577_v9 = vsub.f32 %v3260_v5, %v1568_v12 }
  0xcb   : > { %2570 = vmatmul.msk.f32.gmra.mxu0 %vm384_vm0, %v342_v24  ;;  %v1588_v24 = vrot.slane %v1579_v13, 1 }
  0xcd   : > { %v1590_v39 = vsel %vm1587_vm2, %v1588_v24, %v1589_v30  ;;  %v378_v24 = vmul.f32 %v3384_v37, %v3384_v37 }
  0xce   : > { %2612 = vmatmul.msk.f32.gmra.mxu2 %vm384_vm0, %v368_v14  ;;  %v1618_v14 = vmul.f32 %v1577_v9, %v1577_v9 }
  0xd3   : > { %2571 = vmatmul.msk.f32.gmra.mxu0 %vm384_vm0, %v343_v31  ;;  %v1591_v31 = vrot.slane %v1581_v19, 1  ;;  %v369_v19 = vmul.f32 %v322_v10, %v3361_v29 }
  0xd5   : > { %v1592_v40 = vsel %vm1587_vm2, %v1589_v30, %v1591_v31  ;;  %v1594_v50 = vsel %vm1587_vm2, %v1591_v31, %v1593_v41  ;;  %v379_v31 = vmul.f32 %v3416_v55, %v3416_v55  ;;  %v360_v41 = vmul.f32 %v3312_v16, %v3312_v16 }
  0xd6   : > { %v1600_v44 = vsel %vm384_vm0, %v1592_v40, 0.0  ;;  %v1602_v52 = vsel %vm384_vm0, %v1594_v50, 0.0  ;;  %2613 = vmatmul.msk.f32.gmra.mxu2 %vm384_vm0, %v369_v19  ;;  %v349_v50 = vmul.f32 %v3372_v34, %v3372_v34 }
  0xd7   : > { %2604 = vmatmul.msk.f32.gmra.mxu1 %vm384_vm0, %v360_v41 }
  0xd8   : > { %v3394_v43 = vpop.f32.mrf.mxu0 }
  0xdb   : > { %2572 = vmatmul.msk.f32.gmra.mxu0 %vm384_vm0, %v344_v42  ;;  %v1599_v42 = vsel %vm384_vm0, %v1590_v39, 0.0  ;;  %v380_v39 = vmul.f32 %v3334_v23, %v3331_v22 }
  0xdc   : > { %v1601_v46 = vadd.f32 %v1600_v44, %v1599_v42  ;;  %v381_v42 = vmul.f32 %v3353_v28, %v3464_v56  ;;  %v3563_v44 = vld [vmem:[#allocation7] sm:$0xff]  ;;  %v348_v28 = vmul.f32 %v3344_v25, %v3344_v25 }
  0xde   : > { %v1603_v57 = vadd.f32 %v1602_v52, %v1601_v46  ;;  %2614 = vmatmul.msk.f32.gmra.mxu2 %vm384_vm0, %v370_v27 }
  0xe0   : > { %v645_v21 = vpop.f32.mrf.mxu0  ;;  %v1606_v58 = vadd.f32 %v1605_v53, %v1603_v57  ;;  %v3588_v53 = vpop.f32.mrf.mxu1 }
  0xe1   : > { %v3586_v52 = vpop.f32.mrf.mxu3 }
  0xe2   : > { %1607 = vadd.xlane.f32.xlu0 %v1606_v58 }
  0xe3   : > { %2573 = vmatmul.msk.f32.gmra.mxu0 %vm384_vm0, %v345_v63  ;;  %v3481_v63 = vld [vmem:[%s3233_s30 + $0x70] sm:$0xff] }
  0xe4   : > { %v374_v1 = vmul.f32 %v3481_v63, %v3481_v63  ;;  %2309 = vrot.lane.b32.xlu1 %v3481_v63, %s3072_s21  ;;  %v382_v45 = vmul.f32 %v3384_v37, %v3481_v63  ;;  %v383_v37 = vmul.f32 %v3416_v55, %v3318_v18  ;;  %v1564_v55 = vpop.permute.xlu1 %1563 }
  0xe5   : > { %v1575_v57 = vsub.f32 %v3255_v4, %v1564_v55 }
  0xe6   : > { %2626 = vmatmul.msk.f32.gmra.mxu3 %vm384_vm0, %v374_v1  ;;  %2615 = vmatmul.msk.f32.gmra.mxu2 %vm384_vm0, %v371_v33 }
  0xe7   : > { %v1616_v58 = vmul.f32 %v1575_v57, %v1575_v57 }
  0xe8   : > { %v648_v54 = vpop.f32.mrf.mxu0  ;;  %v3605_v4 = vpop.f32.mrf.mxu1 }
  0xe9   : > { %v3602_v60 = vpop.f32.mrf.mxu3 }
  0xeb   : > { %2574 = vmatmul.msk.f32.gmra.mxu0 %vm384_vm0, %v346_v51 }
  0xec   : > { %1624 = vrot.lane.b32.xlu1 %v1616_v58, %s3073_s8 }
  0xee   : > { %2627 = vmatmul.msk.f32.gmra.mxu3 %vm384_vm0, %v375_v8  ;;  %2616 = vmatmul.msk.f32.gmra.mxu2 %vm384_vm0, %v3331_v22 }
  0xf0   : > { %v651_v62 = vpop.f32.mrf.mxu0  ;;  %v3618_v8 = vpop.f32.mrf.mxu1 }
  0xf1   : > { %903 = vmatpush.msrb.mxu1 %v651_v62 }
  0xf3   : > { %2575 = vmatmul.msk.f32.gmra.mxu0 %vm384_vm0, %v347_v61  ;;  %904 = vmatpush.msrb.mxu1 %v648_v54  ;;  %v3591_v54 = vld [vmem:[#allocation7 + $0x10] sm:$0x3f]  ;;  %v1566_v61 = vpop.permute.xlu1 %1565 }
  0xf4   : > { %v1576_v62 = vsub.f32 %v3267_v6, %v1566_v61  ;;  %v3621_v6 = vpop.f32.mrf.mxu2 }
  0xf5   : > { %905 = vmatpush.msrb.mxu1 %v645_v21 }
  0xf6   : > { %1819 = vrot.lane.b32.xlu0 %v3403_v48, %s3072_s21  ;;  %2617 = vmatmul.msk.f32.gmra.mxu2 %vm384_vm0, %v3464_v56  ;;  %v1617_v1 = vmul.f32 %v1576_v62, %v1576_v62 }
  0xf7   : > { %906 = vmatpush.msrb.mxu1 %v3394_v43  ;;  %v376_v43 = vmul.f32 %v3334_v23, %v3334_v23 }
  0xf8   : > { %v654_v3 = vpop.f32.mrf.mxu0  ;;  %2636 = vmatmul.msk.f32.vlgmr.msrb.gmra.mxu1 %vm384_vm0, %v3563_v44  ;;  %1626 = vrot.lane.b32.xlu2 %v1617_v1, %s3073_s8  ;;  %v3633_v5 = vpop.f32.mrf.mxu1 }
  0xf9   : > { %2628 = vmatmul.msk.f32.gmra.mxu3 %vm384_vm0, %v376_v43 }
  0xfb   : > { %2576 = vmatmul.msk.f32.gmra.mxu0 %vm384_vm0, %v3344_v25  ;;  %v1816_v43 = vpop.permute.xlu1 %1815 }
  0xfc   : > { %v1827_v41 = vsub.f32 %v3344_v25, %v1816_v43 }
  0xfe   : > { %1821 = vrot.lane.b32.xlu0 %v3442_v32, %s3072_s21  ;;  %2618 = vmatmul.msk.f32.gmra.mxu2 %vm384_vm0, %v3481_v63 }
 0x100   : > { %v657_v13 = vpop.f32.mrf.mxu0  ;;  %2637 = vmatmul.msk.f32.gmra.mxu1 %vm384_vm0, %v3575_v47 }
 0x101   : > { %2629 = vmatmul.msk.f32.gmra.mxu3 %vm384_vm0, %v377_v17 }
 0x103   : > { %2577 = vmatmul.msk.f32.gmra.mxu0 %vm384_vm0, %v3372_v34 }
 0x106   : > { %2307 = vrot.lane.b32.xlu0 %v3464_v56, %s3072_s21 }
 0x108   : > { %v660_v15 = vpop.f32.mrf.mxu0  ;;  %2638 = vmatmul.msk.f32.gmra.mxu1 %vm384_vm0, %v3591_v54 }
 0x109   : > { %2630 = vmatmul.msk.f32.gmra.mxu3 %vm384_vm0, %v378_v24  ;;  %v1570_v24 = vpop.permute.xlu2 %1569 }
 0x10a   : > { %v1578_v27 = vsub.f32 %v3272_v7, %v1570_v24  ;;  %v3650_v7 = vpop.f32.mrf.mxu1 }
 0x10b   : > { %2578 = vmatmul.msk.f32.gmra.mxu0 %vm384_vm0, %v3403_v48 }
 0x10e   : > { %2311 = vrot.lane.b32.xlu0 %v3318_v18, %s3072_s21 }
 0x110   : > { %v663_v21 = vpop.f32.mrf.mxu0 }
 0x111   : > { %929 = vmatpush.msrb.mxu2 %v663_v21  ;;  %2631 = vmatmul.msk.f32.gmra.mxu3 %vm384_vm0, %v379_v31  ;;  %v3636_v21 = vpop.f32.mrf.mxu2  ;;  %v1619_v31 = vmul.f32 %v1578_v27, %v1578_v27 }
 0x113   : > { %2579 = vmatmul.msk.f32.gmra.mxu0 %vm384_vm0, %v3442_v32  ;;  %930 = vmatpush.msrb.mxu2 %v660_v15  ;;  %v352_v15 = vmul.f32 %v3347_v26, %v3347_v26 }
 0x114   : > { %1630 = vrot.lane.b32.xlu1 %v1619_v31, %s3073_s8 }
 0x115   : > { %931 = vmatpush.msrb.mxu2 %v657_v13  ;;  %v2061_v13 = vpop.permute.xlu0 %2060 }
 0x116   : > { %1628 = vrot.lane.b32.xlu0 %v1618_v14, %s3073_s8  ;;  %v2072_v55 = vsub.f32 %v3312_v16, %v2061_v13 }
 0x117   : > { %932 = vmatpush.msrb.mxu2 %v654_v3  ;;  %v3615_v3 = vpop.f32.mrf.mxu3 }
 0x118   : > { %v666_v30 = vpop.f32.mrf.mxu0  ;;  %2639 = vmatmul.msk.f32.vlgmr.msrb.gmra.mxu2 %vm384_vm0, %v3563_v44  ;;  %v2111_v62 = vmul.f32 %v2072_v55, %v2072_v55 }
 0x119   : > { %2632 = vmatmul.msk.f32.gmra.mxu3 %vm384_vm0, %v380_v39  ;;  %v353_v39 = vmul.f32 %v3375_v35, %v3375_v35 }
 0x11b   : > { %2580 = vmatmul.msk.f32.gmra.mxu0 %vm384_vm0, %v3347_v26 }
 0x11f   : > { %v3630_v19 = vpop.f32.mrf.mxu3 }
 0x120   : > { %v669_v36 = vpop.f32.mrf.mxu0  ;;  %2640 = vmatmul.msk.f32.gmra.mxu2 %vm384_vm0, %v3575_v47 }
 0x121   : > { %2633 = vmatmul.msk.f32.gmra.mxu3 %vm384_vm0, %v381_v42 }
 0x123   : > { %2581 = vmatmul.msk.f32.gmra.mxu0 %vm384_vm0, %v3375_v35 }
 0x128   : > { %v672_v40 = vpop.f32.mrf.mxu0  ;;  %2641 = vmatmul.msk.f32.gmra.mxu2 %vm384_vm0, %v3591_v54 }
 0x129   : > { %2634 = vmatmul.msk.f32.gmra.mxu3 %vm384_vm0, %v382_v45  ;;  %v3654_v45 = vpop.f32.mrf.mxu2 }
 0x12b   : > { %2582 = vmatmul.msk.f32.gmra.mxu0 %vm384_vm0, %v3406_v49 }
 0x130   : > { %v675_v23 = vpop.f32.mrf.mxu0 }
 0x131   : > { %955 = vmatpush.msrb.mxu3 %v675_v23  ;;  %v3648_v23 = vpop.f32.mrf.mxu3  ;;  %v3671_v61 = vpop.f32.mrf.mxu2 }
 0x132   : > { %2635 = vmatmul.msk.f32.gmra.mxu3 %vm384_vm0, %v383_v37 }
 0x133   : > { %2583 = vmatmul.msk.f32.gmra.mxu0 %vm384_vm0, %v3325_v20  ;;  %956 = vmatpush.msrb.mxu3 %v672_v40 }
 0x135   : > { %957 = vmatpush.msrb.mxu3 %v669_v36  ;;  %v3640_v36 = vpop.xlane.xlu0 %1538 }
 0x136   : > { %4547 = vst [vmem:[#allocation16_spill] sm:$0xff] %v3640_v36 }
 0x137   : > { %958 = vmatpush.msrb.mxu3 %v666_v30  ;;  %v1818_v30 = vpop.permute.xlu1 %1817 }
 0x138   : > { %v678_v46 = vpop.f32.mrf.mxu0  ;;  %v1828_v33 = vsub.f32 %v3372_v34, %v1818_v30 }
 0x139   : > { %v3680_v14 = vpop.f32.mrf.mxu2 }
 0x13a   : > { %2642 = vmatmul.msk.f32.vlgmr.msrb.gmra.mxu3 %vm384_vm0, %v3563_v44  ;;  %v1867_v42 = vmul.f32 %v1828_v33, %v1828_v33 }
 0x13b   : > { %2584 = vmatmul.msk.f32.gmra.mxu0 %vm384_vm0, %v348_v28  ;;  %v1866_v28 = vmul.f32 %v1827_v41, %v1827_v41 }
 0x13c   : > { %1876 = vrot.lane.b32.xlu0 %v1867_v42, %s3073_s8 }
 0x13d   : > { %1874 = vrot.lane.b32.xlu1 %v1866_v28, %s3073_s8 }
 0x140   : > { %v681_v51 = vpop.f32.mrf.mxu0 }
 0x141   : > { %v3691_v42 = vpop.f32.mrf.mxu2 }
 0x142   : > { %2643 = vmatmul.msk.f32.gmra.mxu3 %vm384_vm0, %v3575_v47 }
 0x143   : > { %2585 = vmatmul.msk.f32.gmra.mxu0 %vm384_vm0, %v349_v50  ;;  %v354_v50 = vmul.f32 %v3406_v49, %v3406_v49 }
 0x145   : > { %2119 = vrot.lane.b32.xlu1 %v2111_v62, %s3073_s8 }
 0x148   : > { %v684_v10 = vpop.f32.mrf.mxu0 }
 0x14a   : > { %2644 = vmatmul.msk.f32.gmra.mxu3 %vm384_vm0, %v3591_v54 }
 0x14b   : > { %2586 = vmatmul.msk.f32.gmra.mxu0 %vm384_vm0, %v350_v59  ;;  %v3665_v59 = vpop.f32.mrf.mxu3 }
 0x14c   : > { %4549 = vst [vmem:[#allocation18_spill] sm:$0xff] %v3665_v59 }
 0x150   : > { %v687_v11 = vpop.f32.mrf.mxu0 }
 0x151   : > { %981 = vmatpush.msra.mxu1 %v687_v11 }
 0x153   : > { %2587 = vmatmul.msk.f32.gmra.mxu0 %vm384_vm0, %v351_v2  ;;  %982 = vmatpush.msra.mxu1 %v684_v10  ;;  %v3667_v10 = vpop.f32.mrf.mxu1  ;;  %v3675_v12 = vpop.f32.mrf.mxu3 }
 0x154   : > { %4550 = vst [vmem:[#allocation19_spill] sm:$0xff] %v3675_v12 }
 0x155   : > { %983 = vmatpush.msra.mxu1 %v681_v51  ;;  %v3662_v58 = vpop.xlane.xlu0 %1607 }
 0x156   : > { %4548 = vst [vmem:[#allocation17_spill] sm:$0xff] %v3662_v58 }
 0x157   : > { %984 = vmatpush.msra.mxu1 %v678_v46  ;;  %v2063_v46 = vpop.permute.xlu1 %2062 }
 0x158   : > { %v690_v17 = vpop.f32.mrf.mxu0  ;;  %2645 = vmatmul.msk.f32.vlgmr.msra.gmra.mxu1 %vm384_vm0, %v3563_v44  ;;  %v2073_v37 = vsub.f32 %v3361_v29, %v2063_v46  ;;  %v3700_v46 = vpop.f32.mrf.mxu2 }
 0x15a   : > { %v2112_v57 = vmul.f32 %v2073_v37, %v2073_v37 }
 0x15b   : > { %2588 = vmatmul.msk.f32.gmra.mxu0 %vm384_vm0, %v352_v15  ;;  %v3678_v43 = vpop.f32.mrf.mxu1 }
 0x15c   : > { %2121 = vrot.lane.b32.xlu2 %v2112_v57, %s3073_s8 }
 0x15f   : > { %v2065_v1 = vpop.permute.xlu1 %2064 }
 0x160   : > { %v693_v40 = vpop.f32.mrf.mxu0  ;;  %2646 = vmatmul.msk.f32.gmra.mxu1 %vm384_vm0, %v3575_v47  ;;  %v2074_v11 = vsub.f32 %v3387_v38, %v2065_v1  ;;  %v3708_v55 = vpop.f32.mrf.mxu2 }
 0x161   : > { %4553 = vst [vmem:[#allocation22_spill] sm:$0xff] %v3708_v55 }
 0x162   : > { %v2113_v15 = vmul.f32 %v2074_v11, %v2074_v11 }
 0x163   : > { %2589 = vmatmul.msk.f32.gmra.mxu0 %vm384_vm0, %v353_v39  ;;  %v3689_v41 = vpop.f32.mrf.mxu1 }
 0x164   : > { %2123 = vrot.lane.b32.xlu1 %v2113_v15, %s3073_s8 }
 0x167   : > { %v2067_v27 = vpop.permute.xlu1 %2066 }
 0x168   : > { %v696_v51 = vpop.f32.mrf.mxu0  ;;  %2647 = vmatmul.msk.f32.gmra.mxu1 %vm384_vm0, %v3591_v54  ;;  %v1820_v9 = vpop.permute.xlu0 %1819  ;;  %v2075_v30 = vsub.f32 %v3429_v0, %v2067_v27 }
 0x169   : > { %v1829_v13 = vsub.f32 %v3403_v48, %v1820_v9  ;;  %v3687_v33 = vpop.f32.mrf.mxu3 }
 0x16a   : > { %4551 = vst [vmem:[#allocation20_spill] sm:$0xff] %v3687_v33  ;;  %v2114_v39 = vmul.f32 %v2075_v30, %v2075_v30 }
 0x16b   : > { %2590 = vmatmul.msk.f32.gmra.mxu0 %vm384_vm0, %v354_v50  ;;  %v1868_v24 = vmul.f32 %v1829_v13, %v1829_v13  ;;  %v3698_v28 = vpop.f32.mrf.mxu1 }
 0x16d   : > { %1878 = vrot.lane.b32.xlu0 %v1868_v24, %s3073_s8 }
 0x16f   : > { %v2310_v33 = vpop.permute.xlu1 %2309 }
 0x170   : > { %v699_v2 = vpop.f32.mrf.mxu0 }
 0x171   : > { %1007 = vmatpush.msra.mxu2 %v699_v2  ;;  %v3714_v2 = vpop.f32.mrf.mxu2 }
 0x173   : > { %1008 = vmatpush.msra.mxu2 %v696_v51  ;;  %v3706_v51 = vpop.f32.mrf.mxu1 }
 0x175   : > { %1009 = vmatpush.msra.mxu2 %v693_v40  ;;  %2125 = vrot.lane.b32.xlu0 %v2114_v39, %s3073_s8  ;;  %v3696_v40 = vpop.f32.mrf.mxu3 }
 0x176   : > { %4552 = vst [vmem:[#allocation21_spill] sm:$0xff] %v3696_v40 }
 0x177   : > { %1010 = vmatpush.msra.mxu2 %v690_v17 }
 0x178   : > { %v702_v31 = vpop.f32.mrf.mxu0  ;;  %2648 = vmatmul.msk.f32.vlgmr.msra.gmra.mxu2 %vm384_vm0, %v3563_v44 }
 0x179   : > { %v3723_v15 = vpop.f32.mrf.mxu2 }
 0x17b   : > { %v3712_v1 = vpop.f32.mrf.mxu1 }
 0x17d   : > { %v3704_v50 = vpop.f32.mrf.mxu3 }
 0x180   : > { %v705_v17 = vpop.f32.mrf.mxu0  ;;  %2649 = vmatmul.msk.f32.gmra.mxu2 %vm384_vm0, %v3575_v47 }
 0x183   : > { %v3721_v13 = vpop.f32.mrf.mxu1 }
 0x185   : > { %v3710_v62 = vpop.f32.mrf.mxu3 }
 0x188   : > { %v708_v37 = vpop.f32.mrf.mxu0  ;;  %2650 = vmatmul.msk.f32.gmra.mxu2 %vm384_vm0, %v3591_v54 }
 0x18b   : > { %v3729_v30 = vpop.f32.mrf.mxu1 }
 0x18d   : > { %v3719_v9 = vpop.f32.mrf.mxu3 }
 0x190   : > { %v711_v57 = vpop.f32.mrf.mxu0 }
 0x191   : > { %1033 = vmatpush.msra.mxu3 %v711_v57 }
 0x193   : > { %1034 = vmatpush.msra.mxu3 %v708_v37 }
 0x195   : > { %1035 = vmatpush.msra.mxu3 %v705_v17  ;;  %v3727_v27 = vpop.f32.mrf.mxu3  ;;  %v786_v17 = vpop.f32.mrf.mxu1 }
 0x197   : > { %1036 = vmatpush.msra.mxu3 %v702_v31  ;;  %v3731_v31 = vpop.f32.mrf.mxu2 }
 0x198   : > { %v714_v11 = vpop.f32.mrf.mxu0  ;;  %2651 = vmatmul.msk.f32.vlgmr.msra.gmra.mxu3 %vm384_vm0, %v3563_v44 }
 0x199   : > { %1111 = vmatpush.msrb.mxu3 %v3588_v53 }
 0x19d   : > { %v3735_v39 = vpop.f32.mrf.mxu3  ;;  %v3739_v36 = vpop.f32.mrf.mxu1 }
 0x19e   : > { %4554 = vst [vmem:[#allocation23_spill] sm:$0xff] %v3735_v39 }
 0x19f   : > { %v822_v37 = vpop.f32.mrf.mxu2 }
 0x1a0   : > { %v717_v24 = vpop.f32.mrf.mxu0  ;;  %2652 = vmatmul.msk.f32.gmra.mxu3 %vm384_vm0, %v3575_v47 }
 0x1a5   : > { %v3737_v58 = vpop.f32.mrf.mxu3 }
 0x1a6   : > { %4555 = vst [vmem:[#allocation24_spill] sm:$0xff] %v3737_v58 }
 0x1a7   : > { %v825_v12 = vpop.f32.mrf.mxu2 }
 0x1a8   : > { %v720_v53 = vpop.f32.mrf.mxu0  ;;  %2653 = vmatmul.msk.f32.gmra.mxu3 %vm384_vm0, %v3591_v54 }
 0x1ad   : > { %v3745_v39 = vpop.f32.mrf.mxu3 }
 0x1ae   : > { %4556 = vst [vmem:[#allocation25_spill] sm:$0xff] %v3745_v39  ;;  %v1414_v39 = vmul.f32 %v3739_v36, %v3739_v36 }
 0x1b0   : > { %v723_v57 = vpop.f32.mrf.mxu0 }
 0x1b1   : > { %1059 = vmatpush.msrb.mxu1 %v723_v57 }
 0x1b3   : > { %1060 = vmatpush.msrb.mxu1 %v720_v53  ;;  %v2319_v53 = vsub.f32 %v3481_v63, %v2310_v33  ;;  %v828_v63 = vpop.f32.mrf.mxu2 }
 0x1b5   : > { %1061 = vmatpush.msrb.mxu1 %v717_v24  ;;  %v1822_v24 = vpop.permute.xlu0 %1821  ;;  %v2358_v57 = vmul.f32 %v2319_v53, %v2319_v53 }
 0x1b7   : > { %1062 = vmatpush.msrb.mxu1 %v714_v11  ;;  %v1830_v11 = vsub.f32 %v3442_v32, %v1822_v24  ;;  %2368 = vrot.lane.b32.xlu0 %v2358_v57, %s3073_s8 }
 0x1b8   : > { %v726_v59 = vpop.f32.mrf.mxu0  ;;  %2654 = vmatmul.msk.f32.vlgmr.msrb.gmra.mxu1 %vm384_vm0, %v3563_v44 }
 0x1b9   : > { %1137 = vmatpush.msra.mxu1 %v3650_v7  ;;  %v1869_v7 = vmul.f32 %v1830_v11, %v1830_v11  ;;  %v3767_v11 = vpop.permute.xlu1 %1624 }
 0x1bb   : > { %1138 = vmatpush.msra.mxu1 %v3633_v5  ;;  %v3754_v5 = vpop.f32.mrf.mxu1  ;;  %1880 = vrot.lane.b32.xlu2 %v1869_v7, %s3073_s8 }
 0x1bc   : > { %4557 = vst [vmem:[#allocation26_spill] sm:$0xff] %v3754_v5 }
 0x1bd   : > { %1139 = vmatpush.msra.mxu1 %v3618_v8  ;;  %v3759_v8 = vpop.f32.mrf.mxu3 }
 0x1be   : > { %4558 = vst [vmem:[#allocation27_spill] sm:$0xff] %v3759_v8 }
 0x1bf   : > { %1140 = vmatpush.msra.mxu1 %v3605_v4  ;;  %v2308_v4 = vpop.permute.xlu0 %2307 }
 0x1c0   : > { %v729_v58 = vpop.f32.mrf.mxu0  ;;  %2655 = vmatmul.msk.f32.gmra.mxu1 %vm384_vm0, %v3575_v47 }
 0x1c1   : > { %1215 = vmatpush.msrb.mxu1 %v3654_v45  ;;  %v2318_v45 = vsub.f32 %v3464_v56, %v2308_v4  ;;  %v3775_v56 = vpop.permute.xlu1 %1630 }
 0x1c2   : > { %4559 = vst [vmem:[#allocation28_spill] sm:$0xff] %v3775_v56 }
 0x1c3   : > { %1216 = vmatpush.msrb.mxu1 %v3636_v21  ;;  %v2357_v53 = vmul.f32 %v2318_v45, %v2318_v45  ;;  %v3765_v24 = vpop.f32.mrf.mxu1  ;;  %v3770_v21 = vpop.f32.mrf.mxu2 }
 0x1c5   : > { %1217 = vmatpush.msrb.mxu1 %v3621_v6  ;;  %2366 = vrot.lane.b32.xlu2 %v2357_v53, %s3073_s8  ;;  %v960_v57 = vpop.f32.mrf.mxu3 }
 0x1c7   : > { %1218 = vmatpush.msrb.mxu1 %v786_v17  ;;  %v2312_v7 = vpop.permute.xlu0 %2311 }
 0x1c8   : > { %v732_v33 = vpop.f32.mrf.mxu0  ;;  %2656 = vmatmul.msk.f32.gmra.mxu1 %vm384_vm0, %v3591_v54 }
 0x1c9   : > { %v1875_v55 = vpop.permute.xlu1 %1874 }
 0x1cb   : > { %v3779_v45 = vpop.f32.mrf.mxu2 }
 0x1cd   : > { %v963_v53 = vpop.f32.mrf.mxu3 }
 0x1cf   : > { %v3777_v4 = vpop.permute.xlu0 %1628 }
 0x1d0   : > { %v735_v6 = vpop.f32.mrf.mxu0  ;;  %2663 = vmatmul.msk.f32.vlgmr.msra.gmra.mxu1 %vm384_vm0, %v3563_v44  ;;  %4560 = vst [vmem:[#allocation29_spill] sm:$0xff] %v3777_v4 }
 0x1d1   : > { %1085 = vmatpush.msrb.mxu2 %v735_v6  ;;  %1293 = vmatpush.msra.mxu1 %v3586_v52  ;;  %v1417_v52 = vmul.f32 %v3770_v21, %v3770_v21 }
 0x1d3   : > { %1086 = vmatpush.msrb.mxu2 %v732_v33  ;;  %1294 = vmatpush.msra.mxu1 %v828_v63  ;;  %v1423_v33 = vsub.f32 %v960_v57, %v1414_v39  ;;  %v1447_v40 = vadd.f32 %v1417_v52, %v1414_v39  ;;  %v3807_v39 = vpop.f32.mrf.mxu2 }
 0x1d5   : > { %1087 = vmatpush.msrb.mxu2 %v729_v58  ;;  %v986_v17 = vpop.f32.mrf.mxu1  ;;  %1295 = vmatpush.msra.mxu1 %v825_v12  ;;  %v1415_v58 = vmul.f32 %v3754_v5, %v3754_v5  ;;  %v2306_v12 = vpop.permute.xlu2 %2305  ;;  %v2320_v5 = vsub.f32 %v3318_v18, %v2312_v7  ;;  %v1776_v18 = vsub.f32 %v3344_v25, %v3347_v26  ;;  %v1450_v7 = vadd.f32 0.0001, %v1447_v40 }
 0x1d6   : > { %v2317_v63 = vsub.f32 %v3331_v22, %v2306_v12  ;;  %v1426_v6 = vsub.f32 %v986_v17, %v1417_v52  ;;  %v1416_v22 = vmul.f32 %v3765_v24, %v3765_v24  ;;  %v1419_v52 = vmul.f32 %v3807_v39, %v3807_v39 }
 0x1d7   : > { %1088 = vmatpush.msrb.mxu2 %v726_v59  ;;  %1296 = vmatpush.msra.mxu1 %v822_v37  ;;  %v1418_v59 = vmul.f32 %v3779_v45, %v3779_v45  ;;  %v1424_v56 = vsub.f32 %v963_v53, %v1415_v58  ;;  %v2359_v12 = vmul.f32 %v2320_v5, %v2320_v5 }
 0x1d8   : > { %v3783_v8 = vpop.f32.mrf.mxu0  ;;  %2657 = vmatmul.msk.f32.vlgmr.msrb.gmra.mxu2 %vm384_vm0, %v3563_v44  ;;  %2664 = vmatmul.msk.f32.gmra.mxu1 %vm384_vm0, %v3575_v47  ;;  %v1453_v57 = vadd.f32 %v1426_v6, %v1423_v33  ;;  %v1780_v33 = vand.u32 2147483647, %v1776_v18  ;;  %v2046_v18 = vrot.slane %v3361_v29, 7 }
 0x1d9   : > { %1163 = vmatpush.msra.mxu2 %v3698_v28  ;;  %v2356_v28 = vmul.f32 %v2317_v63, %v2317_v63  ;;  %v1448_v17 = vadd.f32 %v1418_v59, %v1415_v58  ;;  %v1778_v63 = vsub.f32 %v3403_v48, %v3406_v49  ;;  %v2120_v48 = vpop.permute.xlu1 %2119  ;;  %v1449_v49 = vadd.f32 %v1419_v52, %v1416_v22 }
 0x1da   : > { %v1456_v25 = vadd.f32 0.0009, %v1453_v57 }
 0x1db   : > { %1164 = vmatpush.msra.mxu2 %v3689_v41  ;;  %2364 = vrot.lane.b32.xlu1 %v2356_v28, %s3073_s8  ;;  %v1782_v6 = vand.u32 2147483647, %v1778_v63 }
 0x1dc   : > { %v3830_v28 = vmul.f32 %v1456_v25, %v1450_v7  ;;  %v1452_v7 = vadd.f32 0.0001, %v1449_v49 }
 0x1dd   : > { %1165 = vmatpush.msra.mxu2 %v3678_v43  ;;  %v989_v37 = vpop.f32.mrf.mxu1  ;;  %v1877_v43 = vpop.permute.xlu0 %1876 }
 0x1de   : > { %v1427_v4 = vsub.f32 %v989_v37, %v1418_v59  ;;  %2824 = vrcp.f32 %v3830_v28  ;;  %vm1467_vm5 = vweird.f32 %v3830_v28 }
 0x1df   : > { %1166 = vmatpush.msra.mxu2 %v3667_v10  ;;  %v966_v10 = vpop.f32.mrf.mxu3 }
 0x1e0   : > { %v741_v41 = vpop.f32.mrf.mxu0  ;;  %2658 = vmatmul.msk.f32.gmra.mxu2 %vm384_vm0, %v3575_v47  ;;  %2665 = vmatmul.msk.f32.gmra.mxu1 %vm384_vm0, %v3591_v54  ;;  %v1454_v53 = vadd.f32 %v1427_v4, %v1424_v56  ;;  %v1425_v26 = vsub.f32 %v966_v10, %v1416_v22  ;;  %v1887_v56 = vsel %vm1636_vm4, %v1877_v43, 0.0  ;;  %v1451_v4 = vadd.f32 0.0001, %v1448_v17 }
 0x1e1   : > { %1241 = vmatpush.msrb.mxu2 %v3700_v46  ;;  %v1777_v46 = vsub.f32 %v3372_v34, %v3375_v35  ;;  %v1886_v34 = vsel %vm1636_vm4, %v1875_v55, 0.0  ;;  %v3822_v35 = vpop.permute.xlu2 %1626  ;;  %v1784_v55 = vsel %vm384_vm0, %v1780_v33, 0.0  ;;  %v2045_v43 = vrot.slane %v3312_v16, 7  ;;  %v2124_v25 = vpop.permute.xlu1 %2123 }
 0x1e2   : > { %v1457_v5 = vadd.f32 0.0009, %v1454_v53  ;;  %v1888_v59 = vadd.f32 %v1887_v56, %v1886_v34  ;;  %v2131_v17 = vsel %vm1636_vm4, %v2120_v48, 0.0  ;;  %v2048_v34 = vrot.slane %v3387_v38, 7 }
 0x1e3   : > { %1242 = vmatpush.msrb.mxu2 %v3691_v42  ;;  %v1781_v42 = vand.u32 2147483647, %v1777_v46  ;;  %2370 = vrot.lane.b32.xlu1 %v2359_v12, %s3073_s8 }
 0x1e4   : > { %v3838_v46 = vmul.f32 %v1457_v5, %v1451_v4  ;;  %v2049_v5 = vsel %vm1547_vm1, %v2046_v18, %v2048_v34  ;;  %v3875_v48 = vpop.eup %2824 }
 0x1e5   : > { %1243 = vmatpush.msrb.mxu2 %v3680_v14  ;;  %v992_v40 = vpop.f32.mrf.mxu1  ;;  %v1779_v14 = vsub.f32 %v3442_v32, %v3325_v20  ;;  %v1879_v22 = vpop.permute.xlu0 %1878  ;;  %v1787_v32 = vsel %vm384_vm0, %v1782_v6, 0.0  ;;  %vm1468_vm6 = vweird.f32 %v3875_v48 }
 0x1e6   : > { %v1428_v58 = vsub.f32 %v992_v40, %v1419_v52  ;;  %v1889_v63 = vsel %vm1636_vm4, %v1879_v22, 0.0  ;;  %2826 = vrcp.f32 %v3838_v46  ;;  %v3862_v40 = vld [vmem:[%s3233_s30 + $0x40] sm:$0xff]  ;;  %vm1482_vm7 = vweird.f32 %v3838_v46  ;;  %vm3943_vm9 = vmor %vm1467_vm5, %vm1468_vm6 }
 0x1e7   : > { %1244 = vmatpush.msrb.mxu2 %v3671_v61  ;;  %v1785_v61 = vsel %vm384_vm0, %v1781_v42, 0.0  ;;  %v1783_v10 = vand.u32 2147483647, %v1779_v14  ;;  %v2050_v42 = vrot.slane %v3429_v0, 7  ;;  %v2056_v56 = vsub.f32 %v3862_v40, %v2045_v43 }
 0x1e8   : > { %v744_v37 = vpop.f32.mrf.mxu0  ;;  %v1455_v57 = vadd.f32 %v1428_v58, %v1425_v26  ;;  %2659 = vmatmul.msk.f32.gmra.mxu2 %vm384_vm0, %v3591_v54  ;;  %v1786_v20 = vadd.f32 %v1785_v61, %v1784_v55  ;;  %2672 = vmatmul.msk.f32.vlgmr.msrb.gmra.mxu1 %vm384_vm0, %v3563_v44  ;;  %v2134_v26 = vsel %vm1636_vm4, %v2124_v25, 0.0 }
 0x1e9   : > { %1112 = vmatpush.msrb.mxu3 %v744_v37  ;;  %1371 = vmatpush.msrb.mxu1 %v3727_v27  ;;  %v2122_v53 = vpop.permute.xlu2 %2121  ;;  %v1789_v52 = vsel %vm384_vm0, %v1783_v10, 0.0  ;;  %v3853_v27 = vadd.f32 %v1889_v63, %v1888_v59  ;;  %v2051_v58 = vsel %vm1547_vm1, %v2048_v34, %v2050_v42  ;;  %v2076_v59 = vmul.f32 %v2056_v56, %v2056_v56 }
 0x1ea   : > { %v1788_v16 = vadd.f32 %v1787_v32, %v1786_v20  ;;  %v1458_v12 = vadd.f32 0.0009, %v1455_v57  ;;  %v2132_v33 = vsel %vm1636_vm4, %v2122_v53, 0.0  ;;  %v1473_v34 = vand.u32 2147483648, %v3830_v28 }
 0x1eb   : > { %1113 = vmatpush.msrb.mxu3 %v741_v41  ;;  %1372 = vmatpush.msrb.mxu1 %v3719_v9  ;;  %v2047_v41 = vsel %vm1547_vm1, %v2045_v43, %v2046_v18  ;;  %v2084_v6 = vrot.slane %v2076_v59, 1 }
 0x1ec   : > { %v1790_v9 = vadd.f32 %v1789_v52, %v1788_v16  ;;  %v2057_v4 = vsub.f32 %v3361_v29, %v2047_v41  ;;  %v3879_v49 = vpop.eup %2826  ;;  %v4561_v16 = vld [vmem:[#allocation22_spill] sm:$0xff] }
 0x1ed   : > { %1114 = vmatpush.msrb.mxu3 %v3783_v8  ;;  %1373 = vmatpush.msrb.mxu1 %v3710_v62  ;;  %v2133_v8 = vadd.f32 %v2132_v33, %v2131_v17  ;;  %v3869_v62 = vmul.f32 %v1458_v12, %v1452_v7  ;;  %v1478_v37 = vmul.f32 %v3879_v49, %v3838_v46  ;;  %v4563_v12 = vld [vmem:[#allocation29_spill] sm:$0xff]  ;;  %vm1483_vm8 = vweird.f32 %v3879_v49 }
 0x1ee   : > { %2660 = vmatmul.msk.f32.vlgmr.msrb.gmra.mxu3 %vm384_vm0, %v3563_v44  ;;  %1791 = vadd.xlane.f32.xlu0 %v1790_v9  ;;  %v2077_v14 = vmul.f32 %v2057_v4, %v2057_v4  ;;  %v1640_v63 = vsel %vm1636_vm4, %v4563_v12, 0.0  ;;  %v4564_v4 = vld [vmem:[#allocation28_spill] sm:$0xff]  ;;  %vm3959_vm11 = vmor %vm1482_vm7, %vm1483_vm8  ;;  %vm1511_vm7 = vcmask 1045504  }
 0x1ef   : > { %1189 = vmatpush.msra.mxu3 %v3729_v30  ;;  %v2126_v30 = vpop.permute.xlu0 %2125  ;;  %1374 = vmatpush.msrb.mxu1 %v3704_v50  ;;  %v2135_v29 = vadd.f32 %v2134_v26, %v2133_v8  ;;  %v2059_v50 = vsub.f32 %v3429_v0, %v2051_v58  ;;  %2828 = vrcp.f32 %v3869_v62  ;;  %v1479_v20 = vsub.f32 1.0, %v1478_v37 }
 0x1f0   : > { %2666 = vmatmul.msk.f32.vlgmr.msra.gmra.mxu2 %vm384_vm0, %v3563_v44  ;;  %2673 = vmatmul.msk.f32.gmra.mxu1 %vm384_vm0, %v3575_v47  ;;  %v2085_v55 = vrot.slane %v2077_v14, 1  ;;  %v1488_v58 = vand.u32 2147483648, %v3838_v46  ;;  %v1486_v14 = vand.u32 2147483647, %v3838_v46  ;;  %v1474_v37 = vor.u32 1.1754944e-38, %v1473_v34 }
 0x1f1   : > { %1190 = vmatpush.msra.mxu3 %v3721_v13  ;;  %1319 = vmatpush.msra.mxu2 %v3648_v23  ;;  %v2058_v13 = vsub.f32 %v3387_v38, %v2049_v5  ;;  %v2136_v23 = vsel %vm1636_vm4, %v2126_v30, 0.0  ;;  %v1463_v38 = vmul.f32 %v3875_v48, %v3830_v28  ;;  %v1480_v9 = vmul.f32 %v3879_v49, %v1479_v20 }
 0x1f2   : > { %v2137_v0 = vadd.f32 %v2136_v23, %v2135_v29  ;;  %v2086_v57 = vsel %vm1587_vm2, %v2084_v6, %v2085_v55  ;;  %v1642_v30 = vsel %vm1636_vm4, %v4564_v4, 0.0  ;;  %vm1487_vm12 = vcmp.eq.f32.partialorder %v1486_v14, 8.507059e+37 }
 0x1f3   : > { %1191 = vmatpush.msra.mxu3 %v3712_v1  ;;  %1320 = vmatpush.msra.mxu2 %v3630_v19  ;;  %v2078_v1 = vmul.f32 %v2058_v13, %v2058_v13  ;;  %v2079_v19 = vmul.f32 %v2059_v50, %v2059_v50  ;;  %v2095_v22 = vsel %vm384_vm0, %v2086_v57, 0.0  ;;  %v1481_v50 = vadd.f32 %v3879_v49, %v1480_v9 }
 0x1f4   : > { %v1489_v57 = vor.u32 1.1754944e-38, %v1488_v58  ;;  %vm1497_vm13 = vweird.f32 %v3869_v62  ;;  %v1501_v20 = vand.u32 2147483647, %v3869_v62 }
 0x1f5   : > { %1192 = vmatpush.msra.mxu3 %v3706_v51  ;;  %1321 = vmatpush.msra.mxu2 %v3615_v3  ;;  %v2087_v51 = vrot.slane %v2078_v1, 1  ;;  %v2089_v61 = vrot.slane %v2079_v19, 1  ;;  %v1420_v3 = vmul.f32 %v3770_v21, %v3739_v36  ;;  %v3912_v21 = vpop.eup %2828  ;;  %v1422_v1 = vmul.f32 %v3807_v39, %v3765_v24 }
 0x1f6   : > { %2661 = vmatmul.msk.f32.gmra.mxu3 %vm384_vm0, %v3575_v47  ;;  %2138 = vadd.xlane.f32.xlu0 %v2137_v0  ;;  %v1493_v41 = vmul.f32 %v3912_v21, %v3869_v62  ;;  %v1411_v0 = vlaneseq  ;;  %v1485_v46 = vsel %vm3959_vm11, %v3879_v49, %v1481_v50  ;;  %vm1498_vm14 = vweird.f32 %v3912_v21 }
 0x1f7   : > { %1267 = vmatpush.msrb.mxu3 %v3731_v31  ;;  %1322 = vmatpush.msra.mxu2 %v3602_v60  ;;  %v1637_v31 = vsel %vm1636_vm4, %v3767_v11, 0.0  ;;  %v2088_v43 = vsel %vm1587_vm2, %v2085_v55, %v2087_v51  ;;  %v1464_v60 = vsub.f32 1.0, %v1463_v38  ;;  %v2090_v10 = vsel %vm1587_vm2, %v2087_v51, %v2089_v61  ;;  %vm3990_vm15 = vmor %vm1497_vm13, %vm1498_vm14 }
 0x1f8   : > { %2667 = vmatmul.msk.f32.gmra.mxu2 %vm384_vm0, %v3575_v47  ;;  %v2096_v36 = vsel %vm384_vm0, %v2088_v43, 0.0  ;;  %v2098_v18 = vsel %vm384_vm0, %v2090_v10, 0.0  ;;  %2674 = vmatmul.msk.f32.gmra.mxu1 %vm384_vm0, %v3591_v54  ;;  %v1432_v25 = vmul.f32 2.0, %v1420_v3  ;;  %v1494_v59 = vsub.f32 1.0, %v1493_v41  ;;  %v4571_v43 = vld [vmem:[#allocation21_spill] sm:$0xff]  ;;  %v4578_v41 = vld [vmem:[#allocation18_spill] sm:$0xff] }
 0x1f9   : > { %1268 = vmatpush.msrb.mxu3 %v3723_v15  ;;  %v1638_v15 = vsel %vm1636_vm4, %v3822_v35, 0.0  ;;  %v2097_v32 = vadd.f32 %v2096_v36, %v2095_v22  ;;  %v4562_v35 = vld [vmem:[#allocation26_spill] sm:$0xff]  ;;  %v1465_v33 = vmul.f32 %v3875_v48, %v1464_v60  ;;  %v3981_v49 = vand.u32 127, %v1411_v0  ;;  %v4572_v36 = vld [vmem:[#allocation20_spill] sm:$0xff] }
 0x1fa   : > { %v1421_v7 = vmul.f32 %v3779_v45, %v4562_v35  ;;  %v1639_v53 = vadd.f32 %v1638_v15, %v1637_v31  ;;  %v1471_v45 = vand.u32 2147483647, %v3830_v28  ;;  %v1435_v29 = vadd.f32 0.0001, %v1432_v25 }
 0x1fb   : > { %1269 = vmatpush.msrb.mxu3 %v3714_v2  ;;  %v1012_v11 = vpop.f32.mrf.mxu2  ;;  %v2100_v2 = vsel %vm1604_vm3, %v2089_v61, 0.0  ;;  %v2099_v52 = vadd.f32 %v2098_v18, %v2097_v32  ;;  %v1466_v5 = vadd.f32 %v3875_v48, %v1465_v33  ;;  %v1495_v61 = vmul.f32 %v3912_v21, %v1494_v59  ;;  %v4573_v32 = vld [vmem:[#allocation27_spill] sm:$0xff]  ;;  %v4579_v33 = vld [vmem:[#allocation24_spill] sm:$0xff] }
 0x1fc   : > { %v1429_v17 = vsub.f32 %v1012_v11, %v1420_v3  ;;  %v1433_v8 = vmul.f32 2.0, %v1421_v7  ;;  %v1641_v56 = vadd.f32 %v1640_v63, %v1639_v53  ;;  %vm3951_vm10 = vcmp.eq.f32.partialorder %v1471_v45, 8.507059e+37 }
 0x1fd   : > { %1270 = vmatpush.msrb.mxu3 %v4561_v16  ;;  %v2101_v26 = vadd.f32 %v2100_v2, %v2099_v52  ;;  %v1470_v39 = vsel %vm3943_vm9, %v3875_v48, %v1466_v5  ;;  %v1434_v3 = vmul.f32 2.0, %v1422_v1  ;;  %v1503_v60 = vand.u32 2147483648, %v3869_v62  ;;  %v4576_v2 = vld [vmem:[#allocation19_spill] sm:$0xff]  ;;  %v2849_v16 = vld [vmem:[%s3233_s30 + $0x20] sm:$0xff] }
 0x1fe   : > { %2662 = vmatmul.msk.f32.gmra.mxu3 %vm384_vm0, %v3591_v54  ;;  %v1438_v42 = vmul.f32 2.0, %v1429_v17  ;;  %v1436_v6 = vadd.f32 0.0001, %v1433_v8  ;;  %v1643_v24 = vadd.f32 %v1642_v30, %v1641_v56  ;;  %v1475_v22 = vsel %vm3951_vm10, %v1474_v37, %v1470_v39  ;;  %v4580_v8 = vld [vmem:[#allocation23_spill] sm:$0xff] }
 0x1ff   : > { %2102 = vadd.xlane.f32.xlu2 %v2101_v26  ;;  %v1490_v10 = vsel %vm1487_vm12, %v1489_v57, %v1485_v46  ;;  %v1496_v11 = vadd.f32 %v3912_v21, %v1495_v61  ;;  %v1437_v17 = vadd.f32 0.0001, %v1434_v3  ;;  %v1504_v12 = vor.u32 1.1754944e-38, %v1503_v60 }
 0x200   : > { %2668 = vmatmul.msk.f32.gmra.mxu2 %vm384_vm0, %v3591_v54  ;;  %2681 = vmatmul.msk.f32.vlgmr.msra.gmra.mxu1 %vm384_vm0, %v3563_v44  ;;  %v1441_v55 = vadd.f32 0.0009, %v1438_v42  ;;  %vm1413_vm5 = vcmp.lt.s32.totalorder %v3981_v49, 22  ;;  %vm1502_vm6 = vcmp.eq.f32.partialorder %v1501_v20, 8.507059e+37 }
 0x201   : > { %v1500_v62 = vsel %vm3990_vm15, %v3912_v21, %v1496_v11 }
 0x202   : > { %v1444_v48 = vmul.f32 %v1441_v55, %v1435_v29  ;;  %v1505_v9 = vsel %vm1502_vm6, %v1504_v12, %v1500_v62  ;;  %v4582_v55 = vld [vmem:[#allocation17_spill] sm:$0xff]  ;;  %v2851_v12 = vld [vmem:[%s3233_s30 + $0x30] sm:$0xff] }
 0x203   : > { %v1015_v23 = vpop.f32.mrf.mxu2  ;;  %v1609_v37 = vrot.slane %v4582_v55, 4 }
 0x204   : > { %v1430_v19 = vsub.f32 %v1015_v23, %v1421_v7  ;;  %v4577_v7 = vld [vmem:[#allocation25_spill] sm:$0xff]  ;;  %v1476_v53 = vmul.f32 %v1475_v22, %v1444_v48 }
 0x205   : > { %v1610_v61 = vadd.f32 %v1609_v37, %v4582_v55 }
 0x206   : > { %v1439_v51 = vmul.f32 2.0, %v1430_v19  ;;  %2669 = vmatmul.msk.f32.vlgmr.msra.gmra.mxu3 %vm384_vm0, %v3563_v44  ;;  %v1507_v26 = vsel %vm1413_vm5, %v1476_v53, 0.0 }
 0x207   : > { %1345 = vmatpush.msra.mxu3 %v4571_v43  ;;  %1644 = vadd.xlane.f32.xlu2 %v1643_v24 }
 0x208   : > { %v1442_v31 = vadd.f32 0.0009, %v1439_v51  ;;  %2675 = vmatmul.msk.f32.vlgmr.msrb.gmra.mxu2 %vm384_vm0, %v3563_v44  ;;  %2682 = vmatmul.msk.f32.gmra.mxu1 %vm384_vm0, %v3575_v47 }
 0x209   : > { %1346 = vmatpush.msra.mxu3 %v4572_v36  ;;  %1397 = vmatpush.msrb.mxu2 %v4573_v32 }
 0x20a   : > { %v1445_v15 = vmul.f32 %v1442_v31, %v1436_v6 }
 0x20b   : > { %v1018_v18 = vpop.f32.mrf.mxu2  ;;  %1347 = vmatpush.msra.mxu3 %v4576_v2  ;;  %1398 = vmatpush.msrb.mxu2 %v4577_v7  ;;  %v1800_v2 = vrot.slane %v2849_v16, 7 }
 0x20c   : > { %v1431_v35 = vsub.f32 %v1018_v18, %v1422_v1  ;;  %v1491_v52 = vmul.f32 %v1490_v10, %v1445_v15  ;;  %v1611_v10 = vrot.slane %v1610_v61, 2 }
 0x20d   : > { %1348 = vmatpush.msra.mxu3 %v4578_v41  ;;  %1399 = vmatpush.msrb.mxu2 %v4579_v33 }
 0x20e   : > { %v1440_v63 = vmul.f32 2.0, %v1431_v35  ;;  %2670 = vmatmul.msk.f32.gmra.mxu3 %vm384_vm0, %v3575_v47  ;;  %v1508_v45 = vsel %vm1413_vm5, %v1491_v52, 0.0  ;;  %v2850_v35 = vld [vmem:[%s3233_s30 + $0x28] sm:$0xff] }
 0x20f   : > { %1400 = vmatpush.msrb.mxu2 %v4580_v8  ;;  %v1510_v42 = vadd.f32 %v1508_v45, %v1507_v26  ;;  %v1801_v7 = vrot.slane %v2850_v35, 7  ;;  %v4094_v45 = vadd.f32 %v1611_v10, %v1610_v61 }
 0x210   : > { %v1443_v25 = vadd.f32 0.0009, %v1440_v63  ;;  %2676 = vmatmul.msk.f32.gmra.mxu2 %vm384_vm0, %v3575_v47  ;;  %2683 = vmatmul.msk.f32.gmra.mxu1 %vm384_vm0, %v3591_v54  ;;  %v1803_v63 = vrot.slane %v2851_v12, 7 }
 0x211   : > { %v1802_v33 = vsel %vm1547_vm1, %v1800_v2, %v1801_v7 }
 0x212   : > { %v1446_v21 = vmul.f32 %v1443_v25, %v1437_v17  ;;  %v2852_v25 = vld [vmem:[%s3233_s30 + $0x38] sm:$0xff] }
 0x213   : > { %v1805_v8 = vrot.slane %v2852_v25, 7 }
 0x214   : > { %v1506_v34 = vmul.f32 %v1505_v9, %v1446_v21  ;;  %v1804_v21 = vsel %vm1547_vm1, %v1801_v7, %v1803_v63 }
 0x215   : > { %v1881_v50 = vpop.permute.xlu2 %1880 }
 0x216   : > { %v1509_v56 = vsel %vm1413_vm5, %v1506_v34, 0.0  ;;  %2671 = vmatmul.msk.f32.gmra.mxu3 %vm384_vm0, %v3591_v54  ;;  %v1891_v18 = vsel %vm1636_vm4, %v1881_v50, 0.0  ;;  %v1811_v34 = vsub.f32 %v2849_v16, %v1800_v2 }
 0x217   : > { %v1512_v4 = vsel %vm1511_vm7, %v1509_v56, 0.0  ;;  %v1892_v26 = vadd.f32 %v1891_v18, %v3853_v27 }
 0x218   : > { %v1513_v30 = vadd.f32 %v1512_v4, %v1510_v42  ;;  %2677 = vmatmul.msk.f32.gmra.mxu2 %vm384_vm0, %v3591_v54  ;;  %2690 = vmatmul.msk.f32.vlgmr.msrb.gmra.mxu1 %vm384_vm0, %v3563_v44 }
 0x219   : > { %1893 = vadd.xlane.f32.xlu2 %v1892_v26 }
 0x21a   : > { %1514 = vadd.xlane.f32.xlu0 %v1513_v30 }
 0x21b   : > { %v1038_v29 = vpop.f32.mrf.mxu3 }
 0x21c   : > { %v1668_v24 = vmul.f32 %v1038_v29, %v1038_v29 }
 0x21e   : > { %2678 = vmatmul.msk.f32.vlgmr.msrb.gmra.mxu3 %vm384_vm0, %v3563_v44 }
 0x21f   : > { %v4063_v19 = vpop.permute.xlu2 %2366 }
 0x220   : > { %2684 = vmatmul.msk.f32.vlgmr.msra.gmra.mxu2 %vm384_vm0, %v3563_v44  ;;  %2691 = vmatmul.msk.f32.gmra.mxu1 %vm384_vm0, %v3575_v47 }
 0x226   : > { %2679 = vmatmul.msk.f32.gmra.mxu3 %vm384_vm0, %v3575_v47 }
 0x228   : > { %2685 = vmatmul.msk.f32.gmra.mxu2 %vm384_vm0, %v3575_v47  ;;  %2692 = vmatmul.msk.f32.gmra.mxu1 %vm384_vm0, %v3591_v54 }
 0x229   : > { %v4069_v51 = vpop.permute.xlu0 %2368 }
 0x22e   : > { %2680 = vmatmul.msk.f32.gmra.mxu3 %vm384_vm0, %v3591_v54 }
 0x230   : > { %2686 = vmatmul.msk.f32.gmra.mxu2 %vm384_vm0, %v3591_v54 }
 0x235   : > { %v1064_v5 = vpop.f32.mrf.mxu1 }
 0x236   : > { %2687 = vmatmul.msk.f32.vlgmr.msra.gmra.mxu3 %vm384_vm0, %v3563_v44  ;;  %v1671_v0 = vmul.f32 %v1064_v5, %v1064_v5  ;;  %v1674_v17 = vmul.f32 %v1064_v5, %v1038_v29  ;;  %v1812_v29 = vsub.f32 %v2850_v35, %v1802_v33 }
 0x238   : > { %2693 = vmatmul.msk.f32.vlgmr.msrb.gmra.mxu2 %vm384_vm0, %v3563_v44  ;;  %v1041_v44 = vpop.f32.mrf.mxu3  ;;  %v1701_v46 = vadd.f32 %v1671_v0, %v1668_v24  ;;  %v1686_v42 = vmul.f32 2.0, %v1674_v17  ;;  %v1832_v37 = vmul.f32 %v1812_v29, %v1812_v29 }
 0x239   : > { %v1669_v20 = vmul.f32 %v1041_v44, %v1041_v44 }
 0x23a   : > { %v1704_v11 = vadd.f32 0.0001, %v1701_v46 }
 0x23d   : > { %v1067_v58 = vpop.f32.mrf.mxu1 }
 0x23e   : > { %2688 = vmatmul.msk.f32.gmra.mxu3 %vm384_vm0, %v3575_v47  ;;  %v1672_v36 = vmul.f32 %v1067_v58, %v1067_v58  ;;  %v1675_v41 = vmul.f32 %v1067_v58, %v1041_v44  ;;  %v1806_v58 = vsel %vm1547_vm1, %v1803_v63, %v1805_v8 }
 0x240   : > { %2694 = vmatmul.msk.f32.gmra.mxu2 %vm384_vm0, %v3575_v47  ;;  %v4581_v47 = vld [vmem:[#allocation16_spill] sm:$0xff]  ;;  %v4061_v38 = vpop.f32.mrf.mxu3  ;;  %v1702_v56 = vadd.f32 %v1672_v36, %v1669_v20 }
 0x241   : > { %v1540_v1 = vrot.slane %v4581_v47, 4 }
 0x245   : > { %v4052_v59 = vpop.f32.mrf.mxu1 }
 0x246   : > { %2689 = vmatmul.msk.f32.gmra.mxu3 %vm384_vm0, %v3591_v54 }
 0x248   : > { %2695 = vmatmul.msk.f32.gmra.mxu2 %vm384_vm0, %v3591_v54  ;;  %v1541_v54 = vadd.f32 %v1540_v1, %v4581_v47  ;;  %v1814_v47 = vsub.f32 %v2852_v25, %v1806_v58  ;;  %v1831_v1 = vmul.f32 %v1811_v34, %v1811_v34 }
 0x24a   : > { %v1542_v39 = vrot.slane %v1541_v54, 2  ;;  %v4110_v61 = vmul.f32 %v1814_v47, %v1814_v47 }
 0x24c   : > { %v4074_v48 = vadd.f32 %v1542_v39, %v1541_v54  ;;  %v1687_v54 = vmul.f32 2.0, %v1675_v41  ;;  %v1844_v18 = vrot.slane %v4110_v61, 1 }
 0x24d   : > { %v4054_v23 = vpop.f32.mrf.mxu1 }
 0x24e   : > { %v1544_v52 = vrot.slane %v4074_v48, 1  ;;  %v1683_v27 = vsub.f32 %v4054_v23, %v1674_v17  ;;  %v1690_v16 = vadd.f32 0.0001, %v1687_v54 }
 0x250   : > { %v1692_v10 = vmul.f32 2.0, %v1683_v27  ;;  %v1613_v27 = vrot.slane %v4094_v45, 1 }
 0x252   : > { %v1695_v25 = vadd.f32 0.0009, %v1692_v10 }
 0x255   : > { %v4058_v6 = vpop.f32.mrf.mxu1 }
 0x256   : > { %v1684_v44 = vsub.f32 %v4058_v6, %v1675_v41  ;;  %v1705_v6 = vadd.f32 0.0001, %v1702_v56 }
 0x25b   : > { %v1090_v13 = vpop.f32.mrf.mxu2 }
 0x25c   : > { %v1677_v31 = vsub.f32 %v1090_v13, %v1668_v24  ;;  %v1813_v13 = vsub.f32 %v2851_v12, %v1804_v21  ;;  %v1676_v24 = vmul.f32 %v4052_v59, %v4061_v38 }
 0x25d   : > { %v4071_v57 = vpop.f32.mrf.mxu1 }
 0x25e   : > { %v1833_v23 = vmul.f32 %v1813_v13, %v1813_v13  ;;  %v1685_v7 = vsub.f32 %v4071_v57, %v1676_v24  ;;  %v1688_v8 = vmul.f32 2.0, %v1676_v24  ;;  %v4138_v13 = vadd.f32 %v1544_v52, %v4074_v48 }
 0x260   : > { %v4143_v47 = vadd.f32 0.0001, %v1688_v8 }
 0x261   : > { %v4091_v9 = vpop.xlane.xlu0 %1791 }
 0x263   : > { %v4056_v14 = vpop.f32.mrf.mxu2 }
 0x264   : > { %v1678_v4 = vsub.f32 %v4056_v14, %v1669_v20  ;;  %v1670_v14 = vmul.f32 %v4061_v38, %v4061_v38 }
 0x265   : > { %v4083_v53 = vpop.f32.mrf.mxu1 }
 0x269   : > { %v4124_v63 = vpop.xlane.xlu0 %2138 }
 0x26b   : > { %v4066_v28 = vpop.f32.mrf.mxu2 }
 0x26c   : > { %v1679_v35 = vsub.f32 %v4066_v28, %v1670_v14 }
 0x26d   : > { %v4118_v38 = vpop.f32.mrf.mxu1 }
 0x271   : > { %v1116_v3 = vpop.f32.mrf.mxu3 }
 0x272   : > { %v1680_v43 = vsub.f32 %v1116_v3, %v1671_v0  ;;  %v4078_v15 = vpop.xlane.xlu2 %2102  ;;  %v1673_v0 = vmul.f32 %v4052_v59, %v4052_v59  ;;  %v1839_v3 = vrot.slane %v1831_v1, 1 }
 0x273   : > { %v4076_v60 = vpop.f32.mrf.mxu2 }
 0x274   : > { %v1707_v22 = vadd.f32 %v1680_v43, %v1677_v31  ;;  %v1840_v31 = vrot.slane %v1832_v37, 1  ;;  %v1703_v2 = vadd.f32 %v1673_v0, %v1670_v14  ;;  %v1913_v56 = vmul.f32 %v4076_v60, %v4076_v60 }
 0x276   : > { %v1710_v32 = vadd.f32 0.0009, %v1707_v22  ;;  %v1689_v22 = vadd.f32 0.0001, %v1686_v42  ;;  %v1841_v41 = vsel %vm1587_vm2, %v1839_v3, %v1840_v31  ;;  %v1706_v58 = vadd.f32 0.0001, %v1703_v2 }
 0x278   : > { %v4087_v62 = vmul.f32 %v1710_v32, %v1704_v11  ;;  %v1842_v11 = vrot.slane %v1833_v23, 1  ;;  %v1922_v23 = vsub.f32 %v4083_v53, %v1913_v56  ;;  %v1855_v53 = vsel %vm1604_vm3, %v1844_v18, 0.0 }
 0x279   : > { %v1119_v30 = vpop.f32.mrf.mxu3 }
 0x27a   : > { %2830 = vrcp.f32 %v4087_v62  ;;  %v1681_v5 = vsub.f32 %v1119_v30, %v1672_v36  ;;  %v1645_v39 = vpop.xlane.xlu2 %1644  ;;  %v1693_v36 = vmul.f32 2.0, %v1684_v44  ;;  %v1843_v33 = vsel %vm1587_vm2, %v1840_v31, %v1842_v11 }
 0x27b   : > { %v4102_v50 = vpop.f32.mrf.mxu2  ;;  %v1646_v59 = vrot.slane %v1645_v39, 4  ;;  %v1845_v57 = vsel %vm1587_vm2, %v1842_v11, %v1844_v18  ;;  %v1850_v30 = vsel %vm384_vm0, %v1841_v41, 0.0  ;;  %v4141_v44 = vmul.f32 %v1695_v25, %v1689_v22  ;;  %v2853_v18 = vld [vmem:[%s3240_s5 + $0x40] sm:$0xff] }
 0x27c   : > { %v1708_v55 = vadd.f32 %v1681_v5, %v1678_v4  ;;  %v1696_v26 = vadd.f32 0.0009, %v1693_v36  ;;  %v1694_v4 = vmul.f32 2.0, %v1685_v7  ;;  %v1851_v5 = vsel %vm384_vm0, %v1843_v33, 0.0 }
 0x27d   : > { %v1647_v28 = vadd.f32 %v1646_v59, %v1645_v39  ;;  %v1852_v1 = vadd.f32 %v1851_v5, %v1850_v30  ;;  %v1853_v54 = vsel %vm384_vm0, %v1845_v57, 0.0  ;;  %vm1721_vm8 = vweird.f32 %v4087_v62 }
 0x27e   : > { %v1711_v46 = vadd.f32 0.0009, %v1708_v55  ;;  %v4146_v55 = vmul.f32 %v1696_v26, %v1690_v16  ;;  %v4151_v39 = vadd.f32 0.0009, %v1694_v4  ;;  %v1914_v22 = vmul.f32 %v4102_v50, %v4102_v50 }
 0x27f   : > { %v1854_v3 = vadd.f32 %v1853_v54, %v1852_v1  ;;  %v1727_v36 = vand.u32 2147483648, %v4087_v62  ;;  %v2021_v8 = vsub.f32 %v3862_v40, %v2853_v18 }
 0x280   : > { %v4112_v43 = vpop.eup %2830  ;;  %v4116_v32 = vmul.f32 %v1711_v46, %v1705_v6  ;;  %v4161_v6 = vpop.f32.mrf.mxu1  ;;  %v1725_v46 = vand.u32 2147483647, %v4087_v62 }
 0x281   : > { %v1717_v20 = vmul.f32 %v4112_v43, %v4087_v62  ;;  %v1122_v17 = vpop.f32.mrf.mxu3  ;;  %vm1722_vm9 = vweird.f32 %v4112_v43  ;;  %v1856_v33 = vadd.f32 %v1855_v53, %v1854_v3  ;;  %v1728_v62 = vor.u32 1.1754944e-38, %v1727_v36 }
 0x282   : > { %2832 = vrcp.f32 %v4116_v32  ;;  %v1682_v12 = vsub.f32 %v1122_v17, %v1673_v0  ;;  %v1648_v0 = vrot.slane %v1647_v28, 2  ;;  %v1742_v7 = vand.u32 2147483648, %v4116_v32  ;;  %vm4174_vm11 = vmor %vm1721_vm8, %vm1722_vm9 }
 0x283   : > { %v4128_v21 = vpop.f32.mrf.mxu2  ;;  %v1718_v34 = vsub.f32 1.0, %v1717_v20  ;;  %v1740_v41 = vand.u32 2147483647, %v4116_v32  ;;  %vm4178_vm12 = vcmp.eq.f32.partialorder %v1725_v46, 8.507059e+37  ;;  %vm1736_vm13 = vweird.f32 %v4116_v32  ;;  %1857 = vadd.xlane.f32.xlu1 %v1856_v33 }
 0x284   : > { %v1709_v42 = vadd.f32 %v1682_v12, %v1679_v35  ;;  %v1649_v59 = vadd.f32 %v1648_v0, %v1647_v28  ;;  %v1923_v28 = vsub.f32 %v4118_v38, %v1914_v22  ;;  %v1915_v36 = vmul.f32 %v4128_v21, %v4128_v21 }
 0x285   : > { %v1719_v24 = vmul.f32 %v4112_v43, %v1718_v34  ;;  %vm1741_vm15 = vcmp.eq.f32.partialorder %v1740_v41, 8.507059e+37 }
 0x286   : > { %v1712_v29 = vadd.f32 0.0009, %v1709_v42  ;;  %v1650_v38 = vrot.slane %v1649_v59, 1  ;;  %v1924_v33 = vsub.f32 %v4161_v6, %v1915_v36  ;;  %v2855_v6 = vld [vmem:[%s3240_s5 + $0x48] sm:$0xff] }
 0x287   : > { %v1720_v16 = vadd.f32 %v4112_v43, %v1719_v24 }
 0x288   : > { %v2833_v14 = vpop.eup %2832  ;;  %v4148_v37 = vmul.f32 %v1712_v29, %v1706_v58  ;;  %v1743_v58 = vor.u32 1.1754944e-38, %v1742_v7  ;;  %v4197_v46 = vpop.f32.mrf.mxu1 }
 0x289   : > { %v1732_v48 = vmul.f32 %v2833_v14, %v4116_v32  ;;  %v4154_v52 = vpop.f32.mrf.mxu3  ;;  %vm1737_vm10 = vweird.f32 %v2833_v14  ;;  %v1724_v57 = vsel %vm4174_vm11, %v4112_v43, %v1720_v16 }
 0x28a   : > { %2834 = vrcp.f32 %v4148_v37  ;;  %v1916_v61 = vmul.f32 %v4154_v52, %v4154_v52  ;;  %vm1738_vm14 = vmor %vm1736_vm13, %vm1737_vm10  ;;  %v1729_v43 = vsel %vm4178_vm12, %v1728_v62, %v1724_v57  ;;  %vm1751_vm8 = vweird.f32 %v4148_v37  ;;  %v2856_v62 = vld [vmem:[%s3233_s30 + $0x50] sm:$0xff] }
 0x28b   : > { %v1733_v31 = vsub.f32 1.0, %v1732_v48  ;;  %v1246_v10 = vpop.f32.mrf.mxu2 }
 0x28c   : > { %v1925_v11 = vsub.f32 %v1246_v10, %v1916_v61  ;;  %v1946_v17 = vadd.f32 %v1916_v61, %v1913_v56  ;;  %v1755_v10 = vand.u32 2147483647, %v4148_v37 }
 0x28d   : > { %v1515_v20 = vpop.xlane.xlu0 %1514  ;;  %v1734_v35 = vmul.f32 %v2833_v14, %v1733_v31 }
 0x28e   : > { %v1516_v2 = vrot.slane %v1515_v20, 4  ;;  %v1952_v12 = vadd.f32 %v1925_v11, %v1922_v23  ;;  %v1949_v32 = vadd.f32 0.0001, %v1946_v17  ;;  %v1651_v11 = vadd.f32 %v1650_v38, %v1649_v59 }
 0x28f   : > { %v1735_v26 = vadd.f32 %v2833_v14, %v1734_v35  ;;  %vm1756_vm10 = vcmp.eq.f32.partialorder %v1755_v10, 8.507059e+37 }
 0x290   : > { %v1517_v25 = vadd.f32 %v1516_v2, %v1515_v20  ;;  %v2835_v34 = vpop.eup %2834  ;;  %v1955_v42 = vadd.f32 0.0009, %v1952_v12  ;;  %v1700_v12 = vmul.f32 %v4151_v39, %v4143_v47 }
 0x291   : > { %v1747_v56 = vmul.f32 %v2835_v34, %v4148_v37  ;;  %v4189_v30 = vpop.f32.mrf.mxu3  ;;  %v1739_v5 = vsel %vm1738_vm14, %v2833_v14, %v1735_v26  ;;  %v1757_v14 = vand.u32 2147483648, %v4148_v37  ;;  %vm1752_vm6 = vweird.f32 %v2835_v34 }
 0x292   : > { %v1518_v4 = vrot.slane %v1517_v25, 2  ;;  %v1917_v29 = vmul.f32 %v4189_v30, %v4189_v30  ;;  %v1744_v0 = vsel %vm1741_vm15, %v1743_v58, %v1739_v5  ;;  %v4195_v48 = vmul.f32 %v1955_v42, %v1949_v32  ;;  %vm1753_vm9 = vmor %vm1751_vm8, %vm1752_vm6  ;;  %v4236_v32 = vpop.f32.mrf.mxu1 }
 0x293   : > { %v1249_v1 = vpop.f32.mrf.mxu2  ;;  %v1748_v24 = vsub.f32 1.0, %v1747_v56  ;;  %v1745_v20 = vmul.f32 %v1744_v0, %v4146_v55  ;;  %v1758_v17 = vor.u32 1.1754944e-38, %v1757_v14  ;;  %v2857_v56 = vld [vmem:[%s3240_s5 + $0x50] sm:$0xff] }
 0x294   : > { %v1519_v54 = vadd.f32 %v1518_v4, %v1517_v25  ;;  %v1947_v23 = vadd.f32 %v1917_v29, %v1914_v22  ;;  %v1926_v61 = vsub.f32 %v1249_v1, %v1917_v29  ;;  %v1730_v22 = vmul.f32 %v1729_v43, %v4141_v44  ;;  %v2859_v43 = vld [vmem:[%s3240_s5 + $0x58] sm:$0xff] }
 0x295   : > { %v1749_v31 = vmul.f32 %v2835_v34, %v1748_v24  ;;  %2836 = vrcp.f32 %v4195_v48  ;;  %v1614_v44 = vadd.f32 %v1613_v27, %v4094_v45  ;;  %v1762_v39 = vsel %vm1413_vm5, %v1745_v20, 0.0 }
 0x296   : > { %v1520_v3 = vrot.slane %v1519_v54, 1  ;;  %v1953_v53 = vadd.f32 %v1926_v61, %v1923_v28  ;;  %v1950_v35 = vadd.f32 0.0001, %v1947_v23  ;;  %v1761_v25 = vsel %vm1413_vm5, %v1730_v22, 0.0 }
 0x297   : > { %v1750_v2 = vadd.f32 %v2835_v34, %v1749_v31  ;;  %v1764_v57 = vadd.f32 %v1762_v39, %v1761_v25  ;;  %v2023_v4 = vsub.f32 %v2856_v62, %v2857_v56  ;;  %v2025_v24 = vand.u32 2147483647, %v2021_v8  ;;  %v4263_v39 = vld [vmem:[%s3240_s5 + $0x60] sm:$0xff] }
 0x298   : > { %v1521_v16 = vadd.f32 %v1520_v3, %v1519_v54  ;;  %v1956_v7 = vadd.f32 0.0009, %v1953_v53  ;;  %v2858_v54 = vld [vmem:[%s3233_s30 + $0x58] sm:$0xff]  ;;  %v1919_v22 = vmul.f32 %v4154_v52, %v4076_v60  ;;  %v1972_v62 = vand.u32 2147483648, %v4195_v48 }
 0x299   : > { %v4209_v41 = vpop.f32.mrf.mxu3  ;;  %v1754_v55 = vsel %vm1753_vm9, %v2835_v34, %v1750_v2  ;;  %v2854_v34 = vld [vmem:[%s3233_s30 + $0x48] sm:$0xff]  ;;  %v2024_v0 = vsub.f32 %v2858_v54, %v2859_v43  ;;  %v2027_v3 = vand.u32 2147483647, %v2023_v4  ;;  %v2029_v53 = vsel %vm384_vm0, %v2025_v24, 0.0 }
 0x29a   : > { %2716 = vpush %v1521_v16  ;;  %v4214_v37 = vmul.f32 %v1956_v7, %v1950_v35  ;;  %v1918_v59 = vmul.f32 %v4209_v41, %v4209_v41  ;;  %v1759_v47 = vsel %vm1756_vm10, %v1758_v17, %v1754_v55  ;;  %v2022_v42 = vsub.f32 %v2854_v34, %v2855_v6  ;;  %v4267_v52 = vpop.f32.mrf.mxu1 }
 0x29b   : > { %2718 = vpush %v4138_v13  ;;  %v1252_v45 = vpop.f32.mrf.mxu2  ;;  %v1760_v27 = vmul.f32 %v1759_v47, %v1700_v12  ;;  %v4233_v5 = vpop.eup %2836  ;;  %v2032_v17 = vsel %vm384_vm0, %v2027_v3, 0.0  ;;  %v1920_v12 = vmul.f32 %v4189_v30, %v4102_v50  ;;  %v4260_v47 = vld [vmem:[%s3233_s30 + $0x60] sm:$0xff]  ;;  %vm1966_vm13 = vweird.f32 %v4195_v48 }
 0x29c   : > { %2720 = vpush %v1614_v44  ;;  %2838 = vrcp.f32 %v4214_v37  ;;  %v1948_v13 = vadd.f32 %v1918_v59, %v1915_v36  ;;  %v1927_v26 = vsub.f32 %v1252_v45, %v1918_v59  ;;  %v2026_v23 = vand.u32 2147483647, %v2022_v42  ;;  %v4273_v45 = vld [vmem:[%s3233_s30 + $0x68] sm:$0xff] }
 0x29d   : > { %2722 = vpush %v1651_v11  ;;  %v1763_v28 = vsel %vm1413_vm5, %v1760_v27, 0.0  ;;  %v1962_v61 = vmul.f32 %v4233_v5, %v4195_v48  ;;  %v2028_v36 = vand.u32 2147483647, %v2024_v0  ;;  %v2266_v60 = vsub.f32 %v4260_v47, %v4263_v39 }
 0x29e   : > { %v1954_v40 = vadd.f32 %v1927_v26, %v1924_v33  ;;  %v1765_v58 = vsel %vm1511_vm7, %v1763_v28, 0.0  ;;  %v1951_v29 = vadd.f32 0.0001, %v1948_v13  ;;  %v2030_v16 = vsel %vm384_vm0, %v2026_v23, 0.0  ;;  %v4270_v33 = vld [vmem:[%s3240_s5 + $0x68] sm:$0xff] }
 0x29f   : > { %v1766_v38 = vadd.f32 %v1765_v58, %v1764_v57  ;;  %v1963_v2 = vsub.f32 1.0, %v1962_v61  ;;  %v2031_v7 = vadd.f32 %v2030_v16, %v2029_v53  ;;  %v2034_v44 = vsel %vm384_vm0, %v2028_v36, 0.0  ;;  %v2365_v16 = vpop.permute.xlu1 %2364 }
 0x2a0   : > { %v1957_v1 = vadd.f32 0.0009, %v1954_v40  ;;  %v2267_v50 = vsub.f32 %v4273_v45, %v4270_v33  ;;  %v2379_v13 = vsel %vm1636_vm4, %v4069_v51, 0.0  ;;  %v1931_v26 = vmul.f32 2.0, %v1919_v22 }
 0x2a1   : > { %1767 = vadd.xlane.f32.xlu2 %v1766_v38  ;;  %v1272_v14 = vpop.f32.mrf.mxu3  ;;  %v2033_v59 = vadd.f32 %v2032_v17, %v2031_v7  ;;  %v1964_v30 = vmul.f32 %v4233_v5, %v1963_v2  ;;  %v1932_v34 = vmul.f32 2.0, %v1920_v12  ;;  %v1921_v42 = vmul.f32 %v4209_v41, %v4128_v21 }
 0x2a2   : > { %v4242_v31 = vpop.eup %2838  ;;  %v4244_v10 = vmul.f32 %v1957_v1, %v1951_v29  ;;  %v1928_v55 = vsub.f32 %v1272_v14, %v1919_v22  ;;  %vm1967_vm11 = vweird.f32 %v4233_v5  ;;  %v1985_v51 = vand.u32 2147483647, %v4214_v37  ;;  %v1376_v2 = vpop.f32.mrf.mxu1 }
 0x2a3   : > { %v1977_v11 = vmul.f32 %v4242_v31, %v4214_v37  ;;  %v4249_v20 = vpop.f32.mrf.mxu2  ;;  %v2035_v18 = vadd.f32 %v2034_v44, %v2033_v59  ;;  %v1987_v40 = vand.u32 2147483648, %v4214_v37  ;;  %v1965_v58 = vadd.f32 %v4233_v5, %v1964_v30  ;;  %vm4299_vm14 = vmor %vm1966_vm13, %vm1967_vm11 }
 0x2a4   : > { %2840 = vrcp.f32 %v4244_v10  ;;  %v1937_v57 = vmul.f32 2.0, %v1928_v55  ;;  %vm1982_vm12 = vweird.f32 %v4242_v31  ;;  %v2377_v29 = vsel %vm1636_vm4, %v4063_v19, 0.0 }
 0x2a5   : > { %v1978_v35 = vsub.f32 1.0, %v1977_v11  ;;  %2036 = vadd.xlane.f32.xlu1 %v2035_v18  ;;  %v1934_v38 = vadd.f32 0.0001, %v1931_v26  ;;  %v1935_v54 = vadd.f32 0.0001, %v1932_v34  ;;  %vm1981_vm15 = vweird.f32 %v4214_v37 }
 0x2a6   : > { %v1940_v43 = vadd.f32 0.0009, %v1937_v57  ;;  %v1933_v23 = vmul.f32 2.0, %v1921_v42  ;;  %v1970_v61 = vand.u32 2147483647, %v4195_v48  ;;  %v1973_v14 = vor.u32 1.1754944e-38, %v1972_v62  ;;  %vm4306_vm6 = vmor %vm1981_vm15, %vm1982_vm12 }
 0x2a7   : > { %v1979_v25 = vmul.f32 %v4242_v31, %v1978_v35  ;;  %vm4310_vm8 = vcmp.eq.f32.partialorder %v1985_v51, 8.507059e+37  ;;  %v1969_v36 = vsel %vm4299_vm14, %v4233_v5, %v1965_v58  ;;  %v1988_v11 = vor.u32 1.1754944e-38, %v1987_v40 }
 0x2a8   : > { %v2376_v7 = vsel %vm1636_vm4, %v2365_v16, 0.0  ;;  %v1943_v17 = vmul.f32 %v1940_v43, %v1934_v38  ;;  %v2161_v5 = vmul.f32 %v4249_v20, %v4249_v20  ;;  %v2002_v44 = vand.u32 2147483648, %v4244_v10 }
 0x2a9   : > { %v1275_v27 = vpop.f32.mrf.mxu3  ;;  %v1980_v21 = vadd.f32 %v4242_v31, %v1979_v25  ;;  %vm1996_vm10 = vweird.f32 %v4244_v10  ;;  %v2000_v30 = vand.u32 2147483647, %v4244_v10  ;;  %vm1971_vm11 = vcmp.eq.f32.partialorder %v1970_v61, 8.507059e+37  ;;  %v2867_v61 = vld [vmem:[%s3240_s5 + $0x78] sm:$0xff] }
 0x2aa   : > { %v4279_v8 = vpop.eup %2840  ;;  %v1929_v6 = vsub.f32 %v1275_v27, %v1920_v12  ;;  %v2158_v27 = vmul.f32 %v4197_v46, %v4197_v46  ;;  %v1936_v26 = vadd.f32 0.0001, %v1933_v23  ;;  %v1974_v34 = vsel %vm1971_vm11, %v1973_v14, %v1969_v36  ;;  %v2866_v23 = vld [vmem:[%s3233_s30 + $0x78] sm:$0xff] }
 0x2ab   : > { %v1992_v28 = vmul.f32 %v4279_v8, %v4244_v10  ;;  %v4288_v56 = vpop.f32.mrf.mxu2  ;;  %v1984_v37 = vsel %vm4306_vm6, %v4242_v31, %v1980_v21  ;;  %vm1997_vm9 = vweird.f32 %v4279_v8  ;;  %v2378_v31 = vadd.f32 %v2377_v29, %v2376_v7 }
 0x2ac   : > { %v1938_v4 = vmul.f32 2.0, %v1929_v6  ;;  %v1989_v55 = vsel %vm4310_vm8, %v1988_v11, %v1984_v37  ;;  %vm1998_vm12 = vmor %vm1996_vm10, %vm1997_vm9  ;;  %v2191_v57 = vadd.f32 %v2161_v5, %v2158_v27  ;;  %v2003_v62 = vor.u32 1.1754944e-38, %v2002_v44 }
 0x2ad   : > { %v1993_v41 = vsub.f32 1.0, %v1992_v28  ;;  %v4334_v18 = vadd.f32 %v2379_v13, %v2378_v31  ;;  %v1975_v28 = vmul.f32 %v1974_v34, %v1943_v17  ;;  %vm2001_vm13 = vcmp.eq.f32.partialorder %v2000_v30, 8.507059e+37 }
 0x2ae   : > { %v1941_v1 = vadd.f32 0.0009, %v1938_v4  ;;  %v2270_v10 = vand.u32 2147483647, %v2266_v60  ;;  %v2271_v13 = vand.u32 2147483647, %v2267_v50  ;;  %v2170_v21 = vsub.f32 %v1376_v2, %v2161_v5  ;;  %v1379_v50 = vpop.f32.mrf.mxu1 }
 0x2af   : > { %v1994_v24 = vmul.f32 %v4279_v8, %v1993_v41  ;;  %v2194_v29 = vadd.f32 0.0001, %v2191_v57  ;;  %v2006_v39 = vsel %vm1413_vm5, %v1975_v28, 0.0  ;;  %v2269_v14 = vsub.f32 %v2866_v23, %v2867_v61 }
 0x2b0   : > { %v1944_v53 = vmul.f32 %v1941_v1, %v1935_v54  ;;  %v2864_v1 = vld [vmem:[%s3240_s5 + $0x70] sm:$0xff]  ;;  %v2274_v19 = vsel %vm384_vm0, %v2270_v10, 0.0  ;;  %v2275_v3 = vsel %vm384_vm0, %v2271_v13, 0.0  ;;  %v2162_v36 = vmul.f32 %v4288_v56, %v4288_v56  ;;  %s2697_s5 = sshll.u32 %s3120_s19, 2 }
 0x2b1   : > { %v1278_v48 = vpop.f32.mrf.mxu3  ;;  %v1995_v35 = vadd.f32 %v4279_v8, %v1994_v24  ;;  %v2865_v54 = vld [vmem:[%s3233_s30 + $0x70] sm:$0xff]  ;;  %v2276_v16 = vadd.f32 %v2275_v3, %v2274_v19  ;;  %v2291_v2 = vrot.slane %v4273_v45, 7 }
 0x2b2   : > { %v1930_v22 = vsub.f32 %v1278_v48, %v1921_v42  ;;  %v1990_v25 = vmul.f32 %v1989_v55, %v1944_v53  ;;  %v2268_v43 = vsub.f32 %v2865_v54, %v2864_v1  ;;  %v2273_v48 = vand.u32 2147483647, %v2269_v14 }
 0x2b3   : > { %v4325_v12 = vpop.f32.mrf.mxu2  ;;  %v1999_v42 = vsel %vm1998_vm12, %v4279_v8, %v1995_v35  ;;  %v2159_v35 = vmul.f32 %v4236_v32, %v4236_v32  ;;  %v2293_v5 = vrot.slane %v2865_v54, 7 }
 0x2b4   : > { %v1939_v59 = vmul.f32 2.0, %v1930_v22  ;;  %v2004_v40 = vsel %vm2001_vm13, %v2003_v62, %v1999_v42  ;;  %v2007_v8 = vsel %vm1413_vm5, %v1990_v25, 0.0  ;;  %v2272_v11 = vand.u32 2147483647, %v2268_v43 }
 0x2b5   : > { %v2009_v33 = vadd.f32 %v2007_v8, %v2006_v39  ;;  %v2290_v22 = vrot.slane %v4260_v47, 7  ;;  %v2279_v55 = vsel %vm384_vm0, %v2273_v48, 0.0  ;;  %v2192_v30 = vadd.f32 %v2162_v36, %v2159_v35 }
 0x2b6   : > { %v1942_v6 = vadd.f32 0.0009, %v1939_v59  ;;  %v2277_v17 = vsel %vm384_vm0, %v2272_v11, 0.0  ;;  %v2295_v59 = vrot.slane %v2866_v23, 7  ;;  %v2163_v42 = vmul.f32 %v4325_v12, %v4325_v12  ;;  %v1382_v62 = vpop.f32.mrf.mxu1 }
 0x2b7   : > { %v2278_v31 = vadd.f32 %v2277_v17, %v2276_v16  ;;  %v2292_v34 = vsel %vm1547_vm1, %v2290_v22, %v2291_v2 }
 0x2b8   : > { %v1945_v4 = vmul.f32 %v1942_v6, %v1936_v26  ;;  %v2294_v6 = vsel %vm1547_vm1, %v2291_v2, %v2293_v5  ;;  %v2296_v57 = vsel %vm1547_vm1, %v2293_v5, %v2295_v59  ;;  %v2302_v10 = vsub.f32 %v4273_v45, %v2292_v34 }
 0x2b9   : > { %v1350_v51 = vpop.f32.mrf.mxu3  ;;  %v2280_v26 = vadd.f32 %v2279_v55, %v2278_v31  ;;  %v2303_v13 = vsub.f32 %v2865_v54, %v2294_v6 }
 0x2ba   : > { %v2167_v58 = vsub.f32 %v1350_v51, %v2158_v27  ;;  %v2005_v41 = vmul.f32 %v2004_v40, %v1945_v4  ;;  %v2171_v27 = vsub.f32 %v1379_v50, %v2162_v36  ;;  %v2301_v4 = vsub.f32 %v4260_v47, %v2290_v22 }
 0x2bb   : > { %v4351_v0 = vpop.f32.mrf.mxu2  ;;  %2281 = vadd.xlane.f32.xlu2 %v2280_v26  ;;  %v2195_v51 = vadd.f32 0.0001, %v2192_v30  ;;  %v2160_v40 = vmul.f32 %v4267_v52, %v4267_v52  ;;  %v2322_v1 = vmul.f32 %v2302_v10, %v2302_v10  ;;  %v2323_v54 = vmul.f32 %v2303_v13, %v2303_v13 }
 0x2bc   : > { %v2197_v38 = vadd.f32 %v2170_v21, %v2167_v58  ;;  %v2008_v60 = vsel %vm1413_vm5, %v2005_v41, 0.0  ;;  %v2164_v41 = vmul.f32 %v4249_v20, %v4197_v46  ;;  %v2321_v50 = vmul.f32 %v2301_v4, %v2301_v4 }
 0x2bd   : > { %v2010_v24 = vsel %vm1511_vm7, %v2008_v60, 0.0  ;;  %v2193_v39 = vadd.f32 %v2163_v42, %v2160_v40  ;;  %v2172_v60 = vsub.f32 %v1382_v62, %v2163_v42  ;;  %v2165_v46 = vmul.f32 %v4288_v56, %v4236_v32 }
 0x2be   : > { %v2200_v53 = vadd.f32 0.0009, %v2197_v38  ;;  %v2011_v37 = vadd.f32 %v2010_v24, %v2009_v33  ;;  %v2176_v61 = vmul.f32 2.0, %v2164_v41  ;;  %v2329_v19 = vrot.slane %v2321_v50, 1 }
 0x2bf   : > { %v2196_v20 = vadd.f32 0.0001, %v2193_v39  ;;  %v2330_v3 = vrot.slane %v2322_v1, 1  ;;  %v2332_v36 = vrot.slane %v2323_v54, 1  ;;  %v2177_v2 = vmul.f32 2.0, %v2165_v46 }
 0x2c0   : > { %v4364_v7 = vmul.f32 %v2200_v53, %v2194_v29  ;;  %2012 = vadd.xlane.f32.xlu0 %v2011_v37  ;;  %v2304_v29 = vsub.f32 %v2866_v23, %v2296_v57  ;;  %v2173_v53 = vsub.f32 %v4351_v0, %v2164_v41  ;;  %v2179_v22 = vadd.f32 0.0001, %v2176_v61 }
 0x2c1   : > { %v1353_v44 = vpop.f32.mrf.mxu3  ;;  %v2331_v5 = vsel %vm1587_vm2, %v2329_v19, %v2330_v3  ;;  %v2333_v0 = vsel %vm1587_vm2, %v2330_v3, %v2332_v36 }
 0x2c2   : > { %2842 = vrcp.f32 %v4364_v7  ;;  %v2168_v25 = vsub.f32 %v1353_v44, %v2159_v35  ;;  %v2324_v24 = vmul.f32 %v2304_v29, %v2304_v29  ;;  %v2166_v35 = vmul.f32 %v4325_v12, %v4267_v52 }
 0x2c3   : > { %v1405_v58 = vpop.f32.mrf.mxu2  ;;  %v2182_v44 = vmul.f32 2.0, %v2173_v53  ;;  %vm2211_vm14 = vweird.f32 %v4364_v7  ;;  %v2217_v57 = vand.u32 2147483648, %v4364_v7 }
 0x2c4   : > { %v2198_v28 = vadd.f32 %v2171_v27, %v2168_v25  ;;  %v2174_v37 = vsub.f32 %v1405_v58, %v2165_v46  ;;  %v2334_v48 = vrot.slane %v2324_v24, 1  ;;  %v2340_v27 = vsel %vm384_vm0, %v2331_v5, 0.0 }
 0x2c5   : > { %v2341_v25 = vsel %vm384_vm0, %v2333_v0, 0.0  ;;  %v2180_v58 = vadd.f32 0.0001, %v2177_v2  ;;  %v2185_v41 = vadd.f32 0.0009, %v2182_v44  ;;  %v1793_v44 = vrot.slane %v4091_v9, 4 }
 0x2c6   : > { %v2201_v8 = vadd.f32 0.0009, %v2198_v28  ;;  %v2183_v31 = vmul.f32 2.0, %v2174_v37  ;;  %v2335_v59 = vsel %vm1587_vm2, %v2332_v36, %v2334_v48  ;;  %v2342_v42 = vadd.f32 %v2341_v25, %v2340_v27 }
 0x2c7   : > { %v2343_v26 = vsel %vm384_vm0, %v2335_v59, 0.0  ;;  %v2215_v28 = vand.u32 2147483647, %v4364_v7  ;;  %v2345_v4 = vsel %vm1604_vm3, %v2334_v48, 0.0 }
 0x2c8   : > { %v4378_v21 = vpop.eup %2842  ;;  %v4384_v47 = vmul.f32 %v2201_v8, %v2195_v51  ;;  %v2186_v62 = vadd.f32 0.0009, %v2183_v31  ;;  %v2344_v8 = vadd.f32 %v2343_v26, %v2342_v42  ;;  %v1894_v31 = vpop.xlane.xlu2 %1893 }
 0x2c9   : > { %v2207_v38 = vmul.f32 %v4378_v21, %v4364_v7  ;;  %v1356_v45 = vpop.f32.mrf.mxu3  ;;  %vm2212_vm15 = vweird.f32 %v4378_v21  ;;  %vm2216_vm9 = vcmp.eq.f32.partialorder %v2215_v28, 8.507059e+37 }
 0x2ca   : > { %v2169_v33 = vsub.f32 %v1356_v45, %v2160_v40  ;;  %2844 = vrcp.f32 %v4384_v47  ;;  %v2230_v52 = vand.u32 2147483647, %v4384_v47  ;;  %v2232_v30 = vand.u32 2147483648, %v4384_v47  ;;  %vm4415_vm2 = vmor %vm2211_vm14, %vm2212_vm15 }
 0x2cb   : > { %v2208_v23 = vsub.f32 1.0, %v2207_v38  ;;  %v1408_v56 = vpop.f32.mrf.mxu2  ;;  %vm2226_vm0 = vweird.f32 %v4384_v47  ;;  %v2346_v45 = vadd.f32 %v2345_v4, %v2344_v8  ;;  %s2717_s20 = spop %2716  ;;  %vm1664_vm14 = vcmp.eq.s32.totalorder %v3981_v49, 3 }
 0x2cc   : > { %v2199_v43 = vadd.f32 %v2172_v60, %v2169_v33  ;;  %v2175_v12 = vsub.f32 %v1408_v56, %v2166_v35  ;;  %v2233_v29 = vor.u32 1.1754944e-38, %v2232_v30  ;;  %vm2231_vm3 = vcmp.eq.f32.partialorder %v2230_v52, 8.507059e+37  ;;  %v2371_v56 = vpop.permute.xlu1 %2370  ;;  %s2719_s24 = spop %2718 }
 0x2cd   : > { %v2209_v32 = vmul.f32 %v4378_v21, %v2208_v23  ;;  %v2178_v60 = vmul.f32 2.0, %v2166_v35  ;;  %v2218_v33 = vor.u32 1.1754944e-38, %v2217_v57  ;;  %2347 = vadd.xlane.f32.xlu0 %v2346_v45  ;;  %v1895_v52 = vrot.slane %v1894_v31, 4  ;;  %s4442_s12 = spop %2720 }
 0x2ce   : > { %v2202_v14 = vadd.f32 0.0009, %v2199_v43  ;;  %v2184_v40 = vmul.f32 2.0, %v2175_v12  ;;  %v1794_v12 = vadd.f32 %v1793_v44, %v4091_v9  ;;  %s4444_s27 = spop %2722  ;;  %vm2404_vm15 = vcmask 1041408  }
 0x2cf   : > { %v2210_v34 = vadd.f32 %v4378_v21, %v2209_v32  ;;  %v2181_v23 = vadd.f32 0.0001, %v2178_v60  ;;  %v1896_v30 = vadd.f32 %v1895_v52, %v1894_v31 }
 0x2d0   : > { %v4390_v11 = vmul.f32 %v2202_v14, %v2196_v20  ;;  %v2845_v16 = vpop.eup %2844  ;;  %v2187_v54 = vadd.f32 0.0009, %v2184_v40  ;;  %v2188_v20 = vmul.f32 %v2185_v41, %v2179_v22  ;;  %v1795_v27 = vrot.slane %v1794_v12, 2 }
 0x2d1   : > { %v2222_v17 = vmul.f32 %v2845_v16, %v4384_v47  ;;  %vm2227_vm6 = vweird.f32 %v2845_v16  ;;  %v2214_v38 = vsel %vm4415_vm2, %v4378_v21, %v2210_v34  ;;  %v2189_v47 = vmul.f32 %v2186_v62, %v2180_v58 }
 0x2d2   : > { %2846 = vrcp.f32 %v4390_v11  ;;  %vm2228_vm8 = vmor %vm2226_vm0, %vm2227_vm6  ;;  %v2247_v43 = vand.u32 2147483648, %v4390_v11  ;;  %v2219_v24 = vsel %vm2216_vm9, %v2218_v33, %v2214_v38  ;;  %v2245_v46 = vand.u32 2147483647, %v4390_v11 }
 0x2d3   : > { %v2223_v55 = vsub.f32 1.0, %v2222_v17  ;;  %vm2241_vm11 = vweird.f32 %v4390_v11  ;;  %v2220_v19 = vmul.f32 %v2219_v24, %v2188_v20  ;;  %v2190_v36 = vmul.f32 %v2187_v54, %v2181_v23 }
 0x2d4   : > { %v2248_v3 = vor.u32 1.1754944e-38, %v2247_v43  ;;  %vm2246_vm13 = vcmp.eq.f32.partialorder %v2245_v46, 8.507059e+37  ;;  %v2381_v17 = vsel %vm1636_vm4, %v2371_v56, 0.0  ;;  %v1897_v26 = vrot.slane %v1896_v30, 2 }
 0x2d5   : > { %v2224_v6 = vmul.f32 %v2845_v16, %v2223_v55  ;;  %v2251_v2 = vsel %vm1413_vm5, %v2220_v19, 0.0  ;;  %v2382_v5 = vadd.f32 %v2381_v17, %v4334_v18  ;;  %v1796_v42 = vadd.f32 %v1795_v27, %v1794_v12 }
 0x2d6   : > { %v1898_v18 = vadd.f32 %v1897_v26, %v1896_v30  ;;  %v2104_v38 = vrot.slane %v4078_v15, 4  ;;  %vm1653_vm4 = vcmp.eq.s32.totalorder %v3981_v49, 0  ;;  %vm2406_vm6 = vcmask 1042432  }
 0x2d7   : > { %v2225_v51 = vadd.f32 %v2845_v16, %v2224_v6  ;;  %v1797_v4 = vrot.slane %v1796_v42, 1 }
 0x2d8   : > { %v2847_v10 = vpop.eup %2846  ;;  %v2105_v60 = vadd.f32 %v2104_v38, %v4078_v15 }
 0x2d9   : > { %v2237_v39 = vmul.f32 %v2847_v10, %v4390_v11  ;;  %v2229_v7 = vsel %vm2228_vm8, %v2845_v16, %v2225_v51  ;;  %vm2242_vm10 = vweird.f32 %v2847_v10  ;;  %v1899_v51 = vrot.slane %v1898_v18, 1 }
 0x2da   : > { %v2234_v50 = vsel %vm2231_vm3, %v2233_v29, %v2229_v7  ;;  %vm2243_vm12 = vmor %vm2241_vm11, %vm2242_vm10  ;;  %v1798_v8 = vadd.f32 %v1797_v4, %v1796_v42  ;;  %v2140_v7 = vrot.slane %v4124_v63, 4  ;;  %v1654_v4 = vstv %s2717_s20  ;;  %s2420_s20 = scalar_lea.hbm %s4526_s4, %s2697_s5 }
 0x2db   : > { %v2238_v1 = vsub.f32 1.0, %v2237_v39  ;;  %v2235_v21 = vmul.f32 %v2234_v50, %v2189_v47  ;;  %v1900_v41 = vadd.f32 %v1899_v51, %v1898_v18  ;;  %v1657_v51 = vstv %s2719_s24  ;;  %s294_s24 = scalar_lea.vmem [#allocation10], %s2555_s26 }
 0x2dc   : > { %v2141_v33 = vadd.f32 %v2140_v7, %v4124_v63 }
 0x2dd   : > { %v2239_v61 = vmul.f32 %v2847_v10, %v2238_v1  ;;  %v2252_v48 = vsel %vm1413_vm5, %v2235_v21, 0.0  ;;  %v2106_v1 = vrot.slane %v2105_v60, 2 }
 0x2de   : > { %v2254_v35 = vadd.f32 %v2252_v48, %v2251_v2  ;;  %v2142_v43 = vrot.slane %v2141_v33, 2 }
 0x2df   : > { %v2240_v14 = vadd.f32 %v2847_v10, %v2239_v61  ;;  %v2107_v46 = vadd.f32 %v2106_v1, %v2105_v60 }
 0x2e0   : > { %v2143_v23 = vadd.f32 %v2142_v43, %v2141_v33 }
 0x2e1   : > { %v2244_v53 = vsel %vm2243_vm12, %v2847_v10, %v2240_v14  ;;  %v2108_v19 = vrot.slane %v2107_v46, 1 }
 0x2e2   : > { %v2249_v37 = vsel %vm2246_vm13, %v2248_v3, %v2244_v53  ;;  %v2144_v53 = vrot.slane %v2143_v23, 1 }
 0x2e3   : > { %v2250_v16 = vmul.f32 %v2249_v37, %v2190_v36  ;;  %v2109_v15 = vadd.f32 %v2108_v19, %v2107_v46 }
 0x2e4   : > { %v2145_v63 = vadd.f32 %v2144_v53, %v2143_v23 }
 0x2e5   : > { %v2253_v22 = vsel %vm1413_vm5, %v2250_v16, 0.0  ;;  %vm1656_vm5 = vcmp.eq.s32.totalorder %v3981_v49, 1 }
 0x2e6   : > { %v2255_v11 = vsel %vm1511_vm7, %v2253_v22, 0.0  ;;  %vm1660_vm7 = vcmp.eq.s32.totalorder %v3981_v49, 2 }
 0x2e7   : > { %v2256_v32 = vadd.f32 %v2255_v11, %v2254_v35 }
 0x2e9   : > { %2257 = vadd.xlane.f32.xlu1 %v2256_v32 }
 0x2f1   : > { %2383 = vadd.xlane.f32.xlu1 %v2382_v5 }
 0x2f6   : > { %v1858_v0 = vpop.xlane.xlu1 %1857 }
 0x2f7   : > { %v1859_v55 = vrot.slane %v1858_v0, 4 }
 0x2f9   : > { %v1860_v59 = vadd.f32 %v1859_v55, %v1858_v0 }
 0x2fb   : > { %v1861_v25 = vrot.slane %v1860_v59, 2 }
 0x2fd   : > { %v1862_v57 = vadd.f32 %v1861_v25, %v1860_v59 }
 0x2ff   : > { %v1863_v13 = vrot.slane %v1862_v57, 1 }
 0x301   : > { %v1864_v9 = vadd.f32 %v1863_v13, %v1862_v57 }
 0x314   : > { %v1768_v34 = vpop.xlane.xlu2 %1767 }
 0x315   : > { %v1769_v6 = vrot.slane %v1768_v34, 4 }
 0x317   : > { %v1770_v28 = vadd.f32 %v1769_v6, %v1768_v34 }
 0x318   : > { %v2037_v29 = vpop.xlane.xlu1 %2036 }
 0x319   : > { %v1771_v62 = vrot.slane %v1770_v28, 2  ;;  %v2038_v39 = vrot.slane %v2037_v29, 4 }
 0x31b   : > { %v1772_v10 = vadd.f32 %v1771_v62, %v1770_v28  ;;  %v2039_v45 = vadd.f32 %v2038_v39, %v2037_v29  ;;  %v1658_v29 = vsel %vm1656_vm5, %v1657_v51, 0.0 }
 0x31d   : > { %v1773_v40 = vrot.slane %v1772_v10, 1  ;;  %v2040_v50 = vrot.slane %v2039_v45, 2 }
 0x31f   : > { %v1774_v58 = vadd.f32 %v1773_v40, %v1772_v10  ;;  %v2041_v24 = vadd.f32 %v2040_v50, %v2039_v45 }
 0x321   : > { %2724 = vpush %v1774_v58  ;;  %v2042_v21 = vrot.slane %v2041_v24, 1  ;;  %v1655_v58 = vsel %vm1653_vm4, %v1654_v4, 0.0 }
 0x322   : > { %2726 = vpush %v1798_v8  ;;  %v1659_v33 = vadd.f32 %v1658_v29, %v1655_v58 }
 0x323   : > { %2728 = vpush %v1864_v9  ;;  %v2043_v36 = vadd.f32 %v2042_v21, %v2041_v24 }
 0x324   : > { %2730 = vpush %v1900_v41 }
 0x32e   : > { %v2282_v16 = vpop.xlane.xlu2 %2281 }
 0x32f   : > { %v2283_v22 = vrot.slane %v2282_v16, 4 }
 0x331   : > { %v2284_v11 = vadd.f32 %v2283_v22, %v2282_v16 }
 0x333   : > { %v2013_v47 = vpop.xlane.xlu0 %2012  ;;  %v2285_v56 = vrot.slane %v2284_v11, 2 }
 0x334   : > { %v2014_v54 = vrot.slane %v2013_v47, 4 }
 0x335   : > { %v2286_v31 = vadd.f32 %v2285_v56, %v2284_v11 }
 0x336   : > { %v2015_v61 = vadd.f32 %v2014_v54, %v2013_v47  ;;  %v1661_v47 = vstv %s4442_s12  ;;  %s2422_s12 = sshll.u32 %s294_s24, 4  ;;  %s2423_s12 = int_to_ptr.vmem [resolvable:$true] %s2422_s12 }
 0x337   : > { %v2287_v30 = vrot.slane %v2286_v31, 1 }
 0x338   : > { %v2016_v20 = vrot.slane %v2015_v61, 2 }
 0x339   : > { %v2288_v42 = vadd.f32 %v2287_v30, %v2286_v31 }
 0x33a   : > { %v2017_v14 = vadd.f32 %v2016_v20, %v2015_v61  ;;  %v1665_v20 = vstv %s4444_s27  ;;  %s2424_s27 = sshll.u32 %s2420_s20, 4  ;;  %s2425_s27 = int_to_ptr.hbm [resolvable:$true] %s2424_s27 }
 0x33c   : > { %v2018_v3 = vrot.slane %v2017_v14, 1 }
 0x33e   : > { %v2019_v37 = vadd.f32 %v2018_v3, %v2017_v14  ;;  %v1662_v14 = vsel %vm1660_vm7, %v1661_v47, 0.0 }
 0x33f   : > { %v1663_v53 = vadd.f32 %v1662_v14, %v1659_v33 }
 0x340   : > { %2732 = vpush %v2019_v37  ;;  %v2348_v48 = vpop.xlane.xlu0 %2347 }
 0x341   : > { %2734 = vpush %v2043_v36  ;;  %v2349_v2 = vrot.slane %v2348_v48, 4 }
 0x342   : > { %2736 = vpush %v2109_v15 }
 0x343   : > { %2738 = vpush %v2145_v63  ;;  %v2350_v35 = vadd.f32 %v2349_v2, %v2348_v48  ;;  %v1666_v63 = vsel %vm1664_vm14, %v1665_v20, 0.0 }
 0x345   : > { %v2351_v32 = vrot.slane %v2350_v35, 2 }
 0x347   : > { %v2352_v44 = vadd.f32 %v2351_v32, %v2350_v35  ;;  %v1667_v35 = vadd.f32 %v1666_v63, %v1663_v53 }
 0x349   : > { %v2353_v12 = vrot.slane %v2352_v44, 1 }
 0x34b   : > { %v2354_v6 = vadd.f32 %v2353_v12, %v2352_v44 }
 0x352   : > { %s2725_s28 = spop %2724 }
 0x353   : > { %s2727_s9 = spop %2726  ;;  %v1902_v10 = vstv %s2725_s28  ;;  %s2410_s28 = scalar_lea.sflag [#allocation4], %s3229_s23 }
 0x354   : > { %s2729_s2 = spop %2728  ;;  %v1904_v13 = vstv %s2727_s9  ;;  %v1903_v9 = vsel %vm1653_vm4, %v1902_v10, 0.0  ;;  %s3002_s9 = sshra.s32 %s2425_s27, 4  ;;  %s3003_s9 = int_to_ptr.hbm [resolvable:$true] %s3002_s9 }
 0x355   : > { %s4446_s25 = spop %2730  ;;  %v1905_v41 = vsel %vm1656_vm5, %v1904_v13, 0.0  ;;  %v1907_v39 = vstv %s2729_s2  ;;  %s3004_s2 = scalar_lea.hbm %s3003_s9, 4 }
 0x356   : > { %v1906_v60 = vadd.f32 %v1905_v41, %v1903_v9  ;;  %v1908_v50 = vsel %vm1660_vm7, %v1907_v39, 0.0  ;;  %v1910_v54 = vstv %s4446_s25  ;;  %p3005_p1 = scmp.ne.s32.totalorder %s3003_s9, %s3004_s2  ;;  %p3009_p2 = scmp.lt.s32.totalorder %s3003_s9, %s4526_s4 }
 0x357   : > { %v1911_v19 = vsel %vm1664_vm14, %v1910_v54, 0.0 }
 0x358   : > { %v1909_v21 = vadd.f32 %v1908_v50, %v1906_v60  ;;  %p3006_p4 = pnand %p3005_p1, %p3171_p3 }
 0x35a   : > { %v1912_v48 = vadd.f32 %v1911_v19, %v1909_v21  ;;  %p3007_p8 = pneg %p3006_p4 }
 0x35c   : > { %v2258_v17 = vpop.xlane.xlu1 %2257 }
 0x35d   : > { %v2259_v5 = vrot.slane %v2258_v17, 4 }
 0x35f   : > { %v2260_v0 = vadd.f32 %v2259_v5, %v2258_v17  ;;  %v2403_v17 = vsel %vm1547_vm1, %v1667_v35, %v1912_v48 }
 0x361   : > { %v2261_v55 = vrot.slane %v2260_v0, 2 }
 0x363   : > { %v2262_v52 = vadd.f32 %v2261_v55, %v2260_v0 }
 0x364   : > { %v2384_v59 = vpop.xlane.xlu1 %2383 }
 0x365   : > { %v2385_v27 = vrot.slane %v2384_v59, 4  ;;  %v2263_v25 = vrot.slane %v2262_v52, 1 }
 0x367   : > { %v2386_v26 = vadd.f32 %v2385_v27, %v2384_v59  ;;  %v2264_v34 = vadd.f32 %v2263_v25, %v2262_v52 }
 0x369   : > { %v2387_v28 = vrot.slane %v2386_v26, 2  ;;  %2740 = vpush %v2264_v34 }
 0x36a   : > { %2742 = vpush %v2288_v42 }
 0x36b   : > { %v2388_v57 = vadd.f32 %v2387_v28, %v2386_v26  ;;  %2744 = vpush %v2354_v6 }
 0x36d   : > { %v2389_v18 = vrot.slane %v2388_v57, 1 }
 0x36f   : > { %v2390_v62 = vadd.f32 %v2389_v18, %v2388_v57 }
 0x371   : > { %2746 = vpush %v2390_v62  ;;  %s2733_s29 = spop %2732 }
 0x372   : > { %s2735_s11 = spop %2734  ;;  %v2147_v40 = vstv %s2733_s29 }
 0x373   : > { %v2149_v8 = vstv %s2735_s11  ;;  %v2148_v38 = vsel %vm1653_vm4, %v2147_v40, 0.0  ;;  %s2737_s7 = spop %2736  ;;  %s3008_s11 = scalar_lea.hbm %s4526_s4, 8 }
 0x374   : > { %v2150_v7 = vsel %vm1656_vm5, %v2149_v8, 0.0  ;;  %v2152_v45 = vstv %s2737_s7  ;;  %s2739_s3 = spop %2738  ;;  %p3010_p10 = scmp.lt.s32.totalorder %s3008_s11, %s3004_s2 }
 0x375   : > { %v2151_v1 = vadd.f32 %v2150_v7, %v2148_v38  ;;  %v2153_v43 = vsel %vm1660_vm7, %v2152_v45, 0.0  ;;  %v2155_v36 = vstv %s2739_s3 }
 0x376   : > { %v2156_v16 = vsel %vm1664_vm14, %v2155_v36, 0.0  ;;  %p3011_p9 = por %p3010_p10, %p3009_p2 }
 0x377   : > { %v2154_v3 = vadd.f32 %v2153_v43, %v2151_v1 }
 0x378   : > { %p3012_p11 = pnand %p3011_p9, %p3007_p8 }
 0x379   : > { %v2157_v2 = vadd.f32 %v2156_v16, %v2154_v3 }
 0x37b   : > { %v2405_v0 = vsel %vm2404_vm15, %v2403_v17, %v2157_v2 }
 0x39a   : > { %s2741_s0 = spop %2740 }
 0x39b   : > { %v2392_v24 = vstv %s2741_s0  ;;  %s2743_s30 = spop %2742 }
 0x39c   : > { %v2393_v61 = vsel %vm1653_vm4, %v2392_v24, 0.0  ;;  %v2394_v46 = vstv %s2743_s30  ;;  %s2745_s6 = spop %2744 }
 0x39d   : > { %v2395_v23 = vsel %vm1656_vm5, %v2394_v46, 0.0  ;;  %v2397_v15 = vstv %s2745_s6 }
 0x39e   : > { %v2396_v37 = vadd.f32 %v2395_v23, %v2393_v61  ;;  %v2398_v22 = vsel %vm1660_vm7, %v2397_v15, 0.0 }
 0x3a0   : > { %v2399_v11 = vadd.f32 %v2398_v22, %v2396_v37 }
 0x3a2   : > { %s2747_s19 = spop %2746 }
 0x3a3   : > { %v2400_v32 = vstv %s2747_s19 }
 0x3a4   : > { %v2401_v56 = vsel %vm1664_vm14, %v2400_v32, 0.0 }
 0x3a5   : > { %v2402_v5 = vadd.f32 %v2401_v56, %v2399_v11 }
 0x3a7   : > { %v2407_v44 = vsel %vm2406_vm6, %v2405_v0, %v2402_v5 }
 0x3a8   : > { %2408 = vst [vmem:[%s294_s24] sm:$0xf] %v2407_v44 }
 0x3a9   : > { %3015 = shalt.err (!%p3012_p11)
}
 0x3aa   : > { %2760 = dma.vmem_to_hbm [thread:$0]  (%p3171_p3), %s2423_s12, 64, %s2425_s27, %s2410_s28  }
 0x3ab PF: > { %s2436_s23 = sand.u32 1, %s3054_s15   ;;  %p4595_p12 = scmp.ge.s32.totalorder %s3066_s18, 2 }
 0x3ac   : > { %s2437_s0 = scalar_lea.sflag [#allocation4], %s2436_s23 }
 0x3ad   : > { %p2777_p13 = pnand %p4595_p12, %p3134_p6 }
 0x3af   : > { %p2778_p0 = pneg %p2777_p13 }
 0x3b1   : > { %3049 = dma.done.wait (%p2778_p0), %s2437_s0, 64  }
 0x3b2   : > { %3051 = vsyncadd (%p2778_p0), %s2437_s0, 4294967232  ;;  %p21_p5 = scmp.ge.s32.totalorder %s3161_s10, 4   ;;  %s4596_s15 = smov %s3058_s16 }
 0x3b3   : > { %s4597_s16 = smov %s3062_s17  ;;  %s4598_s17 = smov %s3177_s14 }
 0x3b4   : > { %s4599_s18 = smov %s3161_s10  ;;  %23 = sbr.rel (!%p21_p5) target bundleno = 12 (0xc), region = 102 }
 0x3b9   :  { %2443 = vsyncpa [#allocation3], 1 }
 0x3ba   :  { %2445 = vsyncpa [#allocation3 + $0x1], 1 }
 0x3bb   :  { %2446 = vsyncpa [#allocation6], 1 }
 0x3bc   :  { %2448 = vsyncpa [#allocation6 + $0x1], 1 }
 0x3bd   :  { %2449 = vsyncpa [#allocation9], 1 }
 0x3be   :  { %2450 = vsyncpa [#allocation4], 1 }
 0x3bf   :  { %2452 = vsyncpa [#allocation4 + $0x1], 1 }

</bundles_post_ra>
